<compile_context>
chip_gen: v7x
topology: tpu7x:2x2x1
jax: 0.10.0
libtpu: 0.0.40
codegen_flags: <defaults>
</compile_context>

<pallas_src>
import functools

import jax
import jax.numpy as jnp
from jax.experimental import pallas as pl
from jax.experimental.pallas import tpu as pltpu


# ----------------------------- kernel ---------------------------------------


def _act_and_deriv(z, kind):
    if kind == "tanh":
        a = jnp.tanh(z)
        return a, 1.0 - a * a
    if kind == "sigmoid":
        a = jax.nn.sigmoid(z)
        return a, a * (1.0 - a)
    if kind == "relu":
        a = jnp.maximum(z, 0.0)
        return a, (z > 0.0).astype(z.dtype)
    raise ValueError(f"Unsupported activation: {kind}")


def pinn_kernel(
    w1z_ref,   # (H, 2)  first-layer weight with feature scaling folded in
    w1t_ref,   # (H, 2)  first-layer weight used to seed the input tangents
    b1_ref,    # (H, 1)  first-layer bias (scaling folded in)
    wh_ref,    # (n_hidden-1, H, H) hidden weights (PyTorch (out,in) layout)
    bh_ref,    # (n_hidden-1, H, 1) hidden biases
    wo_ref,    # (2, H)   output weight
    bo_ref,    # (2, 1)   output bias
    xt_ref,    # (2, TB)  current batch tile, feature-major
    out_ref,   # (3, TB)  rows = (u, v, p), lane-dense over batch
    *,
    n_hidden,
    activation,
):
    Xt = xt_ref[...].astype(jnp.float32)                    # (2, TB)
    TB = Xt.shape[1]
    x_row = Xt[0:1, :]                                      # (1, TB)
    y_row = Xt[1:2, :]                                      # (1, TB)

    W1z = w1z_ref[...]                                      # (H, 2)
    W1t = w1t_ref[...]                                      # (H, 2)
    b1 = b1_ref[...]                                        # (H, 1)

    # First layer on the VPU (a K=2 MXU matmul is pure overhead).
    z = W1z[:, 0:1] * x_row + W1z[:, 1:2] * y_row + b1      # (H, TB)
    h, d = _act_and_deriv(z, activation)
    # Forward-mode tangents w.r.t. the (scaled) input coords, implicit bcast.
    tx = d * W1t[:, 0:1]                                    # (H, TB)
    ty = d * W1t[:, 1:2]                                    # (H, TB)

    # Stack value + tangent streams along the (lane) batch axis: one MXU
    # matmul per hidden layer instead of three.
    S = jnp.concatenate([h, tx, ty], axis=1)                # (H, 3*TB)

    for l in range(n_hidden - 1):
        Wl = wh_ref[l]                                      # (H, H)
        bl = bh_ref[l]                                      # (H, 1)
        Z = jnp.dot(Wl, S, preferred_element_type=jnp.float32)   # (H, 3*TB)
        h, d = _act_and_deriv(Z[:, :TB] + bl, activation)
        tx = d * Z[:, TB:2 * TB]
        ty = d * Z[:, 2 * TB:3 * TB]
        S = jnp.concatenate([h, tx, ty], axis=1)

    Wo = wo_ref[...]                                        # (2, H)
    bo = bo_ref[...]                                        # (2, 1)
    Out = jnp.dot(Wo, S, preferred_element_type=jnp.float32)     # (2, 3*TB)

    u = Out[0:1, 2 * TB:3 * TB]                             #  d(psi)/dy
    v = -Out[0:1, TB:2 * TB]                                # -d(psi)/dx
    p = Out[1:2, 0:TB] + bo[1:2, :]                         #  pressure
    out_ref[...] = jnp.concatenate([u, v, p], axis=0)       # (3, TB)


# ----------------------------- wrapper ---------------------------------------


def pinn_forward(
    X,
    params,
    *,
    n_hidden,
    n_neurons,
    activation,
    feature_scaling,
    X_min,
    X_range,
    block_n=2048,
):
    N = X.shape[0]
    H = n_neurons
    Lm1 = n_hidden - 1
    assert Lm1 >= 1, "kernel expects at least one hidden-to-hidden layer"

    # Pad the batch to a multiple of block_n (padded rows are discarded).
    n_pad = block_n * pl.cdiv(N, block_n)
    Xp = X if n_pad == N else jnp.pad(X, ((0, n_pad - N), (0, 0)))
    Xt = Xp.astype(jnp.float32).T                           # (2, n_pad)

    W1 = params["w1"].astype(jnp.float32)                   # (H, 2)
    b1 = params["b1"].astype(jnp.float32)                   # (H, 1)
    if feature_scaling:
        # Fold  Xs = X*s + t  into layer 1:  W1z = W1*s,  b1z = b1 + W1 @ t.
        s = (2.0 / X_range).astype(jnp.float32)                  # (2,)
        t = (-2.0 * X_min / X_range - 1.0).astype(jnp.float32)   # (2,)
        w1z = W1 * s[None, :]
        b1z = b1 + W1 @ t[:, None]
    else:
        w1z, b1z = W1, b1

    kern = functools.partial(
        pinn_kernel, n_hidden=n_hidden, activation=activation
    )

    def full_spec(shape):
        return pl.BlockSpec(shape, lambda i, _nd=len(shape): (0,) * _nd)

    grid = (n_pad // block_n,)
    out_t = pl.pallas_call(
        kern,
        out_shape=jax.ShapeDtypeStruct((3, n_pad), jnp.float32),
        grid_spec=pltpu.PrefetchScalarGridSpec(
            num_scalar_prefetch=0,
            grid=grid,
            in_specs=[
                full_spec((H, 2)),            # W1 (scaling folded)
                full_spec((H, 2)),            # W1 (tangent seeds)
                full_spec((H, 1)),            # b1
                full_spec((Lm1, H, H)),       # hidden weights
                full_spec((Lm1, H, 1)),       # hidden biases
                full_spec((2, H)),            # W_out
                full_spec((2, 1)),            # b_out
                pl.BlockSpec((2, block_n), lambda i: (0, i)),   # X tile
            ],
            out_specs=pl.BlockSpec((3, block_n), lambda i: (0, i)),
        ),
        compiler_params=pltpu.CompilerParams(
            dimension_semantics=("parallel",)
        ),
    )(
        w1z,
        W1,
        b1z,
        params["wh"].astype(jnp.float32),
        params["bh"].astype(jnp.float32),
        params["wo"].astype(jnp.float32),
        params["bo"].astype(jnp.float32),
        Xt,
    )

    return out_t[:, :N].T                                   # (N, 3) = (u, v, p)


# --------------------------- reference (plain JAX) ----------------------------


def ref_forward(X, params, *, n_hidden, activation, feature_scaling, X_min, X_range):
    def act(z):
        if activation == "tanh":
            return jnp.tanh(z)
        if activation == "sigmoid":
            return jax.nn.sigmoid(z)
        return jnp.maximum(z, 0.0)

    Xs = (
        2.0 * (X - X_min[None, :]) / X_range[None, :] - 1.0
        if feature_scaling
        else X
    )

    def net(xs):  # xs: (2,) scaled coordinates
        h = act(params["w1"] @ xs + params["b1"][:, 0])
        for l in range(n_hidden - 1):
            h = act(params["wh"][l] @ h + params["bh"][l, :, 0])
        return params["wo"] @ h + params["bo"][:, 0]        # (psi, p)

    U = jax.vmap(net)(Xs)                                   # (N, 2)
    J = jax.vmap(jax.jacfwd(net))(Xs)                       # (N, 2 out, 2 in)
    u = J[:, 0, 1]                                          #  d(psi)/dy
    v = -J[:, 0, 0]                                         # -d(psi)/dx
    p = U[:, 1]
    return jnp.stack([u, v, p], axis=1)


# ------------------------------- main -----------------------------------------


def init_params(key, n_hidden, n_neurons):
    """Deterministic init mimicking PyTorch Linear's U(-1/sqrt(fan_in), ...).

    Weights are stored in PyTorch (out_dim, in_dim) layout; biases as columns.
    """
    H = n_neurons
    ks = jax.random.split(key, 6)
    k1 = 1.0 / jnp.sqrt(2.0)
    kh = 1.0 / jnp.sqrt(float(H))
    return {
        "w1": jax.random.uniform(ks[0], (H, 2), jnp.float32, -k1, k1),
        "b1": jax.random.uniform(ks[1], (H, 1), jnp.float32, -k1, k1),
        "wh": jax.random.uniform(ks[2], (n_hidden - 1, H, H), jnp.float32, -kh, kh),
        "bh": jax.random.uniform(ks[3], (n_hidden - 1, H, 1), jnp.float32, -kh, kh),
        "wo": jax.random.uniform(ks[4], (2, H), jnp.float32, -kh, kh),
        "bo": jax.random.uniform(ks[5], (2, 1), jnp.float32, -kh, kh),
    }


if __name__ == "__main__":
    # Small config consistent with the module's __init__.
    n_hidden = 3
    n_neurons = 32
    activation = "tanh"
    feature_scaling = True
    L = 1.0
    N = 2500          # non-multiple of block_n -> exercises wrapper padding
    block_n = 2048    # large tile: amortizes per-grid-step cost; grid = 2

    key = jax.random.PRNGKey(0)
    k_param, k_x = jax.random.split(key)
    params = init_params(k_param, n_hidden, n_neurons)

    X = jax.random.uniform(k_x, (N, 2), jnp.float32, -L, L)
    X_min = jnp.array([-L, -L], dtype=jnp.float32)
    X_range = jnp.array([2.0 * L, 2.0 * L], dtype=jnp.float32)

    out = pinn_forward(
        X,
        params,
        n_hidden=n_hidden,
        n_neurons=n_neurons,
        activation=activation,
        feature_scaling=feature_scaling,
        X_min=X_min,
        X_range=X_range,
        block_n=block_n,
    )
    out = jax.block_until_ready(out)

    ref = ref_forward(
        X,
        params,
        n_hidden=n_hidden,
        activation=activation,
        feature_scaling=feature_scaling,
        X_min=X_min,
        X_range=X_range,
    )
    assert out.shape == (N, 3)
    assert jnp.allclose(out, ref, rtol=1e-4, atol=1e-5), "mismatch vs JAX reference"
    print("KERNEL_OK")
</pallas_src>

<mosaic_0001>
module attributes {stable_mosaic.version = 11 : i64} {
  func.func @pinn_kernel(%arg0: i32, %arg1: memref<32x2xf32, #tpu.memory_space<vmem>>, %arg2: memref<32x2xf32, #tpu.memory_space<vmem>>, %arg3: memref<32x1xf32, #tpu.memory_space<vmem>>, %arg4: memref<2x32x32xf32, #tpu.memory_space<vmem>>, %arg5: memref<2x32x1xf32, #tpu.memory_space<vmem>>, %arg6: memref<2x32xf32, #tpu.memory_space<vmem>>, %arg7: memref<2x1xf32, #tpu.memory_space<vmem>>, %arg8: memref<2x2048xf32, #tpu.memory_space<vmem>>, %arg9: memref<3x2048xf32, #tpu.memory_space<vmem>>) attributes {dimension_semantics = [#tpu.dimension_semantics<parallel>], iteration_bounds = array<i64: 2>, scalar_prefetch = 0 : i64, scratch_operands = 0 : i64, tpu.core_type = #tpu.core_type<tc>, window_params = [{pipeline_mode = #tpu.pipeline_mode<synchronous>, transform_indices = @transform_0, window_bounds = array<i64: 32, 2>}, {pipeline_mode = #tpu.pipeline_mode<synchronous>, transform_indices = @transform_1, window_bounds = array<i64: 32, 2>}, {pipeline_mode = #tpu.pipeline_mode<synchronous>, transform_indices = @transform_2, window_bounds = array<i64: 32, 1>}, {pipeline_mode = #tpu.pipeline_mode<synchronous>, transform_indices = @transform_3, window_bounds = array<i64: 2, 32, 32>}, {pipeline_mode = #tpu.pipeline_mode<synchronous>, transform_indices = @transform_4, window_bounds = array<i64: 2, 32, 1>}, {pipeline_mode = #tpu.pipeline_mode<synchronous>, transform_indices = @transform_5, window_bounds = array<i64: 2, 32>}, {pipeline_mode = #tpu.pipeline_mode<synchronous>, transform_indices = @transform_6, window_bounds = array<i64: 2, 1>}, {transform_indices = @transform_7, window_bounds = array<i64: 2, 2048>}, {transform_indices = @transform_8, window_bounds = array<i64: 3, 2048>}]} {
    %c0 = arith.constant 0 : index
    %c0_0 = arith.constant 0 : index
    %0 = vector.load %arg8[%c0, %c0_0] : memref<2x2048xf32, #tpu.memory_space<vmem>>, vector<2x2048xf32>
    %1 = vector.extract_strided_slice %0 {offsets = [0, 0], sizes = [1, 2048], strides = [1, 1]} : vector<2x2048xf32> to vector<1x2048xf32>
    %2 = vector.extract_strided_slice %0 {offsets = [1, 0], sizes = [1, 2048], strides = [1, 1]} : vector<2x2048xf32> to vector<1x2048xf32>
    %c0_1 = arith.constant 0 : index
    %c0_2 = arith.constant 0 : index
    %3 = vector.load %arg1[%c0_1, %c0_2] : memref<32x2xf32, #tpu.memory_space<vmem>>, vector<32x2xf32>
    %c0_3 = arith.constant 0 : index
    %c0_4 = arith.constant 0 : index
    %4 = vector.load %arg2[%c0_3, %c0_4] : memref<32x2xf32, #tpu.memory_space<vmem>>, vector<32x2xf32>
    %c0_5 = arith.constant 0 : index
    %c0_6 = arith.constant 0 : index
    %5 = vector.load %arg3[%c0_5, %c0_6] : memref<32x1xf32, #tpu.memory_space<vmem>>, vector<32x1xf32>
    %6 = vector.extract_strided_slice %3 {offsets = [0, 0], sizes = [32, 1], strides = [1, 1]} : vector<32x2xf32> to vector<32x1xf32>
    %7 = vector.broadcast %6 : vector<32x1xf32> to vector<32x2048xf32>
    %8 = vector.broadcast %1 : vector<1x2048xf32> to vector<32x2048xf32>
    %9 = arith.mulf %7, %8 : vector<32x2048xf32>
    %10 = vector.extract_strided_slice %3 {offsets = [0, 1], sizes = [32, 1], strides = [1, 1]} : vector<32x2xf32> to vector<32x1xf32>
    %11 = vector.broadcast %10 : vector<32x1xf32> to vector<32x2048xf32>
    %12 = vector.broadcast %2 : vector<1x2048xf32> to vector<32x2048xf32>
    %13 = arith.mulf %11, %12 : vector<32x2048xf32>
    %14 = arith.addf %9, %13 : vector<32x2048xf32>
    %15 = vector.broadcast %5 : vector<32x1xf32> to vector<32x2048xf32>
    %16 = arith.addf %14, %15 : vector<32x2048xf32>
    %17 = math.tanh %16 : vector<32x2048xf32>
    %18 = arith.mulf %17, %17 : vector<32x2048xf32>
    %cst = arith.constant 1.000000e+00 : f32
    %19 = vector.broadcast %cst : f32 to vector<32x2048xf32>
    %20 = arith.subf %19, %18 : vector<32x2048xf32>
    %21 = vector.extract_strided_slice %4 {offsets = [0, 0], sizes = [32, 1], strides = [1, 1]} : vector<32x2xf32> to vector<32x1xf32>
    %22 = vector.broadcast %21 : vector<32x1xf32> to vector<32x2048xf32>
    %23 = arith.mulf %20, %22 : vector<32x2048xf32>
    %24 = vector.extract_strided_slice %4 {offsets = [0, 1], sizes = [32, 1], strides = [1, 1]} : vector<32x2xf32> to vector<32x1xf32>
    %25 = vector.broadcast %24 : vector<32x1xf32> to vector<32x2048xf32>
    %26 = arith.mulf %20, %25 : vector<32x2048xf32>
    %27 = tpu.concatenate %17, %23, %26 in 1 : vector<32x2048xf32>, vector<32x2048xf32>, vector<32x2048xf32> -> vector<32x6144xf32>
    %c0_7 = arith.constant 0 : index
    %c0_8 = arith.constant 0 : index
    %c0_9 = arith.constant 0 : index
    %28 = vector.load %arg4[%c0_7, %c0_8, %c0_9] : memref<2x32x32xf32, #tpu.memory_space<vmem>>, vector<1x32x32xf32>
    %29 = vector.shape_cast %28 : vector<1x32x32xf32> to vector<32x32xf32>
    %c0_10 = arith.constant 0 : index
    %c0_11 = arith.constant 0 : index
    %c0_12 = arith.constant 0 : index
    %30 = vector.load %arg5[%c0_10, %c0_11, %c0_12] : memref<2x32x1xf32, #tpu.memory_space<vmem>>, vector<1x32x1xf32>
    %31 = vector.shape_cast %30 : vector<1x32x1xf32> to vector<32x1xf32>
    %cst_13 = arith.constant dense<0.000000e+00> : vector<32x6144xf32>
    %32 = tpu.matmul %29, %27, %cst_13 {dimension_numbers = #tpu.dot_dimension_numbers<[1], [0], [0], [1], [0, 0, 1, 1], [], []>} : vector<32x32xf32>, vector<32x6144xf32>, vector<32x6144xf32> -> vector<32x6144xf32>
    %33 = vector.extract_strided_slice %32 {offsets = [0, 0], sizes = [32, 2048], strides = [1, 1]} : vector<32x6144xf32> to vector<32x2048xf32>
    %34 = vector.broadcast %31 : vector<32x1xf32> to vector<32x2048xf32>
    %35 = arith.addf %33, %34 : vector<32x2048xf32>
    %36 = math.tanh %35 : vector<32x2048xf32>
    %37 = arith.mulf %36, %36 : vector<32x2048xf32>
    %cst_14 = arith.constant 1.000000e+00 : f32
    %38 = vector.broadcast %cst_14 : f32 to vector<32x2048xf32>
    %39 = arith.subf %38, %37 : vector<32x2048xf32>
    %40 = vector.extract_strided_slice %32 {offsets = [0, 2048], sizes = [32, 2048], strides = [1, 1]} : vector<32x6144xf32> to vector<32x2048xf32>
    %41 = arith.mulf %39, %40 : vector<32x2048xf32>
    %42 = vector.extract_strided_slice %32 {offsets = [0, 4096], sizes = [32, 2048], strides = [1, 1]} : vector<32x6144xf32> to vector<32x2048xf32>
    %43 = arith.mulf %39, %42 : vector<32x2048xf32>
    %44 = tpu.concatenate %36, %41, %43 in 1 : vector<32x2048xf32>, vector<32x2048xf32>, vector<32x2048xf32> -> vector<32x6144xf32>
    %c1 = arith.constant 1 : index
    %c0_15 = arith.constant 0 : index
    %c0_16 = arith.constant 0 : index
    %45 = vector.load %arg4[%c1, %c0_15, %c0_16] : memref<2x32x32xf32, #tpu.memory_space<vmem>>, vector<1x32x32xf32>
    %46 = vector.shape_cast %45 : vector<1x32x32xf32> to vector<32x32xf32>
    %c1_17 = arith.constant 1 : index
    %c0_18 = arith.constant 0 : index
    %c0_19 = arith.constant 0 : index
    %47 = vector.load %arg5[%c1_17, %c0_18, %c0_19] : memref<2x32x1xf32, #tpu.memory_space<vmem>>, vector<1x32x1xf32>
    %48 = vector.shape_cast %47 : vector<1x32x1xf32> to vector<32x1xf32>
    %cst_20 = arith.constant dense<0.000000e+00> : vector<32x6144xf32>
    %49 = tpu.matmul %46, %44, %cst_20 {dimension_numbers = #tpu.dot_dimension_numbers<[1], [0], [0], [1], [0, 0, 1, 1], [], []>} : vector<32x32xf32>, vector<32x6144xf32>, vector<32x6144xf32> -> vector<32x6144xf32>
    %50 = vector.extract_strided_slice %49 {offsets = [0, 0], sizes = [32, 2048], strides = [1, 1]} : vector<32x6144xf32> to vector<32x2048xf32>
    %51 = vector.broadcast %48 : vector<32x1xf32> to vector<32x2048xf32>
    %52 = arith.addf %50, %51 : vector<32x2048xf32>
    %53 = math.tanh %52 : vector<32x2048xf32>
    %54 = arith.mulf %53, %53 : vector<32x2048xf32>
    %cst_21 = arith.constant 1.000000e+00 : f32
    %55 = vector.broadcast %cst_21 : f32 to vector<32x2048xf32>
    %56 = arith.subf %55, %54 : vector<32x2048xf32>
    %57 = vector.extract_strided_slice %49 {offsets = [0, 2048], sizes = [32, 2048], strides = [1, 1]} : vector<32x6144xf32> to vector<32x2048xf32>
    %58 = arith.mulf %56, %57 : vector<32x2048xf32>
    %59 = vector.extract_strided_slice %49 {offsets = [0, 4096], sizes = [32, 2048], strides = [1, 1]} : vector<32x6144xf32> to vector<32x2048xf32>
    %60 = arith.mulf %56, %59 : vector<32x2048xf32>
    %61 = tpu.concatenate %53, %58, %60 in 1 : vector<32x2048xf32>, vector<32x2048xf32>, vector<32x2048xf32> -> vector<32x6144xf32>
    %c0_22 = arith.constant 0 : index
    %c0_23 = arith.constant 0 : index
    %62 = vector.load %arg6[%c0_22, %c0_23] : memref<2x32xf32, #tpu.memory_space<vmem>>, vector<2x32xf32>
    %c0_24 = arith.constant 0 : index
    %c0_25 = arith.constant 0 : index
    %63 = vector.load %arg7[%c0_24, %c0_25] : memref<2x1xf32, #tpu.memory_space<vmem>>, vector<2x1xf32>
    %cst_26 = arith.constant dense<0.000000e+00> : vector<2x6144xf32>
    %64 = tpu.matmul %62, %61, %cst_26 {dimension_numbers = #tpu.dot_dimension_numbers<[1], [0], [0], [1], [0, 0, 1, 1], [], []>} : vector<2x32xf32>, vector<32x6144xf32>, vector<2x6144xf32> -> vector<2x6144xf32>
    %65 = vector.extract_strided_slice %64 {offsets = [0, 4096], sizes = [1, 2048], strides = [1, 1]} : vector<2x6144xf32> to vector<1x2048xf32>
    %66 = vector.extract_strided_slice %64 {offsets = [0, 2048], sizes = [1, 2048], strides = [1, 1]} : vector<2x6144xf32> to vector<1x2048xf32>
    %cst_27 = arith.constant 0.000000e+00 : f32
    %67 = vector.broadcast %cst_27 : f32 to vector<1x2048xf32>
    %68 = arith.subf %67, %66 : vector<1x2048xf32>
    %69 = vector.extract_strided_slice %64 {offsets = [1, 0], sizes = [1, 2048], strides = [1, 1]} : vector<2x6144xf32> to vector<1x2048xf32>
    %70 = vector.extract_strided_slice %63 {offsets = [1, 0], sizes = [1, 1], strides = [1, 1]} : vector<2x1xf32> to vector<1x1xf32>
    %71 = vector.broadcast %70 : vector<1x1xf32> to vector<1x2048xf32>
    %72 = arith.addf %69, %71 : vector<1x2048xf32>
    %73 = tpu.concatenate %65, %68, %72 in 0 : vector<1x2048xf32>, vector<1x2048xf32>, vector<1x2048xf32> -> vector<3x2048xf32>
    %c0_28 = arith.constant 0 : index
    %c0_29 = arith.constant 0 : index
    %74 = vector.load %arg9[%c0_28, %c0_29] : memref<3x2048xf32, #tpu.memory_space<vmem>>, vector<3x2048xf32>
    tpu.vector_store %arg9[%c0_28, %c0_29], %73 {strides = array<i32>} : memref<3x2048xf32, #tpu.memory_space<vmem>>, vector<3x2048xf32>,
    return
  }
  func.func @transform_0(%arg0: i32) -> (i32, i32) {
    %c0_i32 = arith.constant 0 : i32
    %c0_i32_0 = arith.constant 0 : i32
    %c0_i32_1 = arith.constant 0 : i32
    return %c0_i32, %c0_i32_0 : i32, i32
  }
  func.func @transform_1(%arg0: i32) -> (i32, i32) {
    %c0_i32 = arith.constant 0 : i32
    %c0_i32_0 = arith.constant 0 : i32
    %c0_i32_1 = arith.constant 0 : i32
    return %c0_i32, %c0_i32_0 : i32, i32
  }
  func.func @transform_2(%arg0: i32) -> (i32, i32) {
    %c0_i32 = arith.constant 0 : i32
    %c0_i32_0 = arith.constant 0 : i32
    %c0_i32_1 = arith.constant 0 : i32
    return %c0_i32, %c0_i32_0 : i32, i32
  }
  func.func @transform_3(%arg0: i32) -> (i32, i32, i32) {
    %c0_i32 = arith.constant 0 : i32
    %c0_i32_0 = arith.constant 0 : i32
    %c0_i32_1 = arith.constant 0 : i32
    %c0_i32_2 = arith.constant 0 : i32
    return %c0_i32, %c0_i32_0, %c0_i32_1 : i32, i32, i32
  }
  func.func @transform_4(%arg0: i32) -> (i32, i32, i32) {
    %c0_i32 = arith.constant 0 : i32
    %c0_i32_0 = arith.constant 0 : i32
    %c0_i32_1 = arith.constant 0 : i32
    %c0_i32_2 = arith.constant 0 : i32
    return %c0_i32, %c0_i32_0, %c0_i32_1 : i32, i32, i32
  }
  func.func @transform_5(%arg0: i32) -> (i32, i32) {
    %c0_i32 = arith.constant 0 : i32
    %c0_i32_0 = arith.constant 0 : i32
    %c0_i32_1 = arith.constant 0 : i32
    return %c0_i32, %c0_i32_0 : i32, i32
  }
  func.func @transform_6(%arg0: i32) -> (i32, i32) {
    %c0_i32 = arith.constant 0 : i32
    %c0_i32_0 = arith.constant 0 : i32
    %c0_i32_1 = arith.constant 0 : i32
    return %c0_i32, %c0_i32_0 : i32, i32
  }
  func.func @transform_7(%arg0: i32) -> (i32, i32) {
    %c0_i32 = arith.constant 0 : i32
    %c0_i32_0 = arith.constant 0 : i32
    return %c0_i32, %arg0 : i32, i32
  }
  func.func @transform_8(%arg0: i32) -> (i32, i32) {
    %c0_i32 = arith.constant 0 : i32
    %c0_i32_0 = arith.constant 0 : i32
    return %c0_i32, %arg0 : i32, i32
  }
}

</mosaic_0001>

<bundles_post_ra>
// kernel: tpu_custom_call.1
= control target key start
LH: loop header
LB: loop body
LE: loop exit
PB: predicated region body
PF: predicated region fallthrough
CT: control target
= control target key end

     0   :  { %13 = vsyncpa [#allocation3], 0  ;;  %s14517_s0 = inlined_call_operand.vmem [shape: f32[32,2], index: 0, kind: input, shape index: {}]   ;;  %s14518_s1 = inlined_call_operand.vmem [shape: f32[32,2], index: 1, kind: input, shape index: {}]   ;;  %s14519_s2 = inlined_call_operand.vmem [shape: f32[32,1], index: 2, kind: input, shape index: {}]   ;;  %s14520_s3 = inlined_call_operand.vmem [shape: f32[2,32,32], index: 3, kind: input, shape index: {}]   ;;  %s14521_s4 = inlined_call_operand.vmem [shape: f32[2,32,1], index: 4, kind: input, shape index: {}]   ;;  %s14522_s5 = inlined_call_operand.vmem [shape: f32[2,32], index: 5, kind: input, shape index: {}]   ;;  %s14523_s6 = inlined_call_operand.vmem [shape: f32[2,1], index: 6, kind: input, shape index: {}]   ;;  %s14524_s7 = inlined_call_operand.vmem [shape: f32[2,4096], index: 7, kind: input, shape index: {}]   ;;  %s14525_s8 = inlined_call_operand.hbm [shape: f32[3,4096], index: 8, kind: output, shape index: {}]  }
   0x1   :  { %15 = vsyncpa [#allocation3 + $0x1], 0  ;;  %s9767_s27 = smov 0   ;;  %s9769_s28 = smov 0  }
   0x2   :  { %s9771_s29 = smov 0   ;;  %s9773_s30 = smov 0  }
   0x3 LB: > { %s9788_s9 = sadd.s32 4294967295, %s9716_s30   ;;  %s8396_s10 = sadd.s32 4294967294, %s9716_s30   ;;  %s9716_s30 = sphi %s9773_s30, %s15444_s30   ;;  %s9712_s29 = sphi %s9771_s29, %s15443_s29   ;;  %s9708_s28 = sphi %s9769_s28, %s15442_s28   ;;  %s9704_s27 = sphi %s9767_s27, %s15441_s27  }
   0x4   : > { %s9792_s11 = sadd.s32 1, %s9716_s30   ;;  %s201_s12 = sadd.s32 1, %s9712_s29 }
   0x5   : > { %s198_s13 = ssub.s32 %s9716_s30, %s9792_s11  ;;  %p211_p0 = scmp.ne.s32.totalorder %s9712_s29, %s9708_s28 }
   0x6   : > { %p199_p1 = scmp.eq.s32.totalorder %s198_s13, 0  ;;  %p212_p2 = scmp.eq.s32.totalorder %s9788_s9, 1 }
   0x7   : > { %p217_p3 = scmp.ne.s32.totalorder %s9708_s28, %s9704_s27  ;;  %p218_p4 = scmp.eq.s32.totalorder %s8396_s10, 1 }
   0x8   : > { %s9803_s14 = scalar_select %p199_p1, %s9712_s29, %s201_s12  }
   0x9   : > { %p9805_p5 = por %p212_p2, %p211_p0  ;;  %p9809_p6 = por %p218_p4, %p217_p3 }
   0xa   : > { %p8399_p7 = scmp.ge.s32.totalorder %s9716_s30, 1  ;;  %p266_p8 = scmp.lt.s32.totalorder %s9716_s30, 3 }
   0xc   : > { %p267_p9 = pnand %p8399_p7, %p266_p8 }
   0xe   : > { %270 = sbr.rel (%p267_p9) target bundleno = 1103 (0x44f), region = 52 }
  0x15   : > { %v313_v0 = vld [vmem:[%s14517_s0 + $0x10] sm:$0xff]  ;;  %v311_v1 = vld [vmem:[%s14517_s0] sm:$0xff]  ;;  %v9718_v2 = vmov 1   ;;  %v312_v3 = vld [vmem:[%s14517_s0 + $0x8] sm:$0xff]  ;;  %v9719_v4 = vmov 0   ;;  %v14526_v14 = vmov 0.0   ;;  %v347_v15 = vlaneseq }
  0x16   : > { %9253 = vset.pattern.permute.xlu0 %v9718_v2  ;;  %9251 = vset.pattern.permute.xlu1 %v9718_v2  ;;  %v314_v5 = vld [vmem:[%s14517_s0 + $0x18] sm:$0xff]  ;;  %v320_v6 = vld [vmem:[%s14519_s2 + $0x8] sm:$0xff]  ;;  %v319_v7 = vld [vmem:[%s14519_s2] sm:$0xff]  ;;  %s8401_s12 = sshll.u32 %s9788_s9, 4  ;;  %vm1291_vm0 = vcmask 261120   ;;  %s297_s22 = sand.u32 1, %s9708_s28  }
  0x17   : > { %564 = vperm.xlu0 %9253, %v313_v0   ;;  %556 = vperm.xlu1 %9251, %v311_v1   ;;  %v315_v8 = vld [vmem:[%s14518_s1] sm:$0xff]  ;;  %v321_v9 = vld [vmem:[%s14519_s2 + $0x10] sm:$0xff]  ;;  %v322_v11 = vld [vmem:[%s14519_s2 + $0x18] sm:$0xff]  ;;  %p301_p10 = scmp.lt.s32.totalorder %s8401_s12, 31  ;;  %v348_v16 = vshrl.u32 %v347_v15, 7  ;;  %vm8248_vm1 = vcmask 1040384  }
  0x18   : > { %v317_v10 = vld [vmem:[%s14518_s1 + $0x10] sm:$0xff]  ;;  %v316_v12 = vld [vmem:[%s14518_s1 + $0x8] sm:$0xff]  ;;  %v318_v13 = vld [vmem:[%s14518_s1 + $0x18] sm:$0xff]  ;;  %1368 = vmatprep.mubr.f32.mxu0 %v14526_v14  ;;  %1457 = vmatprep.mubr.f32.mxu1 %v14526_v14  ;;  %vm8265_vm2 = vcmask 1041408   ;;  %s8400_s23 = sshll.u32 %s297_s22, 6  ;;  %s8632_s25 = sshll.u32 %s9788_s9, 10 }
  0x19   : > { %s15446_s12 = smov (!%p301_p10, %s8401_s12), 31  ;;  %v9859_v17 = vsub.s32 2, %v348_v16  ;;  %v9861_v18 = vsub.s32 3, %v348_v16  ;;  %v9863_v19 = vsub.s32 6, %v348_v16  ;;  %v9865_v20 = vsub.s32 7, %v348_v16  ;;  %s14401_s24 = scalar_lea.vmem [#allocation2], %s8400_s23 }
  0x1a   : > { %s8402_s13 = sshll.u32 %s15446_s12, 1  ;;  %v9868_v22 = vsub.s32 0, %v348_v16  ;;  %v9870_v23 = vsub.s32 1, %v348_v16  ;;  %v9872_v24 = vsub.s32 4, %v348_v16  ;;  %v9874_v25 = vsub.s32 5, %v348_v16  ;;  %s8337_s26 = sshll.u32 %s14401_s24, 4  ;;  %s14474_s26 = int_to_ptr.vmem [resolvable:$true] %s8337_s26 }
  0x1b   : > { %9254 = vset.pattern.permute.xlu0 %v9719_v4  ;;  %560 = vperm.xlu1 %9251, %v312_v3   ;;  %s9857_s19 = scalar_lea.vmem %s14524_s7, %s8402_s13  ;;  %s14472_s13 = scalar_lea.hbm %s14525_s8, %s8632_s25 }
  0x1c   : > { %325 = vperm.xlu0 %9254, %v311_v1   ;;  %v307_v21 = vld [vmem:[%s9857_s19] sm:$0xff]  ;;  %v308_v26 = vld [vmem:[%s9857_s19 + $0x8] sm:$0xff]  ;;  %v309_v51 = vld [vmem:[%s9857_s19 + $0x10] sm:$0xff]  ;;  %s8323_s9 = scalar_lea.sflag [#allocation3], %s297_s22  ;;  %s9654_s17 = scalar_lea.vmem %s14474_s26, 1024 }
  0x1d   : > { %v354_v27 = vrot.slane %v307_v21, %v9859_v17  ;;  %v578_v28 = vrot.slane %v307_v21, %v9861_v18  ;;  %v362_v29 = vrot.slane %v307_v21, %v9863_v19  ;;  %v586_v30 = vrot.slane %v307_v21, %v9865_v20  ;;  %v310_v60 = vld [vmem:[%s9857_s19 + $0x18] sm:$0xff]  ;;  %p9655_p11 = scmp.ne.s32.totalorder %s14474_s26, %s9654_s17  ;;  %s9721_s18 = smov [#allocation2]  }
  0x1e   : > { %v350_v31 = vrot.slane %v307_v21, %v9868_v22  ;;  %v574_v32 = vrot.slane %v307_v21, %v9870_v23  ;;  %v358_v33 = vrot.slane %v307_v21, %v9872_v24  ;;  %v582_v34 = vrot.slane %v307_v21, %v9874_v25  ;;  %s9658_s19 = sshll.u32 %s9721_s18, 4  ;;  %s9659_s19 = int_to_ptr.vmem [resolvable:$false] %s9658_s19 }
  0x1f   : > { %9252 = vset.pattern.permute.xlu1 %v9719_v4  ;;  %v370_v35 = vrot.slane %v308_v26, %v9859_v17  ;;  %v594_v36 = vrot.slane %v308_v26, %v9861_v18  ;;  %v602_v37 = vrot.slane %v308_v26, %v9865_v20  ;;  %v590_v38 = vrot.slane %v308_v26, %v9870_v23  ;;  %p9656_p12 = pnand %p9655_p11, %p9805_p5  ;;  %s9660_s20 = scalar_lea.vmem %s9659_s19, 2048 }
  0x20   : > { %330 = vperm.xlu0 %9254, %v312_v3   ;;  %340 = vperm.xlu1 %9252, %v314_v5   ;;  %v378_v39 = vrot.slane %v308_v26, %v9863_v19  ;;  %v366_v40 = vrot.slane %v308_v26, %v9868_v22  ;;  %v374_v41 = vrot.slane %v308_v26, %v9872_v24  ;;  %p9661_p0 = scmp.lt.s32.totalorder %s14474_s26, %s9659_s19  ;;  %p9662_p1 = scmp.lt.s32.totalorder %s9660_s20, %s9654_s17 }
  0x21   : > { %v598_v42 = vrot.slane %v308_v26, %v9874_v25  ;;  %v9894_v43 = vrot.slane %v354_v27, %v9868_v22  ;;  %v9897_v44 = vrot.slane %v578_v28, %v9870_v23  ;;  %v9900_v45 = vrot.slane %v362_v29, %v9868_v22  ;;  %p9657_p13 = pneg %p9656_p12 }
  0x22   : > { %v9903_v46 = vrot.slane %v586_v30, %v9870_v23  ;;  %v9906_v47 = vrot.slane %v350_v31, %v9868_v22  ;;  %v9909_v48 = vrot.slane %v574_v32, %v9870_v23  ;;  %v9912_v49 = vrot.slane %v358_v33, %v9868_v22  ;;  %p9663_p2 = por %p9662_p1, %p9661_p0 }
  0x23   : > { %v9915_v50 = vrot.slane %v582_v34, %v9870_v23  ;;  %v9919_v52 = vrot.slane %v370_v35, %v9868_v22  ;;  %v9922_v53 = vrot.slane %v594_v36, %v9870_v23  ;;  %v9925_v54 = vrot.slane %v602_v37, %v9870_v23 }
  0x24   : > { %335 = vperm.xlu0 %9254, %v313_v0   ;;  %9255 = vset.pattern.permute.xlu1 %v9718_v2  ;;  %v9928_v55 = vrot.slane %v590_v38, %v9870_v23  ;;  %v9931_v56 = vrot.slane %v378_v39, %v9868_v22  ;;  %v9934_v57 = vrot.slane %v366_v40, %v9868_v22  ;;  %p9664_p3 = pnand %p9663_p2, %p9657_p13 }
  0x25   : > { %568 = vperm.xlu1 %9255, %v314_v5   ;;  %v9937_v58 = vrot.slane %v374_v41, %v9868_v22  ;;  %v9940_v59 = vrot.slane %v598_v42, %v9870_v23  ;;  %v386_v61 = vrot.slane %v309_v51, %v9859_v17  ;;  %v610_v62 = vrot.slane %v309_v51, %v9861_v18 }
  0x26   : > { %v618_v63 = vrot.slane %v309_v51, %v9865_v20  ;;  %v606_v0 = vrot.slane %v309_v51, %v9870_v23  ;;  %v394_v1 = vrot.slane %v309_v51, %v9863_v19  ;;  %v390_v3 = vrot.slane %v309_v51, %v9872_v24 }
  0x27   : > { %v402_v5 = vrot.slane %v310_v60, %v9859_v17  ;;  %v9963_v15 = vrot.slane %v610_v62, %v9870_v23 }
  0x28   : > { %850 = vperm.xlu0 %9254, %v320_v6   ;;  %v626_v6 = vrot.slane %v310_v60, %v9861_v18  ;;  %v9966_v16 = vrot.slane %v618_v63, %v9870_v23  ;;  %v9969_v17 = vrot.slane %v606_v0, %v9870_v23  ;;  %v9972_v18 = vrot.slane %v394_v1, %v9868_v22  ;;  %v1287_v1 = vld [vmem:[%s14521_s4] sm:$0xff] }
  0x29   : > { %9256 = vset.pattern.permute.xlu1 %v9719_v4  ;;  %14844 = vst [vmem:[#allocation6_spill] sm:$0xff] %v9963_v15  ;;  %v8503_v15 = vld [vmem:[%s14521_s4 + $0x20] sm:$0xff] }
  0x2a   : > { %845 = vperm.xlu1 %9256, %v319_v7   ;;  %v634_v7 = vrot.slane %v310_v60, %v9865_v20  ;;  %14845 = vst [vmem:[#allocation7_spill] sm:$0xff] %v9966_v16  ;;  %14846 = vst [vmem:[#allocation8_spill] sm:$0xff] %v9969_v17  ;;  %v9978_v20 = vrot.slane %v390_v3, %v9868_v22 }
  0x2b   : > { %14847 = vst [vmem:[#allocation9_spill] sm:$0xff] %v9972_v18 }
  0x2c   : > { %1121 = vperm.xlu0 %9254, %v315_v8   ;;  %14849 = vst [vmem:[#allocation11_spill] sm:$0xff] %v9978_v20  ;;  %v9990_v26 = vrot.slane %v634_v7, %v9870_v23 }
  0x2e   : > { %855 = vperm.xlu1 %9256, %v321_v9   ;;  %v410_v9 = vrot.slane %v310_v60, %v9863_v19  ;;  %14853 = vst [vmem:[#allocation15_spill] sm:$0xff] %v9990_v26  ;;  %v1288_v26 = vld [vmem:[%s14521_s4 + $0x8] sm:$0xff] }
  0x30   : > { %1131 = vperm.xlu0 %9254, %v317_v10   ;;  %v10000_v30 = vrot.slane %v410_v9, %v9868_v22 }
  0x32   : > { %860 = vperm.xlu1 %9256, %v322_v11   ;;  %v406_v11 = vrot.slane %v310_v60, %v9872_v24  ;;  %v9984_v24 = vrot.slane %v402_v5, %v9868_v22  ;;  %14857 = vst [vmem:[#allocation19_spill] sm:$0xff] %v10000_v30  ;;  %v1289_v30 = vld [vmem:[%s14521_s4 + $0x10] sm:$0xff] }
  0x34   : > { %9257 = vset.pattern.permute.xlu0 %v9718_v2  ;;  %14851 = vst [vmem:[#allocation13_spill] sm:$0xff] %v9984_v24  ;;  %v10006_v32 = vrot.slane %v406_v11, %v9868_v22 }
  0x35   : > { %1204 = vperm.xlu0 %9257, %v315_v8   ;;  %v622_v8 = vrot.slane %v310_v60, %v9870_v23 }
  0x36   : > { %1126 = vperm.xlu1 %9256, %v316_v12   ;;  %14859 = vst [vmem:[#allocation21_spill] sm:$0xff] %v10006_v32 }
  0x37   : > { %v9993_v27 = vrot.slane %v622_v8, %v9870_v23 }
  0x39   : > { %1216 = vperm.xlu0 %9257, %v318_v13   ;;  %14854 = vst [vmem:[#allocation16_spill] sm:$0xff] %v9993_v27 }
  0x3a   : > { %1136 = vperm.xlu1 %9256, %v318_v13   ;;  %v9960_v13 = vrot.slane %v386_v61, %v9868_v22 }
  0x3c   : > { %14843 = vst [vmem:[#allocation5_spill] sm:$0xff] %v9960_v13 }
  0x3d   : > { %9260 = vset.pattern.permute.xlu0 %v9719_v4 }
  0x3e   : > { %9258 = vset.pattern.permute.xlu1 %v9718_v2  ;;  %v382_v2 = vrot.slane %v309_v51, %v9868_v22  ;;  %3447 = vperm.xlu0 %9260, %v1288_v26  }
  0x3f   : > { %1208 = vperm.xlu1 %9258, %v316_v12   ;;  %v630_v12 = vrot.slane %v310_v60, %v9874_v25 }
  0x40   : > { %v9975_v19 = vrot.slane %v382_v2, %v9868_v22 }
  0x41   : > { %v10009_v33 = vrot.slane %v630_v12, %v9870_v23 }
  0x42   : > { %14848 = vst [vmem:[#allocation10_spill] sm:$0xff] %v9975_v19  ;;  %6004 = vperm.xlu0 %9260, %v8503_v15  }
  0x43   : > { %1212 = vperm.xlu1 %9258, %v317_v10   ;;  %v398_v10 = vrot.slane %v310_v60, %v9868_v22  ;;  %14860 = vst [vmem:[#allocation22_spill] sm:$0xff] %v10009_v33 }
  0x45   : > { %v10003_v31 = vrot.slane %v398_v10, %v9868_v22 }
  0x47   : > { %9259 = vset.pattern.permute.xlu1 %v9719_v4  ;;  %v614_v4 = vrot.slane %v309_v51, %v9874_v25  ;;  %v9987_v25 = vrot.slane %v626_v6, %v9870_v23  ;;  %14858 = vst [vmem:[#allocation20_spill] sm:$0xff] %v10003_v31 }
  0x48   : > { %3442 = vperm.xlu1 %9259, %v1287_v1  }
  0x49   : > { %v9981_v21 = vrot.slane %v614_v4, %v9870_v23  ;;  %14852 = vst [vmem:[#allocation14_spill] sm:$0xff] %v9987_v25 }
  0x4b   : > { %14850 = vst [vmem:[#allocation12_spill] sm:$0xff] %v9981_v21 }
  0x4c   : > { %3452 = vperm.xlu1 %9259, %v1289_v30  }
  0x96   : > { %v9995_v28 = vpop.permute.xlu1 %556  ;;  %v9997_v29 = vpop.permute.xlu0 %564 }
  0x97   : > { %14855 = vst [vmem:[#allocation17_spill] sm:$0xff] %v9995_v28  ;;  %14856 = vst [vmem:[#allocation18_spill] sm:$0xff] %v9997_v29  ;;  %v716_v34 = vmul.f32 %v9897_v44, %v9995_v28  ;;  %v718_v35 = vmul.f32 %v9903_v46, %v9995_v28  ;;  %v715_v36 = vmul.f32 %v9909_v48, %v9995_v28 }
  0x98   : > { %v717_v37 = vmul.f32 %v9915_v50, %v9995_v28  ;;  %v10021_v38 = vmul.f32 %v9897_v44, %v9997_v29  ;;  %v10025_v22 = vmul.f32 %v9903_v46, %v9997_v29  ;;  %v10029_v23 = vmul.f32 %v9909_v48, %v9997_v29 }
  0x99   : > { %v10033_v39 = vmul.f32 %v9915_v50, %v9997_v29  ;;  %v720_v40 = vmul.f32 %v9922_v53, %v9995_v28  ;;  %v722_v41 = vmul.f32 %v9925_v54, %v9995_v28  ;;  %v719_v42 = vmul.f32 %v9928_v55, %v9995_v28 }
  0x9a   : > { %v10043_v51 = vmul.f32 %v9940_v59, %v9995_v28  ;;  %v10045_v60 = vpop.permute.xlu1 %560  ;;  %v10049_v61 = vmul.f32 %v9922_v53, %v9997_v29  ;;  %v10053_v62 = vmul.f32 %v9925_v54, %v9997_v29  ;;  %v10057_v63 = vmul.f32 %v9928_v55, %v9997_v29 }
  0x9b   : > { %v10061_v0 = vmul.f32 %v9940_v59, %v9997_v29  ;;  %v10066_v2 = vpop.permute.xlu0 %325  ;;  %v732_v3 = vmul.f32 %v9897_v44, %v10045_v60  ;;  %v734_v4 = vmul.f32 %v9903_v46, %v10045_v60  ;;  %v731_v5 = vmul.f32 %v9909_v48, %v10045_v60 }
  0x9c   : > { %v733_v6 = vmul.f32 %v9915_v50, %v10045_v60  ;;  %v492_v7 = vmul.f32 %v9894_v43, %v10066_v2  ;;  %v494_v8 = vmul.f32 %v9900_v45, %v10066_v2  ;;  %v491_v9 = vmul.f32 %v9906_v47, %v10066_v2 }
  0x9d   : > { %v493_v10 = vmul.f32 %v9912_v49, %v10066_v2  ;;  %v496_v11 = vmul.f32 %v9919_v52, %v10066_v2  ;;  %v10088_v12 = vmul.f32 %v9922_v53, %v10045_v60  ;;  %v498_v1 = vmul.f32 %v9931_v56, %v10066_v2 }
  0x9e   : > { %v10094_v14 = vmul.f32 %v9925_v54, %v10045_v60  ;;  %v10096_v33 = vadd.f32 %v716_v34, %v492_v7  ;;  %v10098_v32 = vadd.f32 %v718_v35, %v494_v8  ;;  %v10100_v27 = vadd.f32 %v715_v36, %v491_v9 }
  0x9f   : > { %v10102_v31 = vadd.f32 %v717_v37, %v493_v10  ;;  %v10110_v25 = vpop.permute.xlu0 %330  ;;  %v10112_v24 = vpop.permute.xlu1 %340  ;;  %v10114_v34 = vadd.f32 %v720_v40, %v496_v11  ;;  %v10116_v35 = vadd.f32 %v722_v41, %v498_v1  ;;  %v495_v36 = vmul.f32 %v9934_v57, %v10066_v2 }
  0xa0   : > { %v735_v37 = vmul.f32 %v9928_v55, %v10045_v60  ;;  %v508_v7 = vmul.f32 %v9894_v43, %v10110_v25  ;;  %v510_v8 = vmul.f32 %v9900_v45, %v10110_v25  ;;  %v507_v9 = vmul.f32 %v9906_v47, %v10110_v25 }
  0xa1   : > { %v509_v40 = vmul.f32 %v9912_v49, %v10110_v25  ;;  %v540_v41 = vmul.f32 %v9894_v43, %v10112_v24  ;;  %v542_v10 = vmul.f32 %v9900_v45, %v10112_v24  ;;  %v539_v26 = vmul.f32 %v9906_v47, %v10112_v24 }
  0xa2   : > { %v541_v11 = vmul.f32 %v9912_v49, %v10112_v24  ;;  %v796_v1 = vadd.f32 %v732_v3, %v508_v7  ;;  %v798_v29 = vadd.f32 %v734_v4, %v510_v8  ;;  %v795_v21 = vadd.f32 %v731_v5, %v507_v9  ;;  %v1290_v3 = vld [vmem:[%s14521_s4 + $0x18] sm:$0xff] }
  0xa3   : > { %v797_v20 = vadd.f32 %v733_v6, %v509_v40  ;;  %v10138_v17 = vpop.permute.xlu0 %335  ;;  %v512_v30 = vmul.f32 %v9919_v52, %v10110_v25  ;;  %v514_v19 = vmul.f32 %v9931_v56, %v10110_v25  ;;  %v511_v16 = vmul.f32 %v9934_v57, %v10110_v25  ;;  %3457 = vperm.xlu1 %9259, %v1290_v3  }
  0xa4   : > { %v783_v18 = vadd.f32 %v719_v42, %v495_v36  ;;  %v10152_v4 = vpop.permute.xlu1 %568  ;;  %v524_v5 = vmul.f32 %v9894_v43, %v10138_v17  ;;  %v526_v6 = vmul.f32 %v9900_v45, %v10138_v17  ;;  %v523_v7 = vmul.f32 %v9906_v47, %v10138_v17 }
  0xa5   : > { %v525_v42 = vmul.f32 %v9912_v49, %v10138_v17  ;;  %v764_v36 = vmul.f32 %v9897_v44, %v10152_v4  ;;  %v766_v8 = vmul.f32 %v9903_v46, %v10152_v4  ;;  %v763_v9 = vmul.f32 %v9909_v48, %v10152_v4  ;;  %v8505_v48 = vld [vmem:[%s14521_s4 + $0x30] sm:$0xff] }
  0xa6   : > { %v765_v43 = vmul.f32 %v9915_v50, %v10152_v4  ;;  %v812_v45 = vadd.f32 %v10021_v38, %v524_v5  ;;  %v814_v47 = vadd.f32 %v10025_v22, %v526_v6  ;;  %v811_v49 = vadd.f32 %v10029_v23, %v523_v7  ;;  %v8504_v50 = vld [vmem:[%s14521_s4 + $0x28] sm:$0xff]  ;;  %6014 = vperm.xlu0 %9260, %v8505_v48  }
  0xa7   : > { %v813_v15 = vadd.f32 %v10033_v39, %v525_v42  ;;  %v10174_v40 = vpop.permute.xlu0 %850  ;;  %v828_v44 = vadd.f32 %v764_v36, %v540_v41  ;;  %v830_v28 = vadd.f32 %v766_v8, %v542_v10  ;;  %v827_v46 = vadd.f32 %v763_v9, %v539_v26  ;;  %6009 = vperm.xlu1 %9259, %v8504_v50  }
  0xa8   : > { %v829_v13 = vadd.f32 %v765_v43, %v541_v11  ;;  %v880_v38 = vadd.f32 %v10174_v40, %v796_v1  ;;  %v882_v22 = vadd.f32 %v10174_v40, %v798_v29  ;;  %v879_v23 = vadd.f32 %v10174_v40, %v795_v21  ;;  %v6407_v29 = vld [vmem:[%s14523_s6] sm:$0x3] }
  0xa9   : > { %v881_v39 = vadd.f32 %v10174_v40, %v797_v20  ;;  %v10186_v41 = vpop.permute.xlu1 %845  ;;  %v800_v10 = vadd.f32 %v10088_v12, %v512_v30  ;;  %v802_v26 = vadd.f32 %v10094_v14, %v514_v19  ;;  %v799_v11 = vadd.f32 %v735_v37, %v511_v16  ;;  %v8506_v14 = vld [vmem:[%s14521_s4 + $0x38] sm:$0xff] }
  0xaa   : > { %v497_v3 = vmul.f32 %v9937_v58, %v10066_v2  ;;  %v864_v1 = vadd.f32 %v10186_v41, %v10096_v33  ;;  %9261 = vtanh.f32 %v880_v38  ;;  %v866_v21 = vadd.f32 %v10186_v41, %v10098_v32  ;;  %8133 = vperm.xlu0 %9260, %v6407_v29  }
  0xab   : > { %v863_v20 = vadd.f32 %v10186_v41, %v10100_v27  ;;  %9263 = vtanh.f32 %v882_v22  ;;  %v865_v16 = vadd.f32 %v10186_v41, %v10102_v31  ;;  %v10208_v19 = vadd.f32 %v10186_v41, %v10114_v34  ;;  %6019 = vperm.xlu1 %9259, %v8506_v14  }
  0xac   : > { %v10211_v32 = vadd.f32 %v10174_v40, %v800_v10  ;;  %9265 = vtanh.f32 %v864_v1  ;;  %v10215_v27 = vadd.f32 %v10186_v41, %v10116_v35  ;;  %v10218_v33 = vadd.f32 %v10174_v40, %v802_v26 }
  0xad   : > { %v10221_v12 = vadd.f32 %v10186_v41, %v783_v18  ;;  %v10223_v31 = vpop.permute.xlu1 %855  ;;  %9267 = vtanh.f32 %v866_v21  ;;  %v10226_v34 = vadd.f32 %v10174_v40, %v799_v11  ;;  %v513_v37 = vmul.f32 %v9937_v58, %v10110_v25 }
  0xae   : > { %v737_v35 = vmul.f32 %v9940_v59, %v10045_v60  ;;  %9269 = vtanh.f32 %v863_v20  ;;  %v896_v30 = vadd.f32 %v10223_v31, %v812_v45  ;;  %v898_v18 = vadd.f32 %v10223_v31, %v814_v47 }
  0xaf   : > { %v895_v5 = vadd.f32 %v10223_v31, %v811_v49  ;;  %9271 = vtanh.f32 %v879_v23  ;;  %v897_v6 = vadd.f32 %v10223_v31, %v813_v15  ;;  %v785_v7 = vadd.f32 %v10043_v51, %v497_v3 }
  0xb0   : > { %v801_v42 = vadd.f32 %v737_v35, %v513_v37  ;;  %9273 = vtanh.f32 %v865_v16  ;;  %v528_v36 = vmul.f32 %v9919_v52, %v10138_v17  ;;  %v544_v8 = vmul.f32 %v9919_v52, %v10112_v24 }
  0xb1   : > { %v768_v9 = vmul.f32 %v9922_v53, %v10152_v4  ;;  %v10243_v43 = vpop.permute.xlu1 %860  ;;  %9275 = vtanh.f32 %v881_v39  ;;  %v10246_v45 = vadd.f32 %v10186_v41, %v785_v7  ;;  %v530_v51 = vmul.f32 %v9931_v56, %v10138_v17 }
  0xb2   : > { %v10249_v47 = vadd.f32 %v10174_v40, %v801_v42  ;;  %v912_v49 = vadd.f32 %v10243_v43, %v828_v44  ;;  %9277 = vtanh.f32 %v896_v30  ;;  %v914_v52 = vadd.f32 %v10243_v43, %v830_v28 }
  0xb3   : > { %v911_v15 = vadd.f32 %v10243_v43, %v827_v46  ;;  %9279 = vtanh.f32 %v898_v18  ;;  %v913_v53 = vadd.f32 %v10243_v43, %v829_v13  ;;  %v816_v48 = vadd.f32 %v10049_v61, %v528_v36  ;;  %v14862_v36 = vld [vmem:[#allocation17_spill] sm:$0xff] }
  0xb4   : > { %v832_v50 = vadd.f32 %v768_v9, %v544_v8  ;;  %v10258_v38 = vpop.eup %9261  ;;  %9281 = vtanh.f32 %v912_v49  ;;  %v546_v22 = vmul.f32 %v9931_v56, %v10112_v24  ;;  %v770_v44 = vmul.f32 %v9925_v54, %v10152_v4  ;;  %v14863_v8 = vld [vmem:[#allocation6_spill] sm:$0xff]  ;;  %v14864_v49 = vld [vmem:[#allocation9_spill] sm:$0xff] }
  0xb5   : > { %v818_v23 = vadd.f32 %v10053_v62, %v530_v51  ;;  %v10265_v28 = vpop.eup %9263  ;;  %9283 = vtanh.f32 %v914_v52  ;;  %v10268_v46 = vadd.f32 %v10223_v31, %v816_v48  ;;  %v527_v61 = vmul.f32 %v9934_v57, %v10138_v17 }
  0xb6   : > { %v10271_v13 = vadd.f32 %v10243_v43, %v832_v50  ;;  %v10275_v39 = vpop.eup %9265  ;;  %9285 = vtanh.f32 %v895_v5  ;;  %v834_v56 = vadd.f32 %v770_v44, %v546_v22  ;;  %v543_v62 = vmul.f32 %v9934_v57, %v10112_v24 }
  0xb7   : > { %v10278_v54 = vadd.f32 %v10223_v31, %v818_v23  ;;  %v10282_v10 = vpop.eup %9267  ;;  %v8633_v26 = vpack.c.bf16 %v10258_v38, %v10275_v39  ;;  %9287 = vtanh.f32 %v911_v15  ;;  %v767_v11 = vmul.f32 %v9928_v55, %v10152_v4 }
  0xb8   : > { %v815_v3 = vadd.f32 %v10057_v63, %v527_v61  ;;  %v10289_v1 = vpop.eup %9269  ;;  %v8641_v21 = vpack.c.bf16 %v10265_v28, %v10282_v10  ;;  %9289 = vtanh.f32 %v897_v6  ;;  %v10294_v20 = vadd.f32 %v10243_v43, %v834_v56 }
  0xb9   : > { %v529_v57 = vmul.f32 %v9937_v58, %v10138_v17  ;;  %v10298_v29 = vpop.eup %9271  ;;  %8634 = vmatprep.subr.bf16.mxu0 %v8633_v26  ;;  %9291 = vtanh.f32 %v913_v53  ;;  %v831_v14 = vadd.f32 %v767_v11, %v543_v62  ;;  %v545_v63 = vmul.f32 %v9937_v58, %v10112_v24  ;;  %v14861_v58 = vld [vmem:[#allocation5_spill] sm:$0xff]  ;;  %v14865_v53 = vld [vmem:[#allocation7_spill] sm:$0xff] }
  0xba   : > { %v10301_v55 = vadd.f32 %v10223_v31, %v815_v3  ;;  %v10305_v16 = vpop.eup %9273  ;;  %8642 = vmatprep.subr.bf16.mxu1 %v8641_v21  ;;  %v8635_v37 = vpack.c.bf16 %v10298_v29, %v10289_v1  ;;  %9293 = vtanh.f32 %v10208_v19  ;;  %v769_v35 = vmul.f32 %v9940_v59, %v10152_v4  ;;  %v14866_v3 = vld [vmem:[#allocation10_spill] sm:$0xff] }
  0xbb   : > { %v817_v30 = vadd.f32 %v10061_v0, %v529_v57  ;;  %v10313_v18 = vpop.eup %9275  ;;  %9295 = vtanh.f32 %v10211_v32  ;;  %v10317_v5 = vadd.f32 %v10243_v43, %v831_v14  ;;  %v500_v6 = vmul.f32 %v14861_v58, %v10066_v2 }
  0xbc   : > { %v516_v7 = vmul.f32 %v14861_v58, %v10110_v25  ;;  %v10323_v42 = vpop.eup %9277  ;;  %8636 = vmatpush1.bf16.msra.mxu0 %v8635_v37  ;;  %v8643_v59 = vpack.c.bf16 %v10313_v18, %v10305_v16  ;;  %9297 = vtanh.f32 %v10215_v27  ;;  %v833_v0 = vadd.f32 %v769_v35, %v545_v63  ;;  %v14867_v35 = vld [vmem:[#allocation8_spill] sm:$0xff] }
  0xbd   : > { %v10329_v19 = vadd.f32 %v10223_v31, %v817_v30  ;;  %v10331_v32 = vpop.eup %9279  ;;  %9299 = vtanh.f32 %v10218_v33  ;;  %v724_v9 = vmul.f32 %v14863_v8, %v14862_v36  ;;  %v740_v51 = vmul.f32 %v14863_v8, %v10045_v60 }
  0xbe   : > { %v502_v52 = vmul.f32 %v14864_v49, %v10066_v2  ;;  %v10340_v15 = vpop.eup %9281  ;;  %8644 = vmatpush1.bf16.msra.mxu1 %v8643_v59  ;;  %9301 = vtanh.f32 %v10221_v12  ;;  %v10344_v27 = vadd.f32 %v10243_v43, %v833_v0  ;;  %v518_v33 = vmul.f32 %v14864_v49, %v10110_v25  ;;  %v10391_v59 = vld [vmem:[%s14520_s3] sm:$0xff]  ;;  %v14868_v0 = vld [vmem:[#allocation11_spill] sm:$0xff] }
  0xbf   : > { %v726_v48 = vmul.f32 %v14865_v53, %v14862_v36  ;;  %v10350_v50 = vpop.eup %9283  ;;  %v8637_v22 = vpack.c.bf16 %v10340_v15, %v10323_v42  ;;  %9303 = vtanh.f32 %v10226_v34  ;;  %v788_v44 = vadd.f32 %v724_v9, %v500_v6 }
  0xc0   : > { %v804_v23 = vadd.f32 %v740_v51, %v516_v7  ;;  %v10355_v61 = vpop.eup %9285  ;;  %v8645_v12 = vpack.c.bf16 %v10350_v50, %v10331_v32  ;;  %9305 = vtanh.f32 %v10246_v45  ;;  %v742_v56 = vmul.f32 %v14865_v53, %v10045_v60 }
  0xc1   : > { %v790_v62 = vadd.f32 %v726_v48, %v502_v52  ;;  %v10362_v26 = vpop.eup %9287  ;;  %8638 = vmatprep.subr.bf16.mxu0 %v8637_v22  ;;  %9307 = vtanh.f32 %v10249_v47  ;;  %v872_v34 = vadd.f32 %v10186_v41, %v788_v44  ;;  %v499_v21 = vmul.f32 %v14866_v3, %v10066_v2  ;;  %v14869_v44 = vld [vmem:[#allocation12_spill] sm:$0xff] }
  0xc2   : > { %v888_v11 = vadd.f32 %v10174_v40, %v804_v23  ;;  %v10369_v57 = vpop.eup %9289  ;;  %8646 = vmatprep.subr.bf16.mxu1 %v8645_v12  ;;  %v8639_v45 = vpack.c.bf16 %v10362_v26, %v10355_v61  ;;  %9309 = vtanh.f32 %v10268_v46  ;;  %v806_v14 = vadd.f32 %v742_v56, %v518_v33 }
  0xc3   : > { %v874_v63 = vadd.f32 %v10186_v41, %v790_v62  ;;  %v10375_v37 = vpop.eup %9291  ;;  %9311 = vtanh.f32 %v10271_v13  ;;  %v515_v47 = vmul.f32 %v14866_v3, %v10110_v25  ;;  %v723_v30 = vmul.f32 %v14867_v35, %v14862_v36 }
  0xc4   : > { %v739_v6 = vmul.f32 %v14867_v35, %v10045_v60  ;;  %v10384_v7 = vpop.eup %9293  ;;  %8640 = vmatpush1.bf16.msra.mxu0 %v8639_v45  ;;  %v8647_v46 = vpack.c.bf16 %v10375_v37, %v10369_v57  ;;  %9313 = vtanh.f32 %v10278_v54  ;;  %v890_v13 = vadd.f32 %v10174_v40, %v806_v14 }
  0xc5   : > { %v501_v9 = vmul.f32 %v14868_v0, %v10066_v2  ;;  %v10397_v51 = vpop.eup %9295  ;;  %9315 = vtanh.f32 %v10294_v20  ;;  %v787_v52 = vadd.f32 %v723_v30, %v499_v21  ;;  %v517_v48 = vmul.f32 %v14868_v0, %v10110_v25 }
  0xc6   : > { %v803_v33 = vadd.f32 %v739_v6, %v515_v47  ;;  %v10402_v22 = vpop.eup %9297  ;;  %8648 = vmatpush1.bf16.msra.mxu1 %v8647_v46  ;;  %v8649_v54 = vpack.c.bf16 %v10397_v51, %v10384_v7  ;;  %9317 = vtanh.f32 %v10301_v55  ;;  %v725_v23 = vmul.f32 %v14869_v44, %v14862_v36  ;;  %v10428_v47 = vld [vmem:[%s14520_s3 + $0x8] sm:$0xff] }
  0xc7   : > { %v741_v12 = vmul.f32 %v14869_v44, %v10045_v60  ;;  %v10411_v20 = vpop.eup %9299  ;;  %8403 = vmatmul.mubr.msk.f32.vlgmr.msra.gmra.mrb[0].mxu0 %vm1291_vm0, %v10391_v59  ;;  %9319 = vtanh.f32 %v10317_v5  ;;  %v871_v56 = vadd.f32 %v10186_v41, %v787_v52  ;;  %v532_v55 = vmul.f32 %v14861_v58, %v10138_v17  ;;  %v14872_v52 = vld [vmem:[#allocation18_spill] sm:$0xff] }
  0xc8   : > { %14870 = vst [vmem:[#allocation5_spill] sm:$0xff] %v10411_v20  ;;  %v887_v62 = vadd.f32 %v10174_v40, %v803_v33  ;;  %v10420_v21 = vpop.eup %9301  ;;  %8650 = vmatprep.subr.bf16.mxu0 %v8649_v54  ;;  %v8657_v45 = vpack.c.bf16 %v10411_v20, %v10402_v22  ;;  %v14871_v14 = vmov 0.0   ;;  %9321 = vtanh.f32 %v10329_v19 }
  0xc9   : > { %1374 = vmatprep.mubr.f32.mxu0 %v14871_v14  ;;  %v789_v5 = vadd.f32 %v725_v23, %v501_v9  ;;  %v805_v30 = vadd.f32 %v741_v12, %v517_v48  ;;  %v10431_v6 = vpop.eup %9303  ;;  %8407 = vmatmul.mubr.msk.f32.vlgmr.msra.gmra.mrb[0].mxu1 %vm1291_vm0, %v10391_v59  ;;  %9323 = vtanh.f32 %v10344_v27  ;;  %v548_v46 = vmul.f32 %v14861_v58, %v10112_v24 }
  0xca   : > { %v756_v33 = vmul.f32 %v14863_v8, %v14872_v52  ;;  %v772_v54 = vmul.f32 %v14863_v8, %v10152_v4  ;;  %v10442_v20 = vpop.eup %9305  ;;  %8658 = vmatprep.subr.bf16.mxu1 %v8657_v45  ;;  %v8651_v19 = vpack.c.bf16 %v10431_v6, %v10420_v21  ;;  %1463 = vmatprep.mubr.f32.mxu1 %v14871_v14  ;;  %9325 = vtanh.f32 %v872_v34  ;;  %v10463_v45 = vld [vmem:[%s14520_s3 + $0x10] sm:$0xff] }
  0xcb   : > { %v873_v27 = vadd.f32 %v10186_v41, %v789_v5  ;;  %v889_v9 = vadd.f32 %v10174_v40, %v805_v30  ;;  %v10449_v58 = vpop.eup %9307  ;;  %8404 = vmatmul.mubr.msk.f32.gmra.mrb[2].mxu0 %vm1291_vm0, %v10428_v47  ;;  %9327 = vtanh.f32 %v888_v11  ;;  %v534_v23 = vmul.f32 %v14864_v49, %v10138_v17 }
  0xcc   : > { %14873 = vst [vmem:[#allocation17_spill] sm:$0xff] %v10449_v58  ;;  %v820_v8 = vadd.f32 %v756_v33, %v532_v55  ;;  %v836_v48 = vadd.f32 %v772_v54, %v548_v46  ;;  %v10455_v12 = vpop.eup %9309  ;;  %8652 = vmatpush1.bf16.msra.mxu0 %v8651_v19  ;;  %v8659_v34 = vpack.c.bf16 %v10449_v58, %v10442_v20  ;;  %9329 = vtanh.f32 %v874_v63 }
  0xcd   : > { %14874 = vst [vmem:[#allocation6_spill] sm:$0xff] %v10455_v12  ;;  %1380 = vmatprep.mubr.f32.mxu0 %v14871_v14  ;;  %v550_v11 = vmul.f32 %v14864_v49, %v10112_v24  ;;  %v758_v55 = vmul.f32 %v14865_v53, %v14872_v52  ;;  %v10469_v5 = vpop.eup %9311  ;;  %8408 = vmatmul.mubr.msk.f32.gmra.mrb[2].mxu1 %vm1291_vm0, %v10428_v47  ;;  %9331 = vtanh.f32 %v890_v13 }
  0xce   : > { %14875 = vst [vmem:[#allocation9_spill] sm:$0xff] %v10469_v5  ;;  %v904_v63 = vadd.f32 %v10223_v31, %v820_v8  ;;  %v920_v30 = vadd.f32 %v10243_v43, %v836_v48  ;;  %v774_v46 = vmul.f32 %v14865_v53, %v10152_v4  ;;  %v10477_v33 = vpop.eup %9313  ;;  %8660 = vmatpush1.bf16.msra.mxu1 %v8659_v34  ;;  %9333 = vtanh.f32 %v871_v56 }
  0xcf   : > { %14876 = vst [vmem:[#allocation7_spill] sm:$0xff] %v10477_v33  ;;  %v8653_v49 = vpack.c.bf16 %v10469_v5, %v10455_v12  ;;  %1469 = vmatprep.mubr.f32.mxu1 %v14871_v14  ;;  %v822_v54 = vadd.f32 %v758_v55, %v534_v23  ;;  %v531_v13 = vmul.f32 %v14866_v3, %v10138_v17  ;;  %v10484_v19 = vpop.eup %9315  ;;  %9335 = vtanh.f32 %v887_v62  ;;  %v10500_v23 = vld [vmem:[%s14520_s3 + $0x18] sm:$0xff] }
  0xd0   : > { %14877 = vst [vmem:[#allocation10_spill] sm:$0xff] %v10484_v19  ;;  %8405 = vmatmul.mubr.msk.f32.gmra.mrb[4].mxu0 %vm1291_vm0, %v10463_v45  ;;  %v838_v53 = vadd.f32 %v774_v46, %v550_v11  ;;  %v547_v8 = vmul.f32 %v14866_v3, %v10112_v24  ;;  %v755_v48 = vmul.f32 %v14867_v35, %v14872_v52  ;;  %v10492_v34 = vpop.eup %9317  ;;  %9337 = vtanh.f32 %v873_v27 }
  0xd1   : > { %14878 = vst [vmem:[#allocation8_spill] sm:$0xff] %v10492_v34  ;;  %8654 = vmatprep.subr.bf16.mxu0 %v8653_v49  ;;  %v8661_v56 = vpack.c.bf16 %v10484_v19, %v10477_v33  ;;  %1386 = vmatprep.mubr.f32.mxu0 %v14871_v14  ;;  %v906_v62 = vadd.f32 %v10223_v31, %v822_v54  ;;  %v10505_v11 = vpop.eup %9319  ;;  %9339 = vtanh.f32 %v889_v9  ;;  %v14894_v33 = vld [vmem:[#allocation20_spill] sm:$0xff] }
  0xd2   : > { %v771_v3 = vmul.f32 %v14867_v35, %v10152_v4  ;;  %14879 = vst [vmem:[#allocation11_spill] sm:$0xff] %v10505_v11  ;;  %8409 = vmatmul.mubr.msk.f32.gmra.mrb[4].mxu1 %vm1291_vm0, %v10463_v45  ;;  %v922_v55 = vadd.f32 %v10243_v43, %v838_v53  ;;  %v819_v46 = vadd.f32 %v755_v48, %v531_v13  ;;  %v10512_v19 = vpop.eup %9321  ;;  %9341 = vtanh.f32 %v904_v63 }
  0xd3   : > { %v533_v49 = vmul.f32 %v14868_v0, %v10138_v17  ;;  %14880 = vst [vmem:[#allocation12_spill] sm:$0xff] %v10512_v19  ;;  %8662 = vmatprep.subr.bf16.mxu1 %v8661_v56  ;;  %v8655_v27 = vpack.c.bf16 %v10505_v11, %v10492_v34  ;;  %1475 = vmatprep.mubr.f32.mxu1 %v14871_v14  ;;  %v10519_v9 = vpop.eup %9323  ;;  %9343 = vtanh.f32 %v920_v30  ;;  %v14883_v30 = vld [vmem:[#allocation13_spill] sm:$0xff] }
  0xd4   : > { %v835_v35 = vadd.f32 %v771_v3, %v547_v8  ;;  %v549_v54 = vmul.f32 %v14868_v0, %v10112_v24  ;;  %14881 = vst [vmem:[#allocation18_spill] sm:$0xff] %v10519_v9  ;;  %8406 = vmatmul.mubr.msk.f32.gmra.mrb[6].mxu0 %vm1291_vm0, %v10500_v23  ;;  %v903_v13 = vadd.f32 %v10223_v31, %v819_v46  ;;  %v10528_v56 = vpop.eup %9325  ;;  %9345 = vtanh.f32 %v906_v62 }
  0xd5   : > { %v757_v53 = vmul.f32 %v14869_v44, %v14872_v52  ;;  %v773_v48 = vmul.f32 %v14869_v44, %v10152_v4  ;;  %14882 = vst [vmem:[#allocation23_spill] sm:$0xff] %v10528_v56  ;;  %8656 = vmatpush1.bf16.msra.mxu0 %v8655_v27  ;;  %v8663_v0 = vpack.c.bf16 %v10519_v9, %v10512_v19  ;;  %v10536_v3 = vpop.eup %9327  ;;  %9347 = vtanh.f32 %v922_v55 }
  0xd6   : > { %1546 = vmatprep.mubr.f32.mxu0 %v14871_v14  ;;  %v919_v63 = vadd.f32 %v10243_v43, %v835_v35  ;;  %v504_v8 = vmul.f32 %v14883_v30, %v10066_v2  ;;  %14884 = vst [vmem:[#allocation13_spill] sm:$0xff] %v10536_v3  ;;  %8410 = vmatmul.mubr.msk.f32.gmra.mrb[6].mxu1 %vm1291_vm0, %v10500_v23  ;;  %v10542_v9 = vpop.eup %9329  ;;  %9349 = vtanh.f32 %v903_v13  ;;  %v14886_v35 = vld [vmem:[#allocation14_spill] sm:$0xff] }
  0xd7   : > { %v821_v44 = vadd.f32 %v757_v53, %v533_v49  ;;  %v837_v46 = vadd.f32 %v773_v48, %v549_v54  ;;  %v520_v27 = vmul.f32 %v14883_v30, %v10110_v25  ;;  %14885 = vst [vmem:[#allocation24_spill] sm:$0xff] %v10542_v9  ;;  %8664 = vmatpush1.bf16.msra.mxu1 %v8663_v0  ;;  %v10551_v49 = vpop.eup %9331  ;;  %v14888_v48 = vld [vmem:[#allocation19_spill] sm:$0xff] }
  0xd8   : > { %v8665_v62 = vpack.c.bf16 %v10536_v3, %v10528_v56  ;;  %1635 = vmatprep.mubr.f32.mxu1 %v14871_v14  ;;  %v728_v19 = vmul.f32 %v14886_v35, %v14862_v36  ;;  %v744_v55 = vmul.f32 %v14886_v35, %v10045_v60  ;;  %14887 = vst [vmem:[#allocation14_spill] sm:$0xff] %v10551_v49  ;;  %9351 = vtanh.f32 %v919_v63  ;;  %v10559_v13 = vpop.eup %9333 }
  0xd9   : > { %8411 = vmatmul.mubr.msk.f32.vlgmr.msra.gmra.mrb[8].mxu0 %vm1291_vm0, %v10391_v59  ;;  %v905_v54 = vadd.f32 %v10223_v31, %v821_v44  ;;  %v921_v53 = vadd.f32 %v10243_v43, %v837_v46  ;;  %v506_v0 = vmul.f32 %v14888_v48, %v10066_v2  ;;  %14889 = vst [vmem:[#allocation19_spill] sm:$0xff] %v10559_v13  ;;  %v10564_v34 = vpop.eup %9335  ;;  %v14891_v44 = vld [vmem:[#allocation15_spill] sm:$0xff] }
  0xda   : > { %8666 = vmatprep.subr.bf16.mxu0 %v8665_v62  ;;  %v8673_v3 = vpack.c.bf16 %v10551_v49, %v10542_v9  ;;  %1552 = vmatprep.mubr.f32.mxu0 %v14871_v14  ;;  %v792_v56 = vadd.f32 %v728_v19, %v504_v8  ;;  %v808_v11 = vadd.f32 %v744_v55, %v520_v27  ;;  %v10574_v49 = vpop.eup %9337 }
  0xdb   : > { %14890 = vst [vmem:[#allocation25_spill] sm:$0xff] %v10564_v34  ;;  %8415 = vmatmul.mubr.msk.f32.vlgmr.msra.gmra.mrb[8].mxu1 %vm1291_vm0, %v10391_v59  ;;  %9353 = vtanh.f32 %v905_v54  ;;  %v522_v63 = vmul.f32 %v14888_v48, %v10110_v25  ;;  %v730_v46 = vmul.f32 %v14891_v44, %v14862_v36  ;;  %v746_v62 = vmul.f32 %v14891_v44, %v10045_v60  ;;  %v10581_v55 = vpop.eup %9339 }
  0xdc   : > { %14892 = vst [vmem:[#allocation15_spill] sm:$0xff] %v10574_v49  ;;  %8674 = vmatprep.subr.bf16.mxu1 %v8673_v3  ;;  %v8667_v19 = vpack.c.bf16 %v10564_v34, %v10559_v13  ;;  %1641 = vmatprep.mubr.f32.mxu1 %v14871_v14  ;;  %9355 = vtanh.f32 %v921_v53  ;;  %v876_v8 = vadd.f32 %v10186_v41, %v792_v56  ;;  %14893 = vst [vmem:[#allocation26_spill] sm:$0xff] %v10581_v55  ;;  %v10589_v13 = vpop.eup %9341 }
  0xdd   : > { %v892_v27 = vadd.f32 %v10174_v40, %v808_v11  ;;  %8412 = vmatmul.mubr.msk.f32.gmra.mrb[10].mxu0 %vm1291_vm0, %v10428_v47  ;;  %v794_v54 = vadd.f32 %v730_v46, %v506_v0  ;;  %v810_v9 = vadd.f32 %v746_v62, %v522_v63  ;;  %v503_v3 = vmul.f32 %v14894_v33, %v10066_v2  ;;  %v14895_v11 = vld [vmem:[#allocation16_spill] sm:$0xff]  ;;  %v10598_v63 = vpop.eup %9343 }
  0xde   : > { %v519_v34 = vmul.f32 %v14894_v33, %v10110_v25  ;;  %8668 = vmatpush1.bf16.msra.mxu0 %v8667_v19  ;;  %v8675_v56 = vpack.c.bf16 %v10581_v55, %v10574_v49  ;;  %9357 = vtanh.f32 %v876_v8  ;;  %1558 = vmatprep.mubr.f32.mxu0 %v14871_v14  ;;  %v727_v53 = vmul.f32 %v14895_v11, %v14862_v36  ;;  %v14896_v19 = vld [vmem:[#allocation21_spill] sm:$0xff]  ;;  %v10606_v55 = vpop.eup %9345 }
  0xdf   : > { %v743_v0 = vmul.f32 %v14895_v11, %v10045_v60  ;;  %8416 = vmatmul.mubr.msk.f32.gmra.mrb[10].mxu1 %vm1291_vm0, %v10428_v47  ;;  %9359 = vtanh.f32 %v892_v27  ;;  %v878_v46 = vadd.f32 %v10186_v41, %v794_v54  ;;  %v894_v62 = vadd.f32 %v10174_v40, %v810_v9  ;;  %v10611_v58 = vpop.eup %9347 }
  0xe0   : > { %v505_v8 = vmul.f32 %v14896_v19, %v10066_v2  ;;  %8676 = vmatpush1.bf16.msra.mxu1 %v8675_v56  ;;  %v8669_v49 = vpack.c.bf16 %v10598_v63, %v10589_v13  ;;  %1647 = vmatprep.mubr.f32.mxu1 %v14871_v14  ;;  %v791_v5 = vadd.f32 %v727_v53, %v503_v3  ;;  %v14897_v2 = vld [vmem:[#allocation22_spill] sm:$0xff]  ;;  %v10621_v56 = vpop.eup %9349 }
  0xe1   : > { %v807_v12 = vadd.f32 %v743_v0, %v519_v34  ;;  %9361 = vtanh.f32 %v878_v46  ;;  %8413 = vmatmul.mubr.msk.f32.gmra.mrb[12].mxu0 %vm1291_vm0, %v10463_v45  ;;  %v521_v9 = vmul.f32 %v14896_v19, %v10110_v25  ;;  %v729_v27 = vmul.f32 %v14897_v2, %v14862_v36 }
  0xe2   : > { %v745_v54 = vmul.f32 %v14897_v2, %v10045_v60  ;;  %8670 = vmatprep.subr.bf16.mxu0 %v8669_v49  ;;  %v8677_v34 = vpack.c.bf16 %v10611_v58, %v10606_v55  ;;  %9363 = vtanh.f32 %v894_v62  ;;  %1564 = vmatprep.mubr.f32.mxu0 %v14871_v14  ;;  %v875_v3 = vadd.f32 %v10186_v41, %v791_v5  ;;  %v10628_v25 = vpop.eup %9351 }
  0xe3   : > { %v891_v53 = vadd.f32 %v10174_v40, %v807_v12  ;;  %8417 = vmatmul.mubr.msk.f32.gmra.mrb[12].mxu1 %vm1291_vm0, %v10463_v45  ;;  %v793_v36 = vadd.f32 %v729_v27, %v505_v8  ;;  %v536_v49 = vmul.f32 %v14883_v30, %v10138_v17  ;;  %v552_v0 = vmul.f32 %v14883_v30, %v10112_v24 }
  0xe4   : > { %v809_v60 = vadd.f32 %v745_v54, %v521_v9  ;;  %8678 = vmatprep.subr.bf16.mxu1 %v8677_v34  ;;  %v8671_v46 = vpack.c.bf16 %v10628_v25, %v10621_v56  ;;  %1653 = vmatprep.mubr.f32.mxu1 %v14871_v14  ;;  %9365 = vtanh.f32 %v875_v3  ;;  %v760_v12 = vmul.f32 %v14886_v35, %v14872_v52 }
  0xe5   : > { %v776_v5 = vmul.f32 %v14886_v35, %v10152_v4  ;;  %v10643_v62 = vpop.eup %9353  ;;  %8414 = vmatmul.mubr.msk.f32.gmra.mrb[14].mxu0 %vm1291_vm0, %v10500_v23  ;;  %9367 = vtanh.f32 %v891_v53  ;;  %v877_v30 = vadd.f32 %v10186_v41, %v793_v36  ;;  %v538_v9 = vmul.f32 %v14888_v48, %v10138_v17 }
  0xe6   : > { %v893_v8 = vadd.f32 %v10174_v40, %v809_v60  ;;  %v10651_v27 = vpop.eup %9355  ;;  %8672 = vmatpush1.bf16.msra.mxu0 %v8671_v46  ;;  %1724 = vmatprep.mubr.f32.mxu0 %v14871_v14  ;;  %v824_v54 = vadd.f32 %v760_v12, %v536_v49  ;;  %v554_v34 = vmul.f32 %v14888_v48, %v10112_v24 }
  0xe7   : > { %v840_v35 = vadd.f32 %v776_v5, %v552_v0  ;;  %v8679_v3 = vpack.c.bf16 %v10651_v27, %v10643_v62  ;;  %8418 = vmatmul.mubr.msk.f32.gmra.mrb[14].mxu1 %vm1291_vm0, %v10500_v23  ;;  %9369 = vtanh.f32 %v877_v30  ;;  %v762_v40 = vmul.f32 %v14891_v44, %v14872_v52 }
  0xe8   : > { %v778_v41 = vmul.f32 %v14891_v44, %v10152_v4  ;;  %v10664_v53 = vpop.eup %9357  ;;  %1813 = vmatprep.mubr.f32.mxu1 %v14871_v14  ;;  %9371 = vtanh.f32 %v893_v8  ;;  %v908_v48 = vadd.f32 %v10223_v31, %v824_v54  ;;  %v535_v60 = vmul.f32 %v14894_v33, %v10138_v17 }
  0xe9   : > { %v924_v36 = vadd.f32 %v10243_v43, %v840_v35  ;;  %v10671_v49 = vpop.eup %9359  ;;  %8680 = vmatpush1.bf16.msra.mxu1 %v8679_v3  ;;  %8419 = vmatmul.mubr.msk.f32.vlgmr.msra.gmra.mrb[16].mxu0 %vm1291_vm0, %v10391_v59  ;;  %v826_v0 = vadd.f32 %v762_v40, %v538_v9  ;;  %v551_v46 = vmul.f32 %v14894_v33, %v10112_v24 }
  0xea   : > { %v842_v44 = vadd.f32 %v778_v41, %v554_v34  ;;  %v8681_v12 = vpack.c.bf16 %v10671_v49, %v10664_v53  ;;  %9373 = vtanh.f32 %v908_v48  ;;  %1730 = vmatprep.mubr.f32.mxu0 %v14871_v14  ;;  %v759_v5 = vmul.f32 %v14895_v11, %v14872_v52 }
  0xeb   : > { %v775_v30 = vmul.f32 %v14895_v11, %v10152_v4  ;;  %v10684_v8 = vpop.eup %9361  ;;  %9375 = vtanh.f32 %v924_v36  ;;  %v910_v9 = vadd.f32 %v10223_v31, %v826_v0  ;;  %v537_v33 = vmul.f32 %v14896_v19, %v10138_v17 }
  0xec   : > { %v926_v54 = vadd.f32 %v10243_v43, %v842_v44  ;;  %v10690_v35 = vpop.eup %9363  ;;  %8682 = vmatprep.subr.bf16.mxu0 %v8681_v12  ;;  %8423 = vmatmul.mubr.msk.f32.vlgmr.msra.gmra.mrb[16].mxu1 %vm1291_vm0, %v10391_v59  ;;  %v823_v34 = vadd.f32 %v759_v5, %v535_v60  ;;  %v553_v11 = vmul.f32 %v14896_v19, %v10112_v24 }
  0xed   : > { %v839_v3 = vadd.f32 %v775_v30, %v551_v46  ;;  %v8689_v40 = vpack.c.bf16 %v10690_v35, %v10684_v8  ;;  %9377 = vtanh.f32 %v910_v9  ;;  %1819 = vmatprep.mubr.f32.mxu1 %v14871_v14  ;;  %8420 = vmatmul.mubr.msk.f32.gmra.mrb[18].mxu0 %vm1291_vm0, %v10428_v47  ;;  %v761_v17 = vmul.f32 %v14897_v2, %v14872_v52 }
  0xee   : > { %v777_v41 = vmul.f32 %v14897_v2, %v10152_v4  ;;  %v10705_v48 = vpop.eup %9365  ;;  %9379 = vtanh.f32 %v926_v54  ;;  %v907_v24 = vadd.f32 %v10223_v31, %v823_v34  ;;  %v10711_v36 = vmul.f32 %v10275_v39, %v10275_v39  ;;  %1736 = vmatprep.mubr.f32.mxu0 %v14871_v14 }
  0xef   : > { %v923_v19 = vadd.f32 %v10243_v43, %v839_v3  ;;  %v10714_v60 = vpop.eup %9367  ;;  %8690 = vmatprep.subr.bf16.mxu1 %v8689_v40  ;;  %v825_v52 = vadd.f32 %v761_v17, %v537_v33  ;;  %v10718_v4 = vmul.f32 %v10258_v38, %v10258_v38  ;;  %v10722_v2 = vmul.f32 %v10282_v10, %v10282_v10  ;;  %v10735_v38 = vpop.permute.xlu0 %1121 }
  0xf0   : > { %v841_v0 = vadd.f32 %v777_v41, %v553_v11  ;;  %v8683_v44 = vpack.c.bf16 %v10714_v60, %v10705_v48  ;;  %8424 = vmatmul.mubr.msk.f32.gmra.mrb[18].mxu1 %vm1291_vm0, %v10428_v47  ;;  %9381 = vtanh.f32 %v907_v24  ;;  %v14571_v39 = vsub.f32 1.0, %v10711_v36 }
  0xf1   : > { %v10731_v46 = vmul.f32 %v10265_v28, %v10265_v28  ;;  %v10733_v12 = vpop.eup %9369  ;;  %9383 = vtanh.f32 %v923_v19  ;;  %v909_v10 = vadd.f32 %v10223_v31, %v825_v52  ;;  %v14570_v30 = vsub.f32 1.0, %v10718_v4  ;;  %1825 = vmatprep.mubr.f32.mxu1 %v14871_v14  ;;  %8421 = vmatmul.mubr.msk.f32.gmra.mrb[20].mxu0 %vm1291_vm0, %v10463_v45  ;;  %v10745_v28 = vpop.permute.xlu1 %1126 }
  0xf2   : > { %v925_v5 = vadd.f32 %v10243_v43, %v841_v0  ;;  %v10743_v9 = vpop.eup %9371  ;;  %8684 = vmatpush1.bf16.msra.mxu0 %v8683_v44  ;;  %v10750_v54 = vmul.f32 %v10735_v38, %v14571_v39  ;;  %v14568_v31 = vsub.f32 1.0, %v10722_v2  ;;  %1742 = vmatprep.mubr.f32.mxu0 %v14871_v14  ;;  %v10757_v33 = vmul.f32 %v10289_v1, %v10289_v1 }
  0xf3   : > { %14898 = vst [vmem:[#allocation20_spill] sm:$0xff] %v10731_v46  ;;  %v14567_v43 = vsub.f32 1.0, %v10731_v46  ;;  %v8691_v34 = vpack.c.bf16 %v10743_v9, %v10733_v12  ;;  %9385 = vtanh.f32 %v909_v10  ;;  %v10764_v3 = vmul.f32 %v10745_v28, %v14570_v30  ;;  %v10843_v30 = vpop.permute.xlu0 %1131 }
  0xf4   : > { %14899 = vst [vmem:[#allocation16_spill] sm:$0xff] %v10757_v33  ;;  %v10768_v11 = vmul.f32 %v10298_v29, %v10298_v29  ;;  %v10770_v40 = vpop.eup %9373  ;;  %9387 = vtanh.f32 %v925_v5  ;;  %v10775_v1 = vmul.f32 %v10735_v38, %v14568_v31  ;;  %8425 = vmatmul.mubr.msk.f32.gmra.mrb[20].mxu1 %vm1291_vm0, %v10463_v45  ;;  %v14566_v41 = vsub.f32 1.0, %v10757_v33 }
  0xf5   : > { %v10780_v17 = vmul.f32 %v10745_v28, %v14567_v43  ;;  %v10785_v29 = vpop.eup %9375  ;;  %8692 = vmatpush1.bf16.msra.mxu1 %v8691_v34  ;;  %v8697_v24 = vpack.c.bf16 %v10764_v3, %v10750_v54  ;;  %1831 = vmatprep.mubr.f32.mxu1 %v14871_v14  ;;  %v10793_v52 = vmul.f32 %v10305_v16, %v10305_v16 }
  0xf6   : > { %14900 = vst [vmem:[#allocation21_spill] sm:$0xff] %v10768_v11  ;;  %v14569_v19 = vsub.f32 1.0, %v10768_v11  ;;  %v10797_v0 = vmul.f32 %v10313_v18, %v10313_v18  ;;  %v8685_v44 = vpack.c.bf16 %v10785_v29, %v10770_v40  ;;  %8422 = vmatmul.mubr.msk.f32.gmra.mrb[22].mxu0 %vm1291_vm0, %v10500_v23  ;;  %v10808_v5 = vmul.f32 %v10735_v38, %v14566_v41 }
  0xf7   : > { %14901 = vst [vmem:[#allocation22_spill] sm:$0xff] %v10793_v52  ;;  %v10812_v16 = vmul.f32 %v10323_v42, %v10323_v42  ;;  %v10814_v18 = vpop.eup %9377  ;;  %1902 = vmatprep.mubr.f32.mxu0 %v14871_v14  ;;  %v14575_v34 = vsub.f32 1.0, %v10793_v52  ;;  %v10824_v41 = vmul.f32 %v10340_v15, %v10340_v15  ;;  %v10833_v31 = vmul.f32 %v10331_v32, %v10331_v32  ;;  %v10865_v52 = vpop.permute.xlu1 %1136 }
  0xf8   : > { %14902 = vst [vmem:[#allocation27_spill] sm:$0xff] %v10797_v0  ;;  %v1155_v54 = vmul.f32 %v10745_v28, %v14569_v19  ;;  %v14576_v3 = vsub.f32 1.0, %v10797_v0  ;;  %v10826_v43 = vpop.eup %9379  ;;  %8686 = vmatprep.subr.bf16.mxu0 %v8685_v44  ;;  %8426 = vmatmul.mubr.msk.f32.gmra.mrb[22].mxu1 %vm1291_vm0, %v10500_v23  ;;  %v10837_v19 = vmul.f32 %v10350_v50, %v10350_v50 }
  0xf9   : > { %14903 = vst [vmem:[#allocation28_spill] sm:$0xff] %v10812_v16  ;;  %14904 = vst [vmem:[#allocation29_spill] sm:$0xff] %v10824_v41  ;;  %v14578_v42 = vsub.f32 1.0, %v10812_v16  ;;  %v10841_v15 = vmul.f32 %v10355_v61, %v10355_v61  ;;  %v8693_v44 = vpack.c.bf16 %v10826_v43, %v10814_v18  ;;  %1991 = vmatprep.mubr.f32.mxu1 %v14871_v14 }
  0xfa   : > { %14905 = vst [vmem:[#allocation30_spill] sm:$0xff] %v10833_v31  ;;  %14906 = vst [vmem:[#allocation31_spill] sm:$0xff] %v10837_v19  ;;  %v8699_v39 = vpack.c.bf16 %v1155_v54, %v10808_v5  ;;  %v1141_v32 = vmul.f32 %v10735_v38, %v14575_v34  ;;  %v1157_v50 = vmul.f32 %v10745_v28, %v14576_v3  ;;  %v10855_v10 = vpop.eup %9381  ;;  %v14907_v5 = vsub.f32 1.0, %v10824_v41 }
  0xfb   : > { %v1172_v11 = vmul.f32 %v10843_v30, %v14578_v42  ;;  %v10863_v54 = vpop.eup %9383  ;;  %8694 = vmatprep.subr.bf16.mxu1 %v8693_v44  ;;  %v10869_v3 = vmul.f32 %v10362_v26, %v10362_v26  ;;  %v10874_v16 = vmul.f32 %v10369_v57, %v10369_v57  ;;  %v14908_v44 = vsub.f32 1.0, %v10833_v31 }
  0xfc   : > { %v8707_v34 = vpack.c.bf16 %v1157_v50, %v1141_v32  ;;  %v8687_v42 = vpack.c.bf16 %v10863_v54, %v10855_v10  ;;  %v1188_v33 = vmul.f32 %v10865_v52, %v14907_v5  ;;  %v14909_v26 = vsub.f32 1.0, %v10837_v19 }
  0xfd   : > { %v1174_v32 = vmul.f32 %v10843_v30, %v14908_v44  ;;  %v10887_v61 = vpop.eup %9385  ;;  %v14910_v0 = vsub.f32 1.0, %v10841_v15  ;;  %v10895_v41 = vmul.f32 %v10375_v37, %v10375_v37  ;;  %v10906_v57 = vmul.f32 %v10397_v51, %v10397_v51 }
  0xfe   : > { %v1190_v50 = vmul.f32 %v10865_v52, %v14909_v26  ;;  %v10898_v31 = vpop.eup %9387  ;;  %8688 = vmatpush1.bf16.msra.mxu0 %v8687_v42  ;;  %v8701_v44 = vpack.c.bf16 %v1188_v33, %v1172_v11  ;;  %v10902_v26 = vmul.f32 %v10384_v7, %v10384_v7  ;;  %v14911_v37 = vsub.f32 1.0, %v10869_v3 }
  0xff   : > { %v1171_v46 = vmul.f32 %v10843_v30, %v14910_v0  ;;  %v8695_v0 = vpack.c.bf16 %v10898_v31, %v10887_v61  ;;  %8698 = vmatprep.subr.bf16.mxu0 %v8697_v24  ;;  %v14584_v42 = vsub.f32 1.0, %v10895_v41  ;;  %v14912_v33 = vsub.f32 1.0, %v10874_v16 }
 0x100   : > { %v8709_v19 = vpack.c.bf16 %v1190_v50, %v1174_v32  ;;  %v1187_v5 = vmul.f32 %v10865_v52, %v14911_v37  ;;  %v14587_v7 = vsub.f32 1.0, %v10902_v26  ;;  %v10921_v51 = vmul.f32 %v10402_v22, %v10402_v22  ;;  %v14914_v50 = vld [vmem:[#allocation5_spill] sm:$0xff] }
 0x101   : > { %v1173_v11 = vmul.f32 %v10843_v30, %v14912_v33  ;;  %v10925_v24 = vmul.f32 %v14914_v50, %v14914_v50  ;;  %8696 = vmatpush1.bf16.msra.mxu1 %v8695_v0  ;;  %8427 = vmatmul.mubr.msk.f32.vlgmr.msra.gmra.mrb[24].mxu0 %vm1291_vm0, %v10391_v59  ;;  %v1189_v33 = vmul.f32 %v10865_v52, %v14584_v42  ;;  %v14918_v50 = vsub.f32 1.0, %v10906_v57 }
 0x102   : > { %14913 = vst [vmem:[#allocation32_spill] sm:$0xff] %v10921_v51  ;;  %v8703_v37 = vpack.c.bf16 %v1187_v5, %v1171_v46  ;;  %v10934_v32 = vmul.f32 %v10420_v21, %v10420_v21  ;;  %v14917_v22 = vpack.c.bf16 %v10780_v17, %v10775_v1  ;;  %8700 = vmatpush1.bf16.msra.mxu0 %v8699_v39  ;;  %v14585_v5 = vsub.f32 1.0, %v10921_v51 }
 0x103   : > { %14915 = vst [vmem:[#allocation5_spill] sm:$0xff] %v10925_v24  ;;  %v1144_v0 = vmul.f32 %v10735_v38, %v14587_v7  ;;  %v1160_v46 = vmul.f32 %v10745_v28, %v14918_v50  ;;  %v14586_v42 = vsub.f32 1.0, %v10925_v24  ;;  %8702 = vmatprep.subr.bf16.mxu0 %v8701_v44  ;;  %1908 = vmatprep.mubr.f32.mxu0 %v14871_v14 }
 0x104   : > { %14916 = vst [vmem:[#allocation33_spill] sm:$0xff] %v10934_v32  ;;  %8706 = vmatprep.subr.bf16.mxu1 %v14917_v22  ;;  %v8711_v21 = vpack.c.bf16 %v1189_v33, %v1173_v11  ;;  %v10950_v1 = vmul.f32 %v10431_v6, %v10431_v6  ;;  %v14588_v39 = vsub.f32 1.0, %v10934_v32  ;;  %v10955_v17 = vmul.f32 %v10442_v20, %v10442_v20  ;;  %v14921_v6 = vld [vmem:[#allocation17_spill] sm:$0xff]  ;;  %v14927_v20 = vld [vmem:[#allocation7_spill] sm:$0xff] }
 0x105   : > { %8431 = vmatmul.mubr.msk.f32.vlgmr.msra.gmra.mrb[24].mxu1 %vm1291_vm0, %v10391_v59  ;;  %v8713_v22 = vpack.c.bf16 %v1160_v46, %v1144_v0  ;;  %v1146_v44 = vmul.f32 %v10735_v38, %v14585_v5  ;;  %v1162_v11 = vmul.f32 %v10745_v28, %v14586_v42  ;;  %v10967_v33 = vmul.f32 %v14921_v6, %v14921_v6  ;;  %v14923_v46 = vld [vmem:[#allocation6_spill] sm:$0xff]  ;;  %v14925_v42 = vld [vmem:[#allocation9_spill] sm:$0xff] }
 0x106   : > { %14919 = vst [vmem:[#allocation34_spill] sm:$0xff] %v10950_v1  ;;  %14920 = vst [vmem:[#allocation35_spill] sm:$0xff] %v10955_v17  ;;  %8708 = vmatpush1.bf16.msra.mxu1 %v8707_v34  ;;  %1997 = vmatprep.mubr.f32.mxu1 %v14871_v14  ;;  %v10974_v0 = vmul.f32 %v10735_v38, %v14588_v39  ;;  %v14589_v50 = vsub.f32 1.0, %v10955_v17  ;;  %v10979_v5 = vmul.f32 %v14923_v46, %v14923_v46  ;;  %v14933_v17 = vld [vmem:[#allocation8_spill] sm:$0xff] }
 0x107   : > { %14922 = vst [vmem:[#allocation17_spill] sm:$0xff] %v10967_v33  ;;  %8710 = vmatprep.subr.bf16.mxu1 %v8709_v19  ;;  %8428 = vmatmul.mubr.msk.f32.gmra.mrb[26].mxu0 %vm1291_vm0, %v10428_v47  ;;  %v8721_v34 = vpack.c.bf16 %v1162_v11, %v1146_v44  ;;  %v10986_v7 = vmul.f32 %v14925_v42, %v14925_v42  ;;  %v14929_v46 = vsub.f32 1.0, %v10950_v1  ;;  %v14930_v42 = vld [vmem:[#allocation10_spill] sm:$0xff]  ;;  %v14936_v1 = vld [vmem:[#allocation11_spill] sm:$0xff] }
 0x108   : > { %14924 = vst [vmem:[#allocation6_spill] sm:$0xff] %v10979_v5  ;;  %v10990_v39 = vmul.f32 %v14927_v20, %v14927_v20  ;;  %8704 = vmatpush1.bf16.msra.mxu0 %v8703_v37  ;;  %1914 = vmatprep.mubr.f32.mxu0 %v14871_v14  ;;  %v10999_v44 = vmul.f32 %v10735_v38, %v14589_v50  ;;  %v14932_v37 = vsub.f32 1.0, %v10967_v33 }
 0x109   : > { %14926 = vst [vmem:[#allocation9_spill] sm:$0xff] %v10986_v7  ;;  %v1159_v19 = vmul.f32 %v10745_v28, %v14929_v46  ;;  %v11004_v6 = vmul.f32 %v14930_v42, %v14930_v42  ;;  %8432 = vmatmul.mubr.msk.f32.gmra.mrb[26].mxu1 %vm1291_vm0, %v10428_v47  ;;  %8714 = vmatprep.subr.bf16.mxu0 %v8713_v22  ;;  %v14935_v22 = vsub.f32 1.0, %v10979_v5  ;;  %v14939_v5 = vld [vmem:[#allocation12_spill] sm:$0xff] }
 0x10a   : > { %14928 = vst [vmem:[#allocation7_spill] sm:$0xff] %v10990_v39  ;;  %v11011_v20 = vmul.f32 %v10745_v28, %v14932_v37  ;;  %v14594_v50 = vsub.f32 1.0, %v10990_v39  ;;  %v11017_v11 = vmul.f32 %v14933_v17, %v14933_v17  ;;  %8712 = vmatpush1.bf16.msra.mxu1 %v8711_v21  ;;  %2003 = vmatprep.mubr.f32.mxu1 %v14871_v14  ;;  %v14938_v17 = vsub.f32 1.0, %v10986_v7  ;;  %v14943_v39 = vld [vmem:[#allocation23_spill] sm:$0xff] }
 0x10b   : > { %14931 = vst [vmem:[#allocation10_spill] sm:$0xff] %v11004_v6  ;;  %v8715_v42 = vpack.c.bf16 %v1159_v19, %v10974_v0  ;;  %v1176_v33 = vmul.f32 %v10843_v30, %v14935_v22  ;;  %v14597_v37 = vsub.f32 1.0, %v11004_v6  ;;  %v11027_v46 = vmul.f32 %v14936_v1, %v14936_v1  ;;  %8722 = vmatprep.subr.bf16.mxu1 %v8721_v34  ;;  %v14945_v34 = vld [vmem:[#allocation13_spill] sm:$0xff] }
 0x10c   : > { %14934 = vst [vmem:[#allocation8_spill] sm:$0xff] %v11017_v11  ;;  %8429 = vmatmul.mubr.msk.f32.gmra.mrb[28].mxu0 %vm1291_vm0, %v10463_v45  ;;  %v8723_v21 = vpack.c.bf16 %v11011_v20, %v10999_v44  ;;  %v1192_v0 = vmul.f32 %v10865_v52, %v14938_v17  ;;  %v1178_v19 = vmul.f32 %v10843_v30, %v14594_v50  ;;  %v14600_v22 = vsub.f32 1.0, %v11017_v11  ;;  %v14941_v20 = vld [vmem:[#allocation18_spill] sm:$0xff] }
 0x10d   : > { %14937 = vst [vmem:[#allocation11_spill] sm:$0xff] %v11027_v46  ;;  %1920 = vmatprep.mubr.f32.mxu0 %v14871_v14  ;;  %v1194_v1 = vmul.f32 %v10865_v52, %v14597_v37  ;;  %v11047_v44 = vmul.f32 %v14939_v5, %v14939_v5  ;;  %v11051_v17 = vmul.f32 %v14941_v20, %v14941_v20  ;;  %v14947_v7 = vsub.f32 1.0, %v11027_v46 }
 0x10e   : > { %8433 = vmatmul.mubr.msk.f32.gmra.mrb[28].mxu1 %vm1291_vm0, %v10463_v45  ;;  %v8717_v50 = vpack.c.bf16 %v1192_v0, %v1176_v33  ;;  %v1175_v6 = vmul.f32 %v10843_v30, %v14600_v22  ;;  %v11060_v37 = vmul.f32 %v14943_v39, %v14943_v39  ;;  %v11064_v5 = vmul.f32 %v14945_v34, %v14945_v34  ;;  %v14948_v34 = vld [vmem:[#allocation24_spill] sm:$0xff]  ;;  %v14951_v22 = vld [vmem:[#allocation19_spill] sm:$0xff] }
 0x10f   : > { %14940 = vst [vmem:[#allocation12_spill] sm:$0xff] %v11047_v44  ;;  %14942 = vst [vmem:[#allocation18_spill] sm:$0xff] %v11051_v17  ;;  %2009 = vmatprep.mubr.f32.mxu1 %v14871_v14  ;;  %v8725_v20 = vpack.c.bf16 %v1194_v1, %v1178_v19  ;;  %v1191_v32 = vmul.f32 %v10865_v52, %v14947_v7  ;;  %v14604_v33 = vsub.f32 1.0, %v11047_v44  ;;  %v14949_v19 = vld [vmem:[#allocation14_spill] sm:$0xff]  ;;  %v14950_v46 = vsub.f32 1.0, %v11051_v17 }
 0x110   : > { %14944 = vst [vmem:[#allocation23_spill] sm:$0xff] %v11060_v37  ;;  %14946 = vst [vmem:[#allocation13_spill] sm:$0xff] %v11064_v5  ;;  %8430 = vmatmul.mubr.msk.f32.gmra.mrb[30].mxu0 %vm1291_vm0, %v10500_v23  ;;  %v11078_v11 = vmul.f32 %v14948_v34, %v14948_v34  ;;  %v11082_v1 = vmul.f32 %v14949_v19, %v14949_v19  ;;  %v11093_v24 = vmul.f32 %v14951_v22, %v14951_v22  ;;  %v14954_v22 = vld [vmem:[#allocation25_spill] sm:$0xff] }
 0x111   : > { %2080 = vmatprep.mubr.f32.mxu0 %v14871_v14  ;;  %v8719_v7 = vpack.c.bf16 %v1191_v32, %v1175_v6  ;;  %v1177_v0 = vmul.f32 %v10843_v30, %v14604_v33  ;;  %v1193_v39 = vmul.f32 %v10865_v52, %v14950_v46  ;;  %v14952_v34 = vsub.f32 1.0, %v11060_v37  ;;  %v14955_v37 = vld [vmem:[#allocation15_spill] sm:$0xff] }
 0x112   : > { %8434 = vmatmul.mubr.msk.f32.gmra.mrb[30].mxu1 %vm1291_vm0, %v10500_v23  ;;  %v14953_v32 = vsub.f32 1.0, %v11064_v5  ;;  %v14610_v33 = vsub.f32 1.0, %v11078_v11  ;;  %v11108_v44 = vmul.f32 %v14954_v22, %v14954_v22  ;;  %v14611_v51 = vsub.f32 1.0, %v11093_v24  ;;  %v14957_v22 = vld [vmem:[#allocation26_spill] sm:$0xff] }
 0x113   : > { %v1148_v19 = vmul.f32 %v10735_v38, %v14952_v34  ;;  %2169 = vmatprep.mubr.f32.mxu1 %v14871_v14  ;;  %v8727_v46 = vpack.c.bf16 %v1193_v39, %v1177_v0  ;;  %v11113_v34 = vmul.f32 %v14955_v37, %v14955_v37  ;;  %v14956_v0 = vsub.f32 1.0, %v11082_v1 }
 0x114   : > { %v1164_v6 = vmul.f32 %v10745_v28, %v14953_v32  ;;  %8435 = vmatmul.mubr.msk.f32.vlgmr.msra.gmra.mrb[32].mxu0 %vm1291_vm0, %v10391_v59  ;;  %v1150_v17 = vmul.f32 %v10735_v38, %v14610_v33  ;;  %v11125_v5 = vmul.f32 %v14957_v22, %v14957_v22  ;;  %v14626_v37 = vsub.f32 1.0, %v11108_v44 }
 0x115   : > { %v1166_v39 = vmul.f32 %v10745_v28, %v14956_v0  ;;  %8716 = vmatpush1.bf16.msra.mxu0 %v8715_v42  ;;  %2086 = vmatprep.mubr.f32.mxu0 %v14871_v14  ;;  %v11137_v33 = vmul.f32 %v10589_v13, %v10589_v13  ;;  %v11144_v22 = vmul.f32 %v10598_v63, %v10598_v63 }
 0x116   : > { %v8729_v32 = vpack.c.bf16 %v1164_v6, %v1148_v19  ;;  %v11132_v19 = vmul.f32 %v10735_v38, %v14611_v51  ;;  %v14613_v6 = vsub.f32 1.0, %v11113_v34  ;;  %8439 = vmatmul.mubr.msk.f32.vlgmr.msra.gmra.mrb[32].mxu1 %vm1291_vm0, %v10391_v59  ;;  %8718 = vmatprep.subr.bf16.mxu0 %v8717_v50  ;;  %v14612_v0 = vsub.f32 1.0, %v11125_v5 }
 0x117   : > { %v8737_v42 = vpack.c.bf16 %v1166_v39, %v1150_v17  ;;  %v11148_v51 = vmul.f32 %v10606_v55, %v10606_v55  ;;  %8724 = vmatpush1.bf16.msra.mxu1 %v8723_v21  ;;  %2175 = vmatprep.mubr.f32.mxu1 %v14871_v14  ;;  %v11154_v13 = vmul.f32 %v10745_v28, %v14626_v37  ;;  %v14621_v63 = vsub.f32 1.0, %v11137_v33 }
 0x118   : > { %v11159_v59 = vmul.f32 %v10735_v38, %v14613_v6  ;;  %v11164_v50 = vmul.f32 %v10611_v58, %v10611_v58  ;;  %8726 = vmatprep.subr.bf16.mxu1 %v8725_v20  ;;  %8436 = vmatmul.mubr.msk.f32.gmra.mrb[34].mxu0 %vm1291_vm0, %v10428_v47  ;;  %v11171_v55 = vmul.f32 %v10745_v28, %v14612_v0  ;;  %v14620_v21 = vsub.f32 1.0, %v11144_v22 }
 0x119   : > { %v14614_v17 = vsub.f32 1.0, %v11148_v51  ;;  %v11177_v39 = vmul.f32 %v10621_v56, %v10621_v56  ;;  %8720 = vmatpush1.bf16.msra.mxu0 %v8719_v7  ;;  %2092 = vmatprep.mubr.f32.mxu0 %v14871_v14  ;;  %v8731_v58 = vpack.c.bf16 %v11154_v13, %v11132_v19  ;;  %v11185_v20 = vmul.f32 %v10843_v30, %v14621_v63 }
 0x11a   : > { %v14615_v0 = vsub.f32 1.0, %v11164_v50  ;;  %v11190_v6 = vmul.f32 %v10628_v25, %v10628_v25  ;;  %8440 = vmatmul.mubr.msk.f32.gmra.mrb[34].mxu1 %vm1291_vm0, %v10428_v47  ;;  %8730 = vmatprep.subr.bf16.mxu0 %v8729_v32  ;;  %v11199_v7 = vmul.f32 %v10865_v52, %v14620_v21  ;;  %v11216_v13 = vmul.f32 %v10643_v62, %v10643_v62 }
 0x11b   : > { %v11204_v19 = vmul.f32 %v10843_v30, %v14614_v17  ;;  %v14616_v25 = vsub.f32 1.0, %v11177_v39  ;;  %8728 = vmatpush1.bf16.msra.mxu1 %v8727_v46  ;;  %2181 = vmatprep.mubr.f32.mxu1 %v14871_v14  ;;  %v11220_v17 = vmul.f32 %v10651_v27, %v10651_v27  ;;  %v11233_v62 = vmul.f32 %v10664_v53, %v10664_v53 }
 0x11c   : > { %v11211_v47 = vmul.f32 %v10865_v52, %v14615_v0  ;;  %v14617_v32 = vsub.f32 1.0, %v11190_v6  ;;  %8738 = vmatprep.subr.bf16.mxu1 %v8737_v42  ;;  %8437 = vmatmul.mubr.msk.f32.gmra.mrb[36].mxu0 %vm1291_vm0, %v10463_v45  ;;  %v8733_v46 = vpack.c.bf16 %v11199_v7, %v11185_v20  ;;  %v14618_v20 = vsub.f32 1.0, %v11216_v13 }
 0x11d   : > { %v11229_v0 = vmul.f32 %v10843_v30, %v14616_v25  ;;  %2098 = vmatprep.mubr.f32.mxu0 %v14871_v14  ;;  %v14619_v7 = vsub.f32 1.0, %v11220_v17  ;;  %v11249_v53 = vmul.f32 %v10671_v49, %v10671_v49  ;;  %v14622_v25 = vsub.f32 1.0, %v11233_v62 }
 0x11e   : > { %v8741_v27 = vpack.c.bf16 %v11211_v47, %v11204_v19  ;;  %v11241_v42 = vmul.f32 %v10865_v52, %v14617_v32  ;;  %8441 = vmatmul.mubr.msk.f32.gmra.mrb[36].mxu1 %vm1291_vm0, %v10463_v45  ;;  %v11254_v19 = vmul.f32 %v10684_v8, %v10684_v8  ;;  %v11258_v47 = vmul.f32 %v10690_v35, %v10690_v35 }
 0x11f   : > { %2187 = vmatprep.mubr.f32.mxu1 %v14871_v14  ;;  %v11266_v45 = vmul.f32 %v10843_v30, %v14618_v20  ;;  %v11271_v49 = vmul.f32 %v10865_v52, %v14619_v7  ;;  %v11275_v8 = vmul.f32 %v10705_v48, %v10705_v48  ;;  %v14623_v35 = vsub.f32 1.0, %v11249_v53 }
 0x120   : > { %v8735_v32 = vpack.c.bf16 %v11241_v42, %v11229_v0  ;;  %8438 = vmatmul.mubr.msk.f32.gmra.mrb[38].mxu0 %vm1291_vm0, %v10500_v23  ;;  %v1152_v0 = vmul.f32 %v10735_v38, %v14622_v25  ;;  %v14624_v42 = vsub.f32 1.0, %v11254_v19  ;;  %v14625_v20 = vsub.f32 1.0, %v11258_v47 }
 0x121   : > { %14958 = vst [vmem:[#allocation24_spill] sm:$0xff] %v11275_v8  ;;  %2258 = vmatprep.mubr.f32.mxu0 %v14871_v14  ;;  %v8743_v7 = vpack.c.bf16 %v11271_v49, %v11266_v45  ;;  %v11290_v48 = vmul.f32 %v10714_v60, %v10714_v60  ;;  %v14627_v21 = vsub.f32 1.0, %v11275_v8  ;;  %v11295_v63 = vmul.f32 %v10733_v12, %v10733_v12 }
 0x122   : > { %8442 = vmatmul.mubr.msk.f32.gmra.mrb[38].mxu1 %vm1291_vm0, %v10500_v23  ;;  %v1168_v25 = vmul.f32 %v10745_v28, %v14623_v35  ;;  %v1154_v45 = vmul.f32 %v10735_v38, %v14624_v42  ;;  %v1170_v60 = vmul.f32 %v10745_v28, %v14625_v20  ;;  %v11310_v49 = vmul.f32 %v10743_v9, %v10743_v9  ;;  %v11327_v9 = vld [vmem:[%s14520_s3] sm:$0xff] }
 0x123   : > { %2347 = vmatprep.mubr.f32.mxu1 %v14871_v14  ;;  %v14632_v23 = vsub.f32 1.0, %v11290_v48  ;;  %v11317_v12 = vmul.f32 %v10735_v38, %v14627_v21  ;;  %v14631_v35 = vsub.f32 1.0, %v11295_v63  ;;  %v11322_v42 = vmul.f32 %v10770_v40, %v10770_v40 }
 0x124   : > { %8443 = vmatmul.mubr.msk.f32.vlgmr.msra.gmra.mrb[40].mxu0 %vm1291_vm0, %v11327_v9  ;;  %v8745_v20 = vpack.c.bf16 %v1168_v25, %v1152_v0  ;;  %v8753_v37 = vpack.c.bf16 %v1170_v60, %v1154_v45  ;;  %v14629_v56 = vsub.f32 1.0, %v11310_v49  ;;  %v11334_v21 = vmul.f32 %v10785_v29, %v10785_v29  ;;  %v11352_v29 = vpop.permute.xlu1 %1208 }
 0x125   : > { %8732 = vmatpush1.bf16.msra.mxu0 %v8731_v58  ;;  %2264 = vmatprep.mubr.f32.mxu0 %v14871_v14  ;;  %v11340_v40 = vmul.f32 %v10745_v28, %v14632_v23  ;;  %v11345_v8 = vmul.f32 %v10735_v38, %v14631_v35  ;;  %v14630_v25 = vsub.f32 1.0, %v11322_v42  ;;  %v11350_v0 = vmul.f32 %v10814_v18, %v10814_v18 }
 0x126   : > { %14959 = vst [vmem:[#allocation14_spill] sm:$0xff] %v11334_v21  ;;  %8447 = vmatmul.mubr.msk.f32.vlgmr.msra.gmra.mrb[40].mxu1 %vm1291_vm0, %v11327_v9  ;;  %8734 = vmatprep.subr.bf16.mxu0 %v8733_v46  ;;  %v11359_v58 = vmul.f32 %v10745_v28, %v14629_v56  ;;  %v14633_v38 = vsub.f32 1.0, %v11334_v21  ;;  %v11364_v45 = vmul.f32 %v10826_v43, %v10826_v43  ;;  %v11386_v56 = vpop.permute.xlu0 %1204 }
 0x127   : > { %14960 = vst [vmem:[#allocation19_spill] sm:$0xff] %v11350_v0  ;;  %v11368_v18 = vmul.f32 %v10855_v10, %v10855_v10  ;;  %v14963_v60 = vpack.c.bf16 %v11171_v55, %v11159_v59  ;;  %2353 = vmatprep.mubr.f32.mxu1 %v14871_v14  ;;  %v11379_v46 = vmul.f32 %v10843_v30, %v14630_v25  ;;  %v14634_v43 = vsub.f32 1.0, %v11350_v0  ;;  %v11391_v59 = vld [vmem:[%s14520_s3 + $0x8] sm:$0xff] }
 0x128   : > { %14961 = vst [vmem:[#allocation25_spill] sm:$0xff] %v11364_v45  ;;  %v11384_v10 = vmul.f32 %v10863_v54, %v10863_v54  ;;  %8444 = vmatmul.mubr.msk.f32.gmra.mrb[42].mxu0 %vm1291_vm0, %v11391_v59  ;;  %v14635_v54 = vsub.f32 1.0, %v11364_v45  ;;  %v11413_v23 = vmul.f32 %v10887_v61, %v10887_v61  ;;  %v11446_v28 = vpop.permute.xlu1 %1212  ;;  %v14991_v45 = vld [vmem:[#allocation31_spill] sm:$0xff] }
 0x129   : > { %14962 = vst [vmem:[#allocation15_spill] sm:$0xff] %v11368_v18  ;;  %8740 = vmatpush1.bf16.msra.mxu1 %v14963_v60  ;;  %v11400_v60 = vmul.f32 %v10865_v52, %v14633_v38  ;;  %8736 = vmatpush1.bf16.msra.mxu0 %v8735_v32  ;;  %v11408_v25 = vmul.f32 %v10843_v30, %v14634_v43  ;;  %v14992_v0 = vsub.f32 1.0, %v14991_v45  ;;  %v14998_v45 = vsub.f32 1.0, %v10874_v16 }
 0x12a   : > { %14964 = vst [vmem:[#allocation26_spill] sm:$0xff] %v11384_v10  ;;  %8742 = vmatprep.subr.bf16.mxu1 %v8741_v27  ;;  %v14637_v27 = vsub.f32 1.0, %v11368_v18  ;;  %2270 = vmatprep.mubr.f32.mxu0 %v14871_v14  ;;  %v14636_v35 = vsub.f32 1.0, %v11384_v10  ;;  %14965 = vst [vmem:[#allocation36_spill] sm:$0xff] %v11413_v23  ;;  %v11417_v38 = vmul.f32 %v10898_v31, %v10898_v31  ;;  %v11467_v55 = vpop.permute.xlu0 %1216  ;;  %v14970_v10 = vsub.f32 1.0, %v11413_v23 }
 0x12b   : > { %8448 = vmatmul.mubr.msk.f32.gmra.mrb[42].mxu1 %vm1291_vm0, %v11391_v59  ;;  %8746 = vmatprep.subr.bf16.mxu0 %v8745_v20  ;;  %v11426_v43 = vmul.f32 %v10865_v52, %v14635_v54  ;;  %v14967_v54 = vsub.f32 1.0, %v10711_v36  ;;  %v11543_v21 = vmul.f32 %v11467_v55, %v14992_v0  ;;  %v11561_v0 = vmul.f32 %v11446_v28, %v14998_v45 }
 0x12c   : > { %14966 = vst [vmem:[#allocation37_spill] sm:$0xff] %v11417_v38  ;;  %v11431_v61 = vmul.f32 %v10843_v30, %v14637_v27  ;;  %2359 = vmatprep.mubr.f32.mxu1 %v14871_v14  ;;  %v11437_v31 = vmul.f32 %v10865_v52, %v14636_v35  ;;  %v14968_v27 = vsub.f32 1.0, %v10718_v4  ;;  %v14971_v4 = vsub.f32 1.0, %v11417_v38 }
 0x12d   : > { %8744 = vmatpush1.bf16.msra.mxu1 %v8743_v7  ;;  %v11444_v32 = vmul.f32 %v11386_v56, %v14967_v54  ;;  %v11451_v7 = vld [vmem:[%s14520_s3 + $0x10] sm:$0xff]  ;;  %v8757_v35 = vpack.c.bf16 %v11426_v43, %v11408_v25  ;;  %v14969_v54 = vsub.f32 1.0, %v10722_v2  ;;  %v11475_v25 = vmul.f32 %v10843_v30, %v14970_v10  ;;  %v14972_v2 = vld [vmem:[#allocation20_spill] sm:$0xff]  ;;  %v14976_v10 = vld [vmem:[#allocation21_spill] sm:$0xff] }
 0x12e   : > { %8754 = vmatprep.subr.bf16.mxu1 %v8753_v37  ;;  %8445 = vmatmul.mubr.msk.f32.gmra.mrb[44].mxu0 %vm1291_vm0, %v11451_v7  ;;  %v11460_v36 = vmul.f32 %v11352_v29, %v14968_v27  ;;  %v8751_v20 = vpack.c.bf16 %v11437_v31, %v11431_v61  ;;  %v11480_v43 = vmul.f32 %v10865_v52, %v14971_v4  ;;  %v14973_v27 = vsub.f32 1.0, %v14972_v2  ;;  %v14974_v31 = vld [vmem:[#allocation16_spill] sm:$0xff]  ;;  %v14978_v4 = vld [vmem:[#allocation22_spill] sm:$0xff] }
 0x12f   : > { %v11465_v37 = vmul.f32 %v11386_v56, %v14969_v54  ;;  %2276 = vmatprep.mubr.f32.mxu0 %v14871_v14  ;;  %8449 = vmatmul.mubr.msk.f32.gmra.mrb[44].mxu1 %vm1291_vm0, %v11451_v7  ;;  %v14975_v23 = vsub.f32 1.0, %v14974_v31  ;;  %v14977_v38 = vsub.f32 1.0, %v14976_v10  ;;  %v14979_v2 = vsub.f32 1.0, %v14978_v4  ;;  %14993 = vst [vmem:[#allocation22_spill] sm:$0xff] %v11543_v21 }
 0x130   : > { %v11485_v54 = vmul.f32 %v11352_v29, %v14973_v27  ;;  %v8761_v61 = vpack.c.bf16 %v11460_v36, %v11444_v32  ;;  %2365 = vmatprep.mubr.f32.mxu1 %v14871_v14  ;;  %v8759_v32 = vpack.c.bf16 %v11480_v43, %v11475_v25  ;;  %v14986_v43 = vld [vmem:[#allocation29_spill] sm:$0xff]  ;;  %v15001_v25 = vsub.f32 1.0, %v10906_v57 }
 0x131   : > { %v11494_v30 = vmul.f32 %v11386_v56, %v14975_v23  ;;  %v11499_v52 = vmul.f32 %v11352_v29, %v14977_v38  ;;  %v11504_v27 = vmul.f32 %v11386_v56, %v14979_v2  ;;  %v14981_v23 = vld [vmem:[#allocation27_spill] sm:$0xff]  ;;  %v14984_v38 = vld [vmem:[#allocation28_spill] sm:$0xff]  ;;  %v15006_v57 = vld [vmem:[#allocation33_spill] sm:$0xff] }
 0x132   : > { %v14982_v31 = vsub.f32 1.0, %v14981_v23  ;;  %v14985_v18 = vsub.f32 1.0, %v14984_v38  ;;  %v11524_v2 = vld [vmem:[%s14520_s3 + $0x18] sm:$0xff]  ;;  %v14987_v23 = vsub.f32 1.0, %v14986_v43  ;;  %v14988_v38 = vld [vmem:[#allocation30_spill] sm:$0xff]  ;;  %v14994_v43 = vsub.f32 1.0, %v10841_v15 }
 0x133   : > { %14980 = vst [vmem:[#allocation20_spill] sm:$0xff] %v11504_v27  ;;  %8446 = vmatmul.mubr.msk.f32.gmra.mrb[46].mxu0 %vm1291_vm0, %v11524_v2  ;;  %v14989_v36 = vsub.f32 1.0, %v14988_v38  ;;  %v14996_v38 = vsub.f32 1.0, %v10869_v3  ;;  %8450 = vmatmul.mubr.msk.f32.gmra.mrb[46].mxu1 %vm1291_vm0, %v11524_v2  ;;  %v11585_v27 = vmul.f32 %v11352_v29, %v15001_v25  ;;  %v15002_v15 = vld [vmem:[#allocation32_spill] sm:$0xff] }
 0x134   : > { %v11514_v10 = vmul.f32 %v11352_v29, %v14982_v31  ;;  %v11519_v4 = vmul.f32 %v11446_v28, %v14985_v18  ;;  %v11533_v31 = vmul.f32 %v11467_v55, %v14987_v23  ;;  %2436 = vmatprep.mubr.f32.mxu0 %v14871_v14  ;;  %v11551_v23 = vmul.f32 %v11446_v28, %v14994_v43 }
 0x135   : > { %v11538_v18 = vmul.f32 %v11446_v28, %v14989_v36  ;;  %v11556_v36 = vmul.f32 %v11467_v55, %v14996_v38  ;;  %v14999_v43 = vsub.f32 1.0, %v10895_v41  ;;  %v15000_v38 = vsub.f32 1.0, %v10902_v26  ;;  %2525 = vmatprep.mubr.f32.mxu1 %v14871_v14 }
 0x136   : > { %14983 = vst [vmem:[#allocation16_spill] sm:$0xff] %v11514_v10  ;;  %14995 = vst [vmem:[#allocation27_spill] sm:$0xff] %v11551_v23  ;;  %v15003_v41 = vsub.f32 1.0, %v15002_v15  ;;  %v15007_v23 = vsub.f32 1.0, %v15006_v57  ;;  %v15008_v15 = vld [vmem:[#allocation34_spill] sm:$0xff]  ;;  %v15013_v10 = vpack.c.bf16 %v11340_v40, %v11317_v12  ;;  %v15019_v57 = vld [vmem:[#allocation9_spill] sm:$0xff] }
 0x137   : > { %14990 = vst [vmem:[#allocation21_spill] sm:$0xff] %v11538_v18  ;;  %14997 = vst [vmem:[#allocation28_spill] sm:$0xff] %v11556_v36  ;;  %v11572_v3 = vmul.f32 %v11467_v55, %v14999_v43  ;;  %v11577_v16 = vmul.f32 %v11386_v56, %v15000_v38  ;;  %v15004_v18 = vld [vmem:[#allocation5_spill] sm:$0xff]  ;;  %8451 = vmatmul.mubr.msk.f32.vlgmr.msra.gmra.mrb[48].mxu0 %vm1291_vm0, %v11327_v9  ;;  %v15009_v36 = vsub.f32 1.0, %v15008_v15  ;;  %8455 = vmatmul.mubr.msk.f32.vlgmr.msra.gmra.mrb[48].mxu1 %vm1291_vm0, %v11327_v9  ;;  %v15017_v40 = vld [vmem:[#allocation6_spill] sm:$0xff] }
 0x138   : > { %v11590_v43 = vmul.f32 %v11386_v56, %v15003_v41  ;;  %v15005_v26 = vsub.f32 1.0, %v15004_v18  ;;  %v11604_v25 = vmul.f32 %v11386_v56, %v15007_v23  ;;  %v15010_v18 = vld [vmem:[#allocation35_spill] sm:$0xff]  ;;  %8748 = vmatpush1.bf16.msra.mxu0 %v15013_v10  ;;  %2442 = vmatprep.mubr.f32.mxu0 %v14871_v14  ;;  %v15014_v15 = vld [vmem:[#allocation17_spill] sm:$0xff]  ;;  %v15018_v10 = vsub.f32 1.0, %v15017_v40 }
 0x139   : > { %v11609_v41 = vmul.f32 %v11352_v29, %v15009_v36  ;;  %v15011_v21 = vsub.f32 1.0, %v15010_v18  ;;  %v15015_v36 = vsub.f32 1.0, %v15014_v15  ;;  %v15020_v15 = vsub.f32 1.0, %v15019_v57  ;;  %2531 = vmatprep.mubr.f32.mxu1 %v14871_v14 }
 0x13a   : > { %v11595_v38 = vmul.f32 %v11352_v29, %v15005_v26  ;;  %v11639_v18 = vmul.f32 %v11446_v28, %v15018_v10  ;;  %v15021_v23 = vpack.c.bf16 %v11359_v58, %v11345_v8  ;;  %v15025_v10 = vld [vmem:[#allocation10_spill] sm:$0xff]  ;;  %v15027_v58 = vld [vmem:[#allocation8_spill] sm:$0xff] }
 0x13b   : > { %v11614_v26 = vmul.f32 %v11386_v56, %v15011_v21  ;;  %v11627_v45 = vmul.f32 %v11352_v29, %v15015_v36  ;;  %v15016_v21 = vpack.c.bf16 %v11400_v60, %v11379_v46  ;;  %v11644_v36 = vmul.f32 %v11467_v55, %v15020_v15  ;;  %v15022_v60 = vld [vmem:[#allocation7_spill] sm:$0xff]  ;;  %8452 = vmatmul.mubr.msk.f32.gmra.mrb[50].mxu0 %vm1291_vm0, %v11391_v59 }
 0x13c   : > { %8756 = vmatpush1.bf16.msra.mxu1 %v15021_v23  ;;  %v15026_v12 = vsub.f32 1.0, %v15025_v10  ;;  %v15028_v23 = vsub.f32 1.0, %v15027_v58  ;;  %2448 = vmatprep.mubr.f32.mxu0 %v14871_v14  ;;  %v15033_v58 = vld [vmem:[#allocation18_spill] sm:$0xff] }
 0x13d   : > { %15012 = vst [vmem:[#allocation29_spill] sm:$0xff] %v11614_v26  ;;  %8750 = vmatprep.subr.bf16.mxu0 %v15016_v21  ;;  %v15023_v21 = vsub.f32 1.0, %v15022_v60  ;;  %8758 = vmatprep.subr.bf16.mxu1 %v8757_v35  ;;  %v15029_v60 = vld [vmem:[#allocation11_spill] sm:$0xff]  ;;  %v15034_v26 = vsub.f32 1.0, %v15033_v58 }
 0x13e   : > { %v11660_v57 = vmul.f32 %v11467_v55, %v15026_v12  ;;  %v11669_v15 = vmul.f32 %v11446_v28, %v15028_v23  ;;  %8752 = vmatpush1.bf16.msra.mxu0 %v8751_v20  ;;  %v15031_v12 = vld [vmem:[#allocation12_spill] sm:$0xff]  ;;  %8456 = vmatmul.mubr.msk.f32.gmra.mrb[50].mxu1 %vm1291_vm0, %v11391_v59 }
 0x13f   : > { %v11655_v40 = vmul.f32 %v11446_v28, %v15023_v21  ;;  %v15030_v21 = vsub.f32 1.0, %v15029_v60  ;;  %v15032_v10 = vsub.f32 1.0, %v15031_v12  ;;  %v11687_v23 = vmul.f32 %v11467_v55, %v15034_v26  ;;  %8762 = vmatprep.subr.bf16.mxu0 %v8761_v61  ;;  %v15035_v60 = vld [vmem:[#allocation23_spill] sm:$0xff]  ;;  %v15037_v12 = vld [vmem:[#allocation13_spill] sm:$0xff]  ;;  %2537 = vmatprep.mubr.f32.mxu1 %v14871_v14 }
 0x140   : > { %8760 = vmatpush1.bf16.msra.mxu1 %v8759_v32  ;;  %v15039_v61 = vsub.f32 1.0, %v11078_v11  ;;  %8453 = vmatmul.mubr.msk.f32.gmra.mrb[52].mxu0 %vm1291_vm0, %v11451_v7  ;;  %v15042_v11 = vsub.f32 1.0, %v11093_v24  ;;  %v15045_v24 = vsub.f32 1.0, %v11125_v5  ;;  %v15048_v5 = vsub.f32 1.0, %v11148_v51 }
 0x141   : > { %15024 = vst [vmem:[#allocation30_spill] sm:$0xff] %v11655_v40  ;;  %v11674_v46 = vmul.f32 %v11467_v55, %v15030_v21  ;;  %v11682_v8 = vmul.f32 %v11446_v28, %v15032_v10  ;;  %v15036_v21 = vsub.f32 1.0, %v15035_v60  ;;  %v15038_v10 = vsub.f32 1.0, %v15037_v12  ;;  %2454 = vmatprep.mubr.f32.mxu0 %v14871_v14 }
 0x142   : > { %v11709_v58 = vmul.f32 %v11386_v56, %v15039_v61  ;;  %v15040_v60 = vsub.f32 1.0, %v11082_v1  ;;  %v15041_v12 = vpack.c.bf16 %v11485_v54, %v11465_v37  ;;  %v15043_v1 = vsub.f32 1.0, %v11108_v44  ;;  %8457 = vmatmul.mubr.msk.f32.gmra.mrb[52].mxu1 %vm1291_vm0, %v11451_v7 }
 0x143   : > { %v11696_v35 = vmul.f32 %v11386_v56, %v15036_v21  ;;  %v11701_v40 = vmul.f32 %v11352_v29, %v15038_v10  ;;  %v11726_v10 = vmul.f32 %v11386_v56, %v15042_v11  ;;  %v15044_v54 = vsub.f32 1.0, %v11113_v34  ;;  %2543 = vmatprep.mubr.f32.mxu1 %v14871_v14 }
 0x144   : > { %v11714_v21 = vmul.f32 %v11352_v29, %v15040_v60  ;;  %8770 = vmatprep.subr.bf16.mxu1 %v15041_v12  ;;  %v11731_v61 = vmul.f32 %v11352_v29, %v15043_v1  ;;  %v11744_v12 = vmul.f32 %v11352_v29, %v15045_v24  ;;  %v15046_v44 = vsub.f32 1.0, %v11137_v33  ;;  %8454 = vmatmul.mubr.msk.f32.gmra.mrb[54].mxu0 %vm1291_vm0, %v11524_v2 }
 0x145   : > { %v11739_v60 = vmul.f32 %v11386_v56, %v15044_v54  ;;  %v15047_v34 = vsub.f32 1.0, %v11144_v22  ;;  %v11763_v24 = vmul.f32 %v11446_v28, %v15048_v5  ;;  %v15049_v33 = vsub.f32 1.0, %v11164_v50  ;;  %2614 = vmatprep.mubr.f32.mxu0 %v14871_v14 }
 0x146   : > { %v11749_v11 = vmul.f32 %v11446_v28, %v15046_v44  ;;  %v15050_v22 = vsub.f32 1.0, %v11177_v39  ;;  %v15051_v51 = vsub.f32 1.0, %v11190_v6  ;;  %v15052_v50 = vsub.f32 1.0, %v11216_v13  ;;  %8458 = vmatmul.mubr.msk.f32.gmra.mrb[54].mxu1 %vm1291_vm0, %v11524_v2 }
 0x147   : > { %v11758_v54 = vmul.f32 %v11467_v55, %v15047_v34  ;;  %v11768_v44 = vmul.f32 %v11467_v55, %v15049_v33  ;;  %v15055_v1 = vsub.f32 1.0, %v11249_v53  ;;  %v15058_v53 = vld [vmem:[#allocation24_spill] sm:$0xff]  ;;  %2703 = vmatprep.mubr.f32.mxu1 %v14871_v14  ;;  %v15071_v32 = vpack.c.bf16 %v11499_v52, %v11494_v30 }
 0x148   : > { %v11776_v34 = vmul.f32 %v11446_v28, %v15050_v22  ;;  %v11781_v5 = vmul.f32 %v11467_v55, %v15051_v51  ;;  %v11786_v33 = vmul.f32 %v11446_v28, %v15052_v50  ;;  %v15053_v22 = vsub.f32 1.0, %v11220_v17  ;;  %8459 = vmatmul.mubr.msk.f32.vlgmr.msra.gmra.mrb[56].mxu0 %vm1291_vm0, %v11327_v9 }
 0x149   : > { %v15054_v51 = vsub.f32 1.0, %v11233_v62  ;;  %v11810_v37 = vmul.f32 %v11352_v29, %v15055_v1  ;;  %v15056_v17 = vsub.f32 1.0, %v11254_v19  ;;  %v15057_v62 = vsub.f32 1.0, %v11258_v47  ;;  %8764 = vmatpush1.bf16.msra.mxu0 %v15071_v32  ;;  %2620 = vmatprep.mubr.f32.mxu0 %v14871_v14  ;;  %v15084_v32 = vld [vmem:[#allocation22_spill] sm:$0xff] }
 0x14a   : > { %v11797_v6 = vmul.f32 %v11467_v55, %v15053_v22  ;;  %v15059_v39 = vsub.f32 1.0, %v15058_v53  ;;  %v15060_v19 = vsub.f32 1.0, %v11290_v48  ;;  %v15061_v47 = vsub.f32 1.0, %v11295_v63  ;;  %8463 = vmatmul.mubr.msk.f32.vlgmr.msra.gmra.mrb[56].mxu1 %vm1291_vm0, %v11327_v9 }
 0x14b   : > { %v11802_v13 = vmul.f32 %v11386_v56, %v15054_v51  ;;  %v11815_v22 = vmul.f32 %v11386_v56, %v15056_v17  ;;  %v11820_v51 = vmul.f32 %v11352_v29, %v15057_v62  ;;  %v15076_v30 = vpack.c.bf16 %v11533_v31, %v11519_v4  ;;  %2709 = vmatprep.mubr.f32.mxu1 %v14871_v14  ;;  %v15082_v31 = vld [vmem:[#allocation37_spill] sm:$0xff] }
 0x14c   : > { %v11829_v1 = vmul.f32 %v11386_v56, %v15059_v39  ;;  %v11834_v17 = vmul.f32 %v11352_v29, %v15060_v19  ;;  %v11839_v62 = vmul.f32 %v11386_v56, %v15061_v47  ;;  %v15062_v39 = vsub.f32 1.0, %v11310_v49  ;;  %v15064_v47 = vld [vmem:[#allocation14_spill] sm:$0xff]  ;;  %v15066_v49 = vld [vmem:[#allocation19_spill] sm:$0xff]  ;;  %8460 = vmatmul.mubr.msk.f32.gmra.mrb[58].mxu0 %vm1291_vm0, %v11391_v59 }
 0x14d   : > { %v15063_v19 = vsub.f32 1.0, %v11322_v42  ;;  %v15065_v50 = vsub.f32 1.0, %v15064_v47  ;;  %v15067_v26 = vsub.f32 1.0, %v15066_v49  ;;  %v15069_v42 = vld [vmem:[#allocation25_spill] sm:$0xff]  ;;  %v15072_v47 = vld [vmem:[#allocation15_spill] sm:$0xff]  ;;  %8766 = vmatprep.subr.bf16.mxu0 %v15076_v30  ;;  %v15083_v30 = vsub.f32 1.0, %v15082_v31  ;;  %2626 = vmatprep.mubr.f32.mxu0 %v14871_v14 }
 0x14e   : > { %v11849_v48 = vmul.f32 %v11352_v29, %v15062_v39  ;;  %v15070_v39 = vsub.f32 1.0, %v15069_v42  ;;  %v15073_v56 = vsub.f32 1.0, %v15072_v47  ;;  %8464 = vmatmul.mubr.msk.f32.gmra.mrb[58].mxu1 %vm1291_vm0, %v11391_v59 }
 0x14f   : > { %v11854_v63 = vmul.f32 %v11446_v28, %v15063_v19  ;;  %v11863_v53 = vmul.f32 %v11467_v55, %v15065_v50  ;;  %v11868_v29 = vmul.f32 %v11446_v28, %v15067_v26  ;;  %v15074_v26 = vld [vmem:[#allocation26_spill] sm:$0xff]  ;;  %v11914_v52 = vmul.f32 %v11467_v55, %v15083_v30  ;;  %2715 = vmatprep.mubr.f32.mxu1 %v14871_v14 }
 0x150   : > { %v11873_v19 = vmul.f32 %v11467_v55, %v15070_v39  ;;  %v11884_v49 = vmul.f32 %v11446_v28, %v15073_v56  ;;  %v15075_v20 = vsub.f32 1.0, %v15074_v26  ;;  %v15077_v56 = vld [vmem:[#allocation36_spill] sm:$0xff]  ;;  %8461 = vmatmul.mubr.msk.f32.gmra.mrb[60].mxu0 %vm1291_vm0, %v11451_v7 }
 0x151   : > { %15068 = vst [vmem:[#allocation31_spill] sm:$0xff] %v11868_v29  ;;  %v15078_v39 = vsub.f32 1.0, %v15077_v56  ;;  %v15080_v26 = vld [vmem:[#allocation20_spill] sm:$0xff]  ;;  %v15085_v29 = vld [vmem:[#allocation21_spill] sm:$0xff]  ;;  %2632 = vmatprep.mubr.f32.mxu0 %v14871_v14 }
 0x152   : > { %v11889_v42 = vmul.f32 %v11467_v55, %v15075_v20  ;;  %v15079_v20 = vld [vmem:[#allocation16_spill] sm:$0xff]  ;;  %v15086_v56 = vpack.c.bf16 %v15084_v32, %v15085_v29  ;;  %v15090_v55 = vpack.c.bf16 %v11585_v27, %v11577_v16  ;;  %v15091_v29 = vpack.c.bf16 %v11572_v3, %v11561_v0  ;;  %8465 = vmatmul.mubr.msk.f32.gmra.mrb[60].mxu1 %vm1291_vm0, %v11451_v7  ;;  %v15095_v3 = vld [vmem:[#allocation29_spill] sm:$0xff] }
 0x153   : > { %v11903_v47 = vmul.f32 %v11446_v28, %v15078_v39  ;;  %v15081_v50 = vpack.c.bf16 %v15079_v20, %v15080_v26  ;;  %v15087_v28 = vld [vmem:[#allocation28_spill] sm:$0xff]  ;;  %v15088_v39 = vld [vmem:[#allocation27_spill] sm:$0xff]  ;;  %v15092_v32 = vpack.c.bf16 %v11595_v38, %v11590_v43  ;;  %2721 = vmatprep.mubr.f32.mxu1 %v14871_v14  ;;  %v15093_v27 = vpack.c.bf16 %v11609_v41, %v11604_v25  ;;  %v15097_v43 = vld [vmem:[#allocation30_spill] sm:$0xff] }
 0x154   : > { %v8815_v4 = vpack.c.bf16 %v11889_v42, %v11884_v49  ;;  %8462 = vmatmul.mubr.msk.f32.gmra.mrb[62].mxu0 %vm1291_vm0, %v11524_v2  ;;  %v15094_v0 = vpack.c.bf16 %v11644_v36, %v11639_v18  ;;  %v15096_v16 = vpack.c.bf16 %v11627_v45, %v15095_v3  ;;  %v15098_v38 = vpack.c.bf16 %v11660_v57, %v15097_v43 }
 0x155   : > { %8772 = vmatpush1.bf16.msra.mxu1 %v15081_v50  ;;  %v15089_v50 = vpack.c.bf16 %v15087_v28, %v15088_v39  ;;  %v8823_v20 = vpack.c.bf16 %v11914_v52, %v11903_v47  ;;  %2792 = vmatprep.mubr.f32.mxu0 %v14871_v14  ;;  %v15099_v25 = vpack.c.bf16 %v11674_v46, %v11669_v15 }
 0x156   : > { %8774 = vmatprep.subr.bf16.mxu1 %v15086_v56  ;;  %8466 = vmatmul.mubr.msk.f32.gmra.mrb[62].mxu1 %vm1291_vm0, %v11524_v2  ;;  %v15100_v45 = vpack.c.bf16 %v11701_v40, %v11696_v35  ;;  %v15101_v41 = vpack.c.bf16 %v11687_v23, %v11682_v8  ;;  %v15102_v18 = vpack.c.bf16 %v11714_v21, %v11709_v58 }
 0x157   : > { %8768 = vmatpush1.bf16.msra.mxu0 %v15089_v50  ;;  %2881 = vmatprep.mubr.f32.mxu1 %v14871_v14  ;;  %v15103_v36 = vpack.c.bf16 %v11731_v61, %v11726_v10  ;;  %v15104_v46 = vpack.c.bf16 %v11758_v54, %v11749_v11  ;;  %v15105_v40 = vpack.c.bf16 %v11744_v12, %v11739_v60 }
 0x158   : > { %8778 = vmatprep.subr.bf16.mxu0 %v15090_v55  ;;  %v15106_v57 = vpack.c.bf16 %v11768_v44, %v11763_v24  ;;  %v15107_v8 = vpack.c.bf16 %v11781_v5, %v11776_v34  ;;  %v15108_v15 = vpack.c.bf16 %v11810_v37, %v11802_v13  ;;  %v15109_v35 = vpack.c.bf16 %v11797_v6, %v11786_v33  ;;  %v15114_v61 = vld [vmem:[#allocation31_spill] sm:$0xff]  ;;  %v12118_v44 = vpop.permute.xlu0 %3447 }
 0x159   : > { %8776 = vmatpush1.bf16.msra.mxu1 %v15091_v29  ;;  %v15110_v23 = vpack.c.bf16 %v11820_v51, %v11815_v22  ;;  %v15111_v58 = vpack.c.bf16 %v11834_v17, %v11829_v1  ;;  %v15112_v21 = vpack.c.bf16 %v11863_v53, %v11854_v63  ;;  %v15113_v10 = vpack.c.bf16 %v11849_v48, %v11839_v62 }
 0x15a   : > { %8786 = vmatprep.subr.bf16.mxu1 %v15092_v32  ;;  %8467 = vmatmul.mubr.msk.f32.vlgmr.msra.gmra.mrb[64].mxu0 %vm1291_vm0, %v11327_v9  ;;  %v15115_v37 = vpack.c.bf16 %v11873_v19, %v15114_v61 }
 0x15b   : > { %8780 = vmatpush1.bf16.msra.mxu0 %v15093_v27  ;;  %2798 = vmatprep.mubr.f32.mxu0 %v14871_v14 }
 0x15c   : > { %8471 = vmatmul.mubr.msk.f32.vlgmr.msra.gmra.mrb[64].mxu1 %vm1291_vm0, %v11327_v9  ;;  %8782 = vmatprep.subr.bf16.mxu0 %v15094_v0 }
 0x15d   : > { %8788 = vmatpush1.bf16.msra.mxu1 %v15096_v16  ;;  %2887 = vmatprep.mubr.f32.mxu1 %v14871_v14 }
 0x15e   : > { %8790 = vmatprep.subr.bf16.mxu1 %v15098_v38  ;;  %8468 = vmatmul.mubr.msk.f32.gmra.mrb[66].mxu0 %vm1291_vm0, %v11391_v59 }
 0x15f   : > { %8784 = vmatpush1.bf16.msra.mxu0 %v15099_v25  ;;  %2804 = vmatprep.mubr.f32.mxu0 %v14871_v14 }
 0x160   : > { %8472 = vmatmul.mubr.msk.f32.gmra.mrb[66].mxu1 %vm1291_vm0, %v11391_v59  ;;  %8794 = vmatprep.subr.bf16.mxu0 %v15100_v45 }
 0x161   : > { %8792 = vmatpush1.bf16.msra.mxu1 %v15101_v41  ;;  %2893 = vmatprep.mubr.f32.mxu1 %v14871_v14 }
 0x162   : > { %8802 = vmatprep.subr.bf16.mxu1 %v15102_v18  ;;  %8469 = vmatmul.mubr.msk.f32.gmra.mrb[68].mxu0 %vm1291_vm0, %v11451_v7 }
 0x163   : > { %2810 = vmatprep.mubr.f32.mxu0 %v14871_v14 }
 0x164   : > { %8473 = vmatmul.mubr.msk.f32.gmra.mrb[68].mxu1 %vm1291_vm0, %v11451_v7 }
 0x165   : > { %2899 = vmatprep.mubr.f32.mxu1 %v14871_v14 }
 0x166   : > { %8470 = vmatmul.mubr.msk.f32.gmra.mrb[70].mxu0 %vm1291_vm0, %v11524_v2 }
 0x167   : > { %2970 = vmatprep.mubr.f32.mxu0 %v14871_v14 }
 0x168   : > { %8474 = vmatmul.mubr.msk.f32.gmra.mrb[70].mxu1 %vm1291_vm0, %v11524_v2 }
 0x169   : > { %3059 = vmatprep.mubr.f32.mxu1 %v14871_v14 }
 0x16a   : > { %8475 = vmatmul.mubr.msk.f32.vlgmr.msra.gmra.mrb[72].mxu0 %vm1291_vm0, %v11327_v9 }
 0x16b   : > { %8796 = vmatpush1.bf16.msra.mxu0 %v15103_v36  ;;  %2976 = vmatprep.mubr.f32.mxu0 %v14871_v14 }
 0x16c   : > { %8479 = vmatmul.mubr.msk.f32.vlgmr.msra.gmra.mrb[72].mxu1 %vm1291_vm0, %v11327_v9  ;;  %8798 = vmatprep.subr.bf16.mxu0 %v15104_v46 }
 0x16d   : > { %8804 = vmatpush1.bf16.msra.mxu1 %v15105_v40  ;;  %3065 = vmatprep.mubr.f32.mxu1 %v14871_v14 }
 0x16e   : > { %8806 = vmatprep.subr.bf16.mxu1 %v15106_v57  ;;  %8476 = vmatmul.mubr.msk.f32.gmra.mrb[74].mxu0 %vm1291_vm0, %v11391_v59 }
 0x16f   : > { %8800 = vmatpush1.bf16.msra.mxu0 %v15107_v8  ;;  %2982 = vmatprep.mubr.f32.mxu0 %v14871_v14 }
 0x170   : > { %8480 = vmatmul.mubr.msk.f32.gmra.mrb[74].mxu1 %vm1291_vm0, %v11391_v59  ;;  %8810 = vmatprep.subr.bf16.mxu0 %v15108_v15 }
 0x171   : > { %8808 = vmatpush1.bf16.msra.mxu1 %v15109_v35  ;;  %3071 = vmatprep.mubr.f32.mxu1 %v14871_v14 }
 0x172   : > { %8818 = vmatprep.subr.bf16.mxu1 %v15110_v23  ;;  %8477 = vmatmul.mubr.msk.f32.gmra.mrb[76].mxu0 %vm1291_vm0, %v11451_v7 }
 0x173   : > { %2988 = vmatprep.mubr.f32.mxu0 %v14871_v14 }
 0x174   : > { %8481 = vmatmul.mubr.msk.f32.gmra.mrb[76].mxu1 %vm1291_vm0, %v11451_v7 }
 0x175   : > { %3077 = vmatprep.mubr.f32.mxu1 %v14871_v14 }
 0x176   : > { %8478 = vmatmul.mubr.msk.f32.gmra.mrb[78].mxu0 %vm1291_vm0, %v11524_v2 }
 0x177   : > { %3148 = vmatprep.mubr.f32.mxu0 %v14871_v14 }
 0x178   : > { %8482 = vmatmul.mubr.msk.f32.gmra.mrb[78].mxu1 %vm1291_vm0, %v11524_v2 }
 0x179   : > { %3237 = vmatprep.mubr.f32.mxu1 %v14871_v14 }
 0x17a   : > { %8483 = vmatmul.mubr.msk.f32.vlgmr.msra.gmra.mrb[80].mxu0 %vm1291_vm0, %v11327_v9 }
 0x17b   : > { %8812 = vmatpush1.bf16.msra.mxu0 %v15111_v58  ;;  %3154 = vmatprep.mubr.f32.mxu0 %v14871_v14 }
 0x17c   : > { %8487 = vmatmul.mubr.msk.f32.vlgmr.msra.gmra.mrb[80].mxu1 %vm1291_vm0, %v11327_v9  ;;  %8814 = vmatprep.subr.bf16.mxu0 %v15112_v21 }
 0x17d   : > { %8820 = vmatpush1.bf16.msra.mxu1 %v15113_v10  ;;  %3243 = vmatprep.mubr.f32.mxu1 %v14871_v14 }
 0x17e   : > { %8822 = vmatprep.subr.bf16.mxu1 %v15115_v37  ;;  %8484 = vmatmul.mubr.msk.f32.gmra.mrb[82].mxu0 %vm1291_vm0, %v11391_v59 }
 0x17f   : > { %8816 = vmatpush1.bf16.msra.mxu0 %v8815_v4  ;;  %3160 = vmatprep.mubr.f32.mxu0 %v14871_v14 }
 0x180   : > { %8488 = vmatmul.mubr.msk.f32.gmra.mrb[82].mxu1 %vm1291_vm0, %v11391_v59 }
 0x181   : > { %8824 = vmatpush1.bf16.msra.mxu1 %v8823_v20  ;;  %3249 = vmatprep.mubr.f32.mxu1 %v14871_v14 }
 0x182   : > { %8485 = vmatmul.mubr.msk.f32.gmra.mrb[84].mxu0 %vm1291_vm0, %v11451_v7 }
 0x183   : > { %3166 = vmatprep.mubr.f32.mxu0 %v14871_v14 }
 0x184   : > { %8489 = vmatmul.mubr.msk.f32.gmra.mrb[84].mxu1 %vm1291_vm0, %v11451_v7 }
 0x185   : > { %3255 = vmatprep.mubr.f32.mxu1 %v14871_v14 }
 0x186   : > { %8486 = vmatmul.mubr.msk.f32.gmra.mrb[86].mxu0 %vm1291_vm0, %v11524_v2 }
 0x187   : > { %3326 = vmatprep.mubr.f32.mxu0 %v14871_v14 }
 0x188   : > { %8490 = vmatmul.mubr.msk.f32.gmra.mrb[86].mxu1 %vm1291_vm0, %v11524_v2 }
 0x189   : > { %3415 = vmatprep.mubr.f32.mxu1 %v14871_v14 }
 0x18a   : > { %8491 = vmatmul.mubr.msk.f32.vlgmr.msra.gmra.mrb[88].mxu0 %vm1291_vm0, %v11327_v9 }
 0x18b   : > { %3332 = vmatprep.mubr.f32.mxu0 %v14871_v14 }
 0x18c   : > { %8495 = vmatmul.mubr.msk.f32.vlgmr.msra.gmra.mrb[88].mxu1 %vm1291_vm0, %v11327_v9  ;;  %v12113_v9 = vpop.permute.xlu1 %3442 }
 0x18d   : > { %3421 = vmatprep.mubr.f32.mxu1 %v14871_v14 }
 0x18e   : > { %8492 = vmatmul.mubr.msk.f32.gmra.mrb[90].mxu0 %vm1291_vm0, %v11391_v59 }
 0x18f   : > { %3338 = vmatprep.mubr.f32.mxu0 %v14871_v14 }
 0x190   : > { %8496 = vmatmul.mubr.msk.f32.gmra.mrb[90].mxu1 %vm1291_vm0, %v11391_v59  ;;  %v12122_v6 = vpop.permute.xlu1 %3452 }
 0x191   : > { %3427 = vmatprep.mubr.f32.mxu1 %v14871_v14 }
 0x192   : > { %8493 = vmatmul.mubr.msk.f32.gmra.mrb[92].mxu0 %vm1291_vm0, %v11451_v7 }
 0x193   : > { %3344 = vmatprep.mubr.f32.mxu0 %v14871_v14 }
 0x194   : > { %8497 = vmatmul.mubr.msk.f32.gmra.mrb[92].mxu1 %vm1291_vm0, %v11451_v7  ;;  %v12130_v52 = vpop.permute.xlu1 %3457 }
 0x195   : > { %3433 = vmatprep.mubr.f32.mxu1 %v14871_v14 }
 0x196   : > { %8494 = vmatmul.mubr.msk.f32.gmra.mrb[94].mxu0 %vm1291_vm0, %v11524_v2 }
 0x197   : > { %3930 = vmatprep.mubr.f32.mxu0 %v14871_v14 }
 0x198   : > { %8498 = vmatmul.mubr.msk.f32.gmra.mrb[94].mxu1 %vm1291_vm0, %v11524_v2 }
 0x199   : > { %4019 = vmatprep.mubr.f32.mxu1 %v14871_v14 }
 0x19a   : > { %v1370_v59 = vpop.f32.mrb[0].mxu0 }
 0x19b   : > { %v3460_v60 = vadd.f32 %v12113_v9, %v1370_v59  ;;  %v1372_v12 = vpop.f32.mrb[1].mxu0 }
 0x19c   : > { %v1459_v11 = vpop.f32.mrb[0].mxu1  ;;  %v3461_v7 = vadd.f32 %v12113_v9, %v1372_v12 }
 0x19d   : > { %9389 = vtanh.f32 %v3460_v60  ;;  %v3462_v54 = vadd.f32 %v12113_v9, %v1459_v11  ;;  %v1461_v24 = vpop.f32.mrb[1].mxu1 }
 0x19e   : > { %9391 = vtanh.f32 %v3461_v7  ;;  %v3463_v2 = vadd.f32 %v12113_v9, %v1461_v24  ;;  %v1376_v34 = vpop.f32.mrb[2].mxu0 }
 0x19f   : > { %9393 = vtanh.f32 %v3462_v54  ;;  %v3476_v5 = vadd.f32 %v12118_v44, %v1376_v34  ;;  %v1378_v33 = vpop.f32.mrb[3].mxu0 }
 0x1a0   : > { %9395 = vtanh.f32 %v3463_v2  ;;  %v1465_v13 = vpop.f32.mrb[2].mxu1  ;;  %v3477_v22 = vadd.f32 %v12118_v44, %v1378_v33 }
 0x1a1   : > { %9397 = vtanh.f32 %v3476_v5  ;;  %v3478_v51 = vadd.f32 %v12118_v44, %v1465_v13  ;;  %v1467_v1 = vpop.f32.mrb[3].mxu1 }
 0x1a2   : > { %9399 = vtanh.f32 %v3477_v22  ;;  %v3479_v17 = vadd.f32 %v12118_v44, %v1467_v1 }
 0x1a3   : > { %v1382_v62 = vpop.f32.mrb[4].mxu0  ;;  %9401 = vtanh.f32 %v3478_v51 }
 0x1a4   : > { %v3492_v53 = vadd.f32 %v12122_v6, %v1382_v62  ;;  %v1384_v48 = vpop.f32.mrb[5].mxu0  ;;  %9403 = vtanh.f32 %v3479_v17 }
 0x1a5   : > { %v1471_v63 = vpop.f32.mrb[4].mxu1  ;;  %v3493_v19 = vadd.f32 %v12122_v6, %v1384_v48 }
 0x1a6   : > { %9405 = vtanh.f32 %v3492_v53  ;;  %v3494_v49 = vadd.f32 %v12122_v6, %v1471_v63  ;;  %v1473_v42 = vpop.f32.mrb[5].mxu1 }
 0x1a7   : > { %9407 = vtanh.f32 %v3493_v19  ;;  %v3495_v47 = vadd.f32 %v12122_v6, %v1473_v42  ;;  %v1388_v26 = vpop.f32.mrb[6].mxu0  ;;  %v12133_v4 = vpop.eup %9389 }
 0x1a8   : > { %9409 = vtanh.f32 %v3494_v49  ;;  %v3508_v31 = vadd.f32 %v12130_v52, %v1388_v26  ;;  %v1390_v30 = vpop.f32.mrb[7].mxu0  ;;  %v12136_v56 = vpop.eup %9391 }
 0x1a9   : > { %9411 = vtanh.f32 %v3495_v47  ;;  %v1477_v28 = vpop.f32.mrb[6].mxu1  ;;  %v3509_v39 = vadd.f32 %v12130_v52, %v1390_v30  ;;  %v12139_v50 = vpop.eup %9393 }
 0x1aa   : > { %9413 = vtanh.f32 %v3508_v31  ;;  %v3510_v20 = vadd.f32 %v12130_v52, %v1477_v28  ;;  %v1479_v55 = vpop.f32.mrb[7].mxu1  ;;  %v12142_v29 = vpop.eup %9395 }
 0x1ab   : > { %9415 = vtanh.f32 %v3509_v39  ;;  %v3511_v32 = vadd.f32 %v12130_v52, %v1479_v55  ;;  %v12145_v0 = vpop.eup %9397  ;;  %v12206_v39 = vld [vmem:[%s14520_s3 + $0x20] sm:$0xff] }
 0x1ac   : > { %v1548_v27 = vpop.f32.mrb[8].mxu0  ;;  %9417 = vtanh.f32 %v3510_v20  ;;  %v12148_v43 = vpop.eup %9399  ;;  %v8827_v45 = vpack.c.bf16 %v12145_v0, %v12133_v4 }
 0x1ad   : > { %v3464_v3 = vadd.f32 %v12113_v9, %v1548_v27  ;;  %v1550_v16 = vpop.f32.mrb[9].mxu0  ;;  %9419 = vtanh.f32 %v3511_v32  ;;  %v12153_v41 = vpop.eup %9401  ;;  %v8825_v46 = vpack.c.bf16 %v12148_v43, %v12136_v56 }
 0x1ae   : > { %v1637_v38 = vpop.f32.mrb[8].mxu1  ;;  %v3465_v25 = vadd.f32 %v12113_v9, %v1550_v16  ;;  %v12158_v40 = vpop.eup %9403  ;;  %v8835_v15 = vpack.c.bf16 %v12153_v41, %v12139_v50 }
 0x1af   : > { %9421 = vtanh.f32 %v3464_v3  ;;  %v3466_v18 = vadd.f32 %v12113_v9, %v1637_v38  ;;  %v1639_v36 = vpop.f32.mrb[9].mxu1  ;;  %8826 = vmatprep.subr.bf16.mxu0 %v8825_v46  ;;  %v8833_v21 = vpack.c.bf16 %v12158_v40, %v12142_v29  ;;  %v12226_v46 = vld [vmem:[%s14520_s3 + $0x28] sm:$0xff] }
 0x1b0   : > { %9423 = vtanh.f32 %v3465_v25  ;;  %v3467_v57 = vadd.f32 %v12113_v9, %v1639_v36  ;;  %v1554_v8 = vpop.f32.mrb[10].mxu0  ;;  %v12163_v35 = vpop.eup %9405  ;;  %8828 = vmatpush1.bf16.msra.mxu0 %v8827_v45 }
 0x1b1   : > { %9425 = vtanh.f32 %v3466_v18  ;;  %v3480_v23 = vadd.f32 %v12118_v44, %v1554_v8  ;;  %v1556_v58 = vpop.f32.mrb[11].mxu0  ;;  %v12168_v10 = vpop.eup %9407  ;;  %8834 = vmatprep.subr.bf16.mxu1 %v8833_v21 }
 0x1b2   : > { %9427 = vtanh.f32 %v3467_v57  ;;  %v1643_v61 = vpop.f32.mrb[10].mxu1  ;;  %v3481_v37 = vadd.f32 %v12118_v44, %v1556_v58  ;;  %v12171_v59 = vpop.eup %9409  ;;  %8836 = vmatpush1.bf16.msra.mxu1 %v8835_v15 }
 0x1b3   : > { %9429 = vtanh.f32 %v3480_v23  ;;  %v3482_v60 = vadd.f32 %v12118_v44, %v1643_v61  ;;  %v1645_v12 = vpop.f32.mrb[11].mxu1  ;;  %v12174_v11 = vpop.eup %9411 }
 0x1b4   : > { %9431 = vtanh.f32 %v3481_v37  ;;  %v3483_v7 = vadd.f32 %v12118_v44, %v1645_v12  ;;  %v1560_v54 = vpop.f32.mrb[12].mxu0  ;;  %v12177_v24 = vpop.eup %9413 }
 0x1b5   : > { %9433 = vtanh.f32 %v3482_v60  ;;  %v3496_v2 = vadd.f32 %v12122_v6, %v1560_v54  ;;  %v1562_v34 = vpop.f32.mrb[13].mxu0  ;;  %v12180_v5 = vpop.eup %9415  ;;  %v8831_v22 = vpack.c.bf16 %v12177_v24, %v12163_v35 }
 0x1b6   : > { %9435 = vtanh.f32 %v3483_v7  ;;  %v1649_v33 = vpop.f32.mrb[12].mxu1  ;;  %v3497_v13 = vadd.f32 %v12122_v6, %v1562_v34  ;;  %v12185_v51 = vpop.eup %9417  ;;  %v8829_v62 = vpack.c.bf16 %v12180_v5, %v12168_v10 }
 0x1b7   : > { %9437 = vtanh.f32 %v3496_v2  ;;  %v3498_v1 = vadd.f32 %v12122_v6, %v1649_v33  ;;  %v1651_v17 = vpop.f32.mrb[13].mxu1  ;;  %v12190_v53 = vpop.eup %9419  ;;  %v8839_v19 = vpack.c.bf16 %v12185_v51, %v12171_v59 }
 0x1b8   : > { %9439 = vtanh.f32 %v3497_v13  ;;  %v3499_v48 = vadd.f32 %v12122_v6, %v1651_v17  ;;  %v1566_v63 = vpop.f32.mrb[14].mxu0  ;;  %8830 = vmatprep.subr.bf16.mxu0 %v8829_v62  ;;  %v8837_v26 = vpack.c.bf16 %v12190_v53, %v12174_v11 }
 0x1b9   : > { %v12195_v49 = vpop.eup %9421  ;;  %9441 = vtanh.f32 %v3498_v1  ;;  %v3512_v42 = vadd.f32 %v12130_v52, %v1566_v63  ;;  %v1568_v47 = vpop.f32.mrb[15].mxu0  ;;  %8832 = vmatpush1.bf16.msra.mxu0 %v8831_v22  ;;  %v12257_v22 = vld [vmem:[%s14520_s3 + $0x30] sm:$0xff] }
 0x1ba   : > { %v12200_v31 = vpop.eup %9423  ;;  %9443 = vtanh.f32 %v3499_v48  ;;  %v1655_v30 = vpop.f32.mrb[14].mxu1  ;;  %v3513_v28 = vadd.f32 %v12130_v52, %v1568_v47  ;;  %8838 = vmatprep.subr.bf16.mxu1 %v8837_v26 }
 0x1bb   : > { %v12208_v20 = vpop.eup %9425  ;;  %9445 = vtanh.f32 %v3512_v42  ;;  %v3514_v55 = vadd.f32 %v12130_v52, %v1655_v30  ;;  %v1657_v32 = vpop.f32.mrb[15].mxu1  ;;  %8840 = vmatpush1.bf16.msra.mxu1 %v8839_v19 }
 0x1bc   : > { %v12211_v27 = vpop.eup %9427  ;;  %9447 = vtanh.f32 %v3513_v28  ;;  %v3515_v3 = vadd.f32 %v12130_v52, %v1657_v32  ;;  %v1726_v16 = vpop.f32.mrb[16].mxu0  ;;  %8507 = vmatmul.mubr.msk.f32.vlgmr.msra.gmra.mrb[96].mxu0 %vm1291_vm0, %v12206_v39  ;;  %v12280_v32 = vld [vmem:[%s14520_s3 + $0x38] sm:$0xff] }
 0x1bd   : > { %v12214_v38 = vpop.eup %9429  ;;  %9449 = vtanh.f32 %v3514_v55  ;;  %v3468_v25 = vadd.f32 %v12113_v9, %v1726_v16  ;;  %v1728_v45 = vpop.f32.mrb[17].mxu0  ;;  %3936 = vmatprep.mubr.f32.mxu0 %v14871_v14 }
 0x1be   : > { %v12219_v18 = vpop.eup %9431  ;;  %9451 = vtanh.f32 %v3515_v3  ;;  %v3469_v36 = vadd.f32 %v12113_v9, %v1728_v45  ;;  %v8843_v57 = vpack.c.bf16 %v12214_v38, %v12195_v49  ;;  %8511 = vmatmul.mubr.msk.f32.vlgmr.msra.gmra.mrb[96].mxu1 %vm1291_vm0, %v12206_v39 }
 0x1bf   : > { %v12230_v8 = vpop.eup %9433  ;;  %v1815_v15 = vpop.f32.mrb[16].mxu1  ;;  %v8841_v23 = vpack.c.bf16 %v12219_v18, %v12200_v31  ;;  %9453 = vtanh.f32 %v3468_v25  ;;  %4025 = vmatprep.mubr.f32.mxu1 %v14871_v14 }
 0x1c0   : > { %v12236_v58 = vpop.eup %9435  ;;  %v3470_v21 = vadd.f32 %v12113_v9, %v1815_v15  ;;  %v1817_v61 = vpop.f32.mrb[17].mxu1  ;;  %v8851_v60 = vpack.c.bf16 %v12230_v8, %v12208_v20  ;;  %9455 = vtanh.f32 %v3469_v36  ;;  %8508 = vmatmul.mubr.msk.f32.gmra.mrb[98].mxu0 %vm1291_vm0, %v12226_v46 }
 0x1c1   : > { %v1732_v37 = vpop.f32.mrb[18].mxu0  ;;  %v12242_v12 = vpop.eup %9437  ;;  %v3471_v7 = vadd.f32 %v12113_v9, %v1817_v61  ;;  %8842 = vmatprep.subr.bf16.mxu0 %v8841_v23  ;;  %v8849_v34 = vpack.c.bf16 %v12236_v58, %v12211_v27  ;;  %3942 = vmatprep.mubr.f32.mxu0 %v14871_v14 }
 0x1c2   : > { %v3484_v54 = vadd.f32 %v12118_v44, %v1732_v37  ;;  %v1734_v2 = vpop.f32.mrb[19].mxu0  ;;  %v12250_v33 = vpop.eup %9439  ;;  %9457 = vtanh.f32 %v3470_v21  ;;  %8844 = vmatpush1.bf16.msra.mxu0 %v8843_v57  ;;  %8512 = vmatmul.mubr.msk.f32.gmra.mrb[98].mxu1 %vm1291_vm0, %v12226_v46 }
 0x1c3   : > { %v3485_v13 = vadd.f32 %v12118_v44, %v1734_v2  ;;  %v12259_v1 = vpop.eup %9441  ;;  %9459 = vtanh.f32 %v3471_v7  ;;  %v1821_v17 = vpop.f32.mrb[18].mxu1  ;;  %8850 = vmatprep.subr.bf16.mxu1 %v8849_v34  ;;  %4031 = vmatprep.mubr.f32.mxu1 %v14871_v14 }
 0x1c4   : > { %v12263_v62 = vpop.eup %9443  ;;  %9461 = vtanh.f32 %v3484_v54  ;;  %v3486_v48 = vadd.f32 %v12118_v44, %v1821_v17  ;;  %v1823_v63 = vpop.f32.mrb[19].mxu1  ;;  %8852 = vmatpush1.bf16.msra.mxu1 %v8851_v60  ;;  %8509 = vmatmul.mubr.msk.f32.gmra.mrb[100].mxu0 %vm1291_vm0, %v12257_v22 }
 0x1c5   : > { %v1738_v19 = vpop.f32.mrb[20].mxu0  ;;  %v12267_v42 = vpop.eup %9445  ;;  %9463 = vtanh.f32 %v3485_v13  ;;  %v3487_v47 = vadd.f32 %v12118_v44, %v1823_v63  ;;  %3948 = vmatprep.mubr.f32.mxu0 %v14871_v14 }
 0x1c6   : > { %v3500_v26 = vadd.f32 %v12122_v6, %v1738_v19  ;;  %v1740_v30 = vpop.f32.mrb[21].mxu0  ;;  %v12273_v28 = vpop.eup %9447  ;;  %9465 = vtanh.f32 %v3486_v48  ;;  %v8847_v3 = vpack.c.bf16 %v12267_v42, %v12242_v12  ;;  %8513 = vmatmul.mubr.msk.f32.gmra.mrb[100].mxu1 %vm1291_vm0, %v12257_v22 }
 0x1c7   : > { %v3501_v55 = vadd.f32 %v12122_v6, %v1740_v30  ;;  %v12284_v16 = vpop.eup %9449  ;;  %9467 = vtanh.f32 %v3487_v47  ;;  %v1827_v25 = vpop.f32.mrb[20].mxu1  ;;  %v8845_v45 = vpack.c.bf16 %v12273_v28, %v12250_v33  ;;  %4037 = vmatprep.mubr.f32.mxu1 %v14871_v14 }
 0x1c8   : > { %v12290_v36 = vpop.eup %9451  ;;  %9469 = vtanh.f32 %v3500_v26  ;;  %v3502_v57 = vadd.f32 %v12122_v6, %v1827_v25  ;;  %v1829_v15 = vpop.f32.mrb[21].mxu1  ;;  %v8855_v23 = vpack.c.bf16 %v12284_v16, %v12259_v1  ;;  %8510 = vmatmul.mubr.msk.f32.gmra.mrb[102].mxu0 %vm1291_vm0, %v12280_v32 }
 0x1c9   : > { %9471 = vtanh.f32 %v3501_v55  ;;  %v3503_v21 = vadd.f32 %v12122_v6, %v1829_v15  ;;  %v1744_v61 = vpop.f32.mrb[22].mxu0  ;;  %8846 = vmatprep.subr.bf16.mxu0 %v8845_v45  ;;  %v8853_v37 = vpack.c.bf16 %v12290_v36, %v12263_v62  ;;  %v12301_v60 = vpop.eup %9453  ;;  %4108 = vmatprep.mubr.f32.mxu0 %v14871_v14 }
 0x1ca   : > { %9473 = vtanh.f32 %v3502_v57  ;;  %v3516_v7 = vadd.f32 %v12130_v52, %v1744_v61  ;;  %v1746_v54 = vpop.f32.mrb[23].mxu0  ;;  %8848 = vmatpush1.bf16.msra.mxu0 %v8847_v3  ;;  %v12305_v2 = vpop.eup %9455  ;;  %8514 = vmatmul.mubr.msk.f32.gmra.mrb[102].mxu1 %vm1291_vm0, %v12280_v32 }
 0x1cb   : > { %9475 = vtanh.f32 %v3503_v21  ;;  %v1833_v34 = vpop.f32.mrb[22].mxu1  ;;  %v3517_v13 = vadd.f32 %v12130_v52, %v1746_v54  ;;  %8854 = vmatprep.subr.bf16.mxu1 %v8853_v37  ;;  %4197 = vmatprep.mubr.f32.mxu1 %v14871_v14 }
 0x1cc   : > { %v12310_v17 = vpop.eup %9457  ;;  %9477 = vtanh.f32 %v3516_v7  ;;  %v3518_v48 = vadd.f32 %v12130_v52, %v1833_v34  ;;  %v1835_v63 = vpop.f32.mrb[23].mxu1  ;;  %8856 = vmatpush1.bf16.msra.mxu1 %v8855_v23 }
 0x1cd   : > { %v12314_v19 = vpop.eup %9459  ;;  %9479 = vtanh.f32 %v3517_v13  ;;  %v3519_v47 = vadd.f32 %v12130_v52, %v1835_v63  ;;  %8515 = vmatmul.mubr.msk.f32.vlgmr.msra.gmra.mrb[104].mxu0 %vm1291_vm0, %v12206_v39 }
 0x1ce   : > { %v12319_v26 = vpop.eup %9461  ;;  %9481 = vtanh.f32 %v3518_v48  ;;  %4114 = vmatprep.mubr.f32.mxu0 %v14871_v14 }
 0x1cf   : > { %v12322_v30 = vpop.eup %9463  ;;  %9483 = vtanh.f32 %v3519_v47  ;;  %8519 = vmatmul.mubr.msk.f32.vlgmr.msra.gmra.mrb[104].mxu1 %vm1291_vm0, %v12206_v39  ;;  %v8859_v55 = vpack.c.bf16 %v12319_v26, %v12301_v60 }
 0x1d0   : > { %v12328_v3 = vpop.eup %9465  ;;  %4203 = vmatprep.mubr.f32.mxu1 %v14871_v14  ;;  %v8857_v25 = vpack.c.bf16 %v12322_v30, %v12305_v2 }
 0x1d1   : > { %15116 = vst [vmem:[#allocation32_spill] sm:$0xff] %v12328_v3  ;;  %v12333_v45 = vpop.eup %9467  ;;  %8516 = vmatmul.mubr.msk.f32.gmra.mrb[106].mxu0 %vm1291_vm0, %v12226_v46  ;;  %v8867_v57 = vpack.c.bf16 %v12328_v3, %v12310_v17 }
 0x1d2   : > { %15117 = vst [vmem:[#allocation5_spill] sm:$0xff] %v12333_v45  ;;  %v12339_v15 = vpop.eup %9469  ;;  %8858 = vmatprep.subr.bf16.mxu0 %v8857_v25  ;;  %v8865_v23 = vpack.c.bf16 %v12333_v45, %v12314_v19  ;;  %4120 = vmatprep.mubr.f32.mxu0 %v14871_v14 }
 0x1d3   : > { %v12344_v21 = vpop.eup %9471  ;;  %8520 = vmatmul.mubr.msk.f32.gmra.mrb[106].mxu1 %vm1291_vm0, %v12226_v46  ;;  %8860 = vmatpush1.bf16.msra.mxu0 %v8859_v55 }
 0x1d4   : > { %v12348_v61 = vpop.eup %9473  ;;  %v1904_v37 = vpop.f32.mrb[24].mxu0  ;;  %8866 = vmatprep.subr.bf16.mxu1 %v8865_v23  ;;  %4209 = vmatprep.mubr.f32.mxu1 %v14871_v14 }
 0x1d5   : > { %v12351_v7 = vpop.eup %9475  ;;  %v3472_v54 = vadd.f32 %v12113_v9, %v1904_v37  ;;  %v1906_v34 = vpop.f32.mrb[25].mxu0  ;;  %8868 = vmatpush1.bf16.msra.mxu1 %v8867_v57  ;;  %8517 = vmatmul.mubr.msk.f32.gmra.mrb[108].mxu0 %vm1291_vm0, %v12257_v22 }
 0x1d6   : > { %v12356_v13 = vpop.eup %9477  ;;  %v3473_v48 = vadd.f32 %v12113_v9, %v1906_v34  ;;  %4126 = vmatprep.mubr.f32.mxu0 %v14871_v14 }
 0x1d7   : > { %15118 = vst [vmem:[#allocation33_spill] sm:$0xff] %v12356_v13  ;;  %v12360_v63 = vpop.eup %9479  ;;  %8521 = vmatmul.mubr.msk.f32.gmra.mrb[108].mxu1 %vm1291_vm0, %v12257_v22  ;;  %v8863_v55 = vpack.c.bf16 %v12356_v13, %v12339_v15  ;;  %9485 = vtanh.f32 %v3472_v54 }
 0x1d8   : > { %15119 = vst [vmem:[#allocation34_spill] sm:$0xff] %v12360_v63  ;;  %v1993_v47 = vpop.f32.mrb[24].mxu1  ;;  %v12366_v25 = vpop.eup %9481  ;;  %4215 = vmatprep.mubr.f32.mxu1 %v14871_v14  ;;  %v8861_v37 = vpack.c.bf16 %v12360_v63, %v12344_v21  ;;  %9487 = vtanh.f32 %v3473_v48 }
 0x1d9   : > { %v3474_v57 = vadd.f32 %v12113_v9, %v1993_v47  ;;  %v1995_v23 = vpop.f32.mrb[25].mxu1  ;;  %v12372_v34 = vpop.eup %9483  ;;  %8518 = vmatmul.mubr.msk.f32.gmra.mrb[110].mxu0 %vm1291_vm0, %v12280_v32  ;;  %v8871_v54 = vpack.c.bf16 %v12366_v25, %v12348_v61 }
 0x1da   : > { %15120 = vst [vmem:[#allocation35_spill] sm:$0xff] %v12372_v34  ;;  %v3475_v45 = vadd.f32 %v12113_v9, %v1995_v23  ;;  %v1910_v3 = vpop.f32.mrb[26].mxu0  ;;  %8862 = vmatprep.subr.bf16.mxu0 %v8861_v37  ;;  %v8869_v63 = vpack.c.bf16 %v12372_v34, %v12351_v7  ;;  %4286 = vmatprep.mubr.f32.mxu0 %v14871_v14 }
 0x1db   : > { %9489 = vtanh.f32 %v3474_v57  ;;  %v3488_v47 = vadd.f32 %v12118_v44, %v1910_v3  ;;  %v1912_v13 = vpop.f32.mrb[27].mxu0  ;;  %8522 = vmatmul.mubr.msk.f32.gmra.mrb[110].mxu1 %vm1291_vm0, %v12280_v32  ;;  %8864 = vmatpush1.bf16.msra.mxu0 %v8863_v55 }
 0x1dc   : > { %9491 = vtanh.f32 %v3475_v45  ;;  %v1999_v48 = vpop.f32.mrb[26].mxu1  ;;  %v3489_v9 = vadd.f32 %v12118_v44, %v1912_v13  ;;  %8870 = vmatprep.subr.bf16.mxu1 %v8869_v63  ;;  %4375 = vmatprep.mubr.f32.mxu1 %v14871_v14  ;;  %v12395_v63 = vmul.f32 %v12133_v4, %v12133_v4 }
 0x1dd   : > { %9493 = vtanh.f32 %v3488_v47  ;;  %v3490_v57 = vadd.f32 %v12118_v44, %v1999_v48  ;;  %v2001_v23 = vpop.f32.mrb[27].mxu1  ;;  %8872 = vmatpush1.bf16.msra.mxu1 %v8871_v54 }
 0x1de   : > { %9495 = vtanh.f32 %v3489_v9  ;;  %v3491_v3 = vadd.f32 %v12118_v44, %v2001_v23  ;;  %8523 = vmatmul.mubr.msk.f32.vlgmr.msra.gmra.mrb[112].mxu0 %vm1291_vm0, %v12206_v39  ;;  %15121 = vst [vmem:[#allocation17_spill] sm:$0xff] %v12395_v63  ;;  %v12399_v44 = vmul.f32 %v12136_v56, %v12136_v56  ;;  %v12405_v9 = vmul.f32 %v12139_v50, %v12139_v50 }
 0x1df   : > { %v1916_v37 = vpop.f32.mrb[28].mxu0  ;;  %9497 = vtanh.f32 %v3490_v57  ;;  %4292 = vmatprep.mubr.f32.mxu0 %v14871_v14  ;;  %v12412_v56 = vmul.f32 %v12142_v29, %v12142_v29  ;;  %v14659_v29 = vsub.f32 1.0, %v12395_v63 }
 0x1e0   : > { %v3504_v45 = vadd.f32 %v12122_v6, %v1916_v37  ;;  %v1918_v13 = vpop.f32.mrb[29].mxu0  ;;  %9499 = vtanh.f32 %v3491_v3  ;;  %15122 = vst [vmem:[#allocation6_spill] sm:$0xff] %v12399_v44  ;;  %15123 = vst [vmem:[#allocation9_spill] sm:$0xff] %v12405_v9  ;;  %8527 = vmatmul.mubr.msk.f32.vlgmr.msra.gmra.mrb[112].mxu1 %vm1291_vm0, %v12206_v39 }
 0x1e1   : > { %v2005_v55 = vpop.f32.mrb[28].mxu1  ;;  %v3505_v47 = vadd.f32 %v12122_v6, %v1918_v13  ;;  %15124 = vst [vmem:[#allocation7_spill] sm:$0xff] %v12412_v56  ;;  %4381 = vmatprep.mubr.f32.mxu1 %v14871_v14  ;;  %v12415_v23 = vpop.eup %9485 }
 0x1e2   : > { %9501 = vtanh.f32 %v3504_v45  ;;  %v3506_v54 = vadd.f32 %v12122_v6, %v2005_v55  ;;  %v2007_v48 = vpop.f32.mrb[29].mxu1  ;;  %15125 = vst [vmem:[#allocation10_spill] sm:$0xff] %v12415_v23  ;;  %8524 = vmatmul.mubr.msk.f32.gmra.mrb[114].mxu0 %vm1291_vm0, %v12226_v46  ;;  %v12420_v37 = vpop.eup %9487 }
 0x1e3   : > { %9503 = vtanh.f32 %v3505_v47  ;;  %v3507_v4 = vadd.f32 %v12122_v6, %v2007_v48  ;;  %v1922_v57 = vpop.f32.mrb[30].mxu0  ;;  %15126 = vst [vmem:[#allocation8_spill] sm:$0xff] %v12420_v37  ;;  %4298 = vmatprep.mubr.f32.mxu0 %v14871_v14 }
 0x1e4   : > { %9505 = vtanh.f32 %v3506_v54  ;;  %v3520_v3 = vadd.f32 %v12130_v52, %v1922_v57  ;;  %v1924_v50 = vpop.f32.mrb[31].mxu0  ;;  %8528 = vmatmul.mubr.msk.f32.gmra.mrb[114].mxu1 %vm1291_vm0, %v12226_v46 }
 0x1e5   : > { %9507 = vtanh.f32 %v3507_v4  ;;  %v2011_v6 = vpop.f32.mrb[30].mxu1  ;;  %v3521_v45 = vadd.f32 %v12130_v52, %v1924_v50  ;;  %v12426_v55 = vpop.eup %9489  ;;  %v12432_v4 = vmul.f32 %v12145_v0, %v12145_v0  ;;  %4387 = vmatprep.mubr.f32.mxu1 %v14871_v14 }
 0x1e6   : > { %15127 = vst [vmem:[#allocation11_spill] sm:$0xff] %v12426_v55  ;;  %9509 = vtanh.f32 %v3520_v3  ;;  %v3522_v47 = vadd.f32 %v12130_v52, %v2011_v6  ;;  %v2013_v54 = vpop.f32.mrb[31].mxu1  ;;  %v12436_v57 = vpop.eup %9491  ;;  %v12442_v6 = vmul.f32 %v12148_v43, %v12148_v43  ;;  %8525 = vmatmul.mubr.msk.f32.gmra.mrb[116].mxu0 %vm1291_vm0, %v12257_v22  ;;  %v15138_v3 = vsub.f32 1.0, %v12405_v9 }
 0x1e7   : > { %15128 = vst [vmem:[#allocation12_spill] sm:$0xff] %v12432_v4  ;;  %15129 = vst [vmem:[#allocation18_spill] sm:$0xff] %v12436_v57  ;;  %9511 = vtanh.f32 %v3521_v45  ;;  %v3523_v50 = vadd.f32 %v12130_v52, %v2013_v54  ;;  %v2082_v13 = vpop.f32.mrb[32].mxu0  ;;  %v12445_v48 = vpop.eup %9493  ;;  %v12453_v52 = vmul.f32 %v12153_v41, %v12153_v41  ;;  %v12457_v45 = vmul.f32 %v12158_v40, %v12158_v40 }
 0x1e8   : > { %15130 = vst [vmem:[#allocation23_spill] sm:$0xff] %v12442_v6  ;;  %15131 = vst [vmem:[#allocation13_spill] sm:$0xff] %v12445_v48  ;;  %9513 = vtanh.f32 %v3522_v47  ;;  %v12449_v0 = vmul.f32 %v14659_v29, %v2082_v13  ;;  %v2084_v34 = vpop.f32.mrb[33].mxu0  ;;  %v12461_v43 = vpop.eup %9495  ;;  %v15135_v54 = vsub.f32 1.0, %v12399_v44  ;;  %v8875_v29 = vpack.c.bf16 %v12445_v48, %v12415_v23  ;;  %4304 = vmatprep.mubr.f32.mxu0 %v14871_v14 }
 0x1e9   : > { %15132 = vst [vmem:[#allocation24_spill] sm:$0xff] %v12453_v52  ;;  %15133 = vst [vmem:[#allocation14_spill] sm:$0xff] %v12457_v45  ;;  %9515 = vtanh.f32 %v3523_v50  ;;  %v2171_v47 = vpop.f32.mrb[32].mxu1  ;;  %v12471_v41 = vmul.f32 %v12163_v35, %v12163_v35  ;;  %v12474_v40 = vpop.eup %9497  ;;  %8529 = vmatmul.mubr.msk.f32.gmra.mrb[116].mxu1 %vm1291_vm0, %v12257_v22  ;;  %v15141_v48 = vsub.f32 1.0, %v12412_v56  ;;  %v12514_v56 = vmul.f32 %v12174_v11, %v12174_v11 }
 0x1ea   : > { %15134 = vst [vmem:[#allocation19_spill] sm:$0xff] %v12461_v43  ;;  %v12465_v13 = vmul.f32 %v15135_v54, %v2084_v34  ;;  %15137 = vst [vmem:[#allocation15_spill] sm:$0xff] %v12474_v40  ;;  %v12478_v63 = vmul.f32 %v15138_v3, %v2171_v47  ;;  %v2173_v50 = vpop.f32.mrb[33].mxu1  ;;  %v8873_v34 = vpack.c.bf16 %v12461_v43, %v12420_v37  ;;  %v12489_v35 = vpop.eup %9499  ;;  %4393 = vmatprep.mubr.f32.mxu1 %v14871_v14 }
 0x1eb   : > { %15136 = vst [vmem:[#allocation25_spill] sm:$0xff] %v12471_v41  ;;  %v12485_v54 = vmul.f32 %v12171_v59, %v12171_v59  ;;  %15140 = vst [vmem:[#allocation36_spill] sm:$0xff] %v12489_v35  ;;  %v12493_v9 = vmul.f32 %v15141_v48, %v2173_v50  ;;  %v2088_v3 = vpop.f32.mrb[34].mxu0  ;;  %v8883_v44 = vpack.c.bf16 %v12474_v40, %v12426_v55  ;;  %v15143_v37 = vsub.f32 1.0, %v12432_v4 }
 0x1ec   : > { %v12500_v43 = vmul.f32 %v12168_v10, %v12168_v10  ;;  %v12503_v59 = vpop.eup %9501  ;;  %v2090_v50 = vpop.f32.mrb[35].mxu0  ;;  %8874 = vmatprep.subr.bf16.mxu0 %v8873_v34  ;;  %v8881_v47 = vpack.c.bf16 %v12489_v35, %v12436_v57  ;;  %15144 = vst [vmem:[#allocation20_spill] sm:$0xff] %v12514_v56  ;;  %8526 = vmatmul.mubr.msk.f32.gmra.mrb[118].mxu0 %vm1291_vm0, %v12280_v32  ;;  %v14673_v48 = vsub.f32 1.0, %v12457_v45  ;;  %v15147_v35 = vsub.f32 1.0, %v12453_v52 }
 0x1ed   : > { %15139 = vst [vmem:[#allocation26_spill] sm:$0xff] %v12485_v54  ;;  %v12507_v23 = vmul.f32 %v15143_v37, %v2088_v3  ;;  %v12518_v10 = vpop.eup %9503  ;;  %v2177_v40 = vpop.f32.mrb[34].mxu1  ;;  %v15146_v37 = vsub.f32 1.0, %v12442_v6  ;;  %8876 = vmatpush1.bf16.msra.mxu0 %v8875_v29  ;;  %4464 = vmatprep.mubr.f32.mxu0 %v14871_v14  ;;  %v12536_v29 = vmul.f32 %v12177_v24, %v12177_v24 }
 0x1ee   : > { %15142 = vst [vmem:[#allocation16_spill] sm:$0xff] %v12500_v43  ;;  %15145 = vst [vmem:[#allocation37_spill] sm:$0xff] %v12518_v10  ;;  %v12525_v4 = vpop.eup %9505  ;;  %v12531_v57 = vmul.f32 %v15147_v35, %v2177_v40  ;;  %v2179_v55 = vpop.f32.mrb[35].mxu1  ;;  %8882 = vmatprep.subr.bf16.mxu1 %v8881_v47  ;;  %8530 = vmatmul.mubr.msk.f32.gmra.mrb[118].mxu1 %vm1291_vm0, %v12280_v32  ;;  %v12548_v47 = vmul.f32 %v12180_v5, %v12180_v5  ;;  %v15152_v52 = vsub.f32 1.0, %v12500_v43 }
 0x1ef   : > { %v3733_v3 = vmul.f32 %v15146_v37, %v2090_v50  ;;  %15148 = vst [vmem:[#allocation22_spill] sm:$0xff] %v12536_v29  ;;  %v12540_v37 = vpop.eup %9507  ;;  %v3735_v11 = vmul.f32 %v14673_v48, %v2179_v55  ;;  %8884 = vmatpush1.bf16.msra.mxu1 %v8883_v44  ;;  %v2094_v40 = vpop.f32.mrb[36].mxu0  ;;  %4553 = vmatprep.mubr.f32.mxu1 %v14871_v14 }
 0x1f0   : > { %v12551_v24 = vpop.eup %9509  ;;  %v2096_v55 = vpop.f32.mrb[37].mxu0  ;;  %v12562_v48 = vmul.f32 %v12185_v51, %v12185_v51  ;;  %v12571_v50 = vmul.f32 %v12190_v53, %v12190_v53  ;;  %v15154_v51 = vsub.f32 1.0, %v12485_v54 }
 0x1f1   : > { %v8889_v34 = vpack.c.bf16 %v3733_v3, %v12465_v13  ;;  %15149 = vst [vmem:[#allocation21_spill] sm:$0xff] %v12551_v24  ;;  %v15150_v13 = vsub.f32 1.0, %v12471_v41  ;;  %v12564_v5 = vpop.eup %9511  ;;  %v8897_v35 = vpack.c.bf16 %v3735_v11, %v12493_v9  ;;  %v2183_v45 = vpop.f32.mrb[36].mxu1  ;;  %v3749_v6 = vmul.f32 %v15152_v52, %v2096_v55 }
 0x1f2   : > { %15151 = vst [vmem:[#allocation28_spill] sm:$0xff] %v12564_v5  ;;  %v12579_v44 = vmul.f32 %v15154_v51, %v2183_v45  ;;  %v2185_v41 = vpop.f32.mrb[37].mxu1  ;;  %v14685_v9 = vsub.f32 1.0, %v12536_v29  ;;  %v8877_v11 = vpack.c.bf16 %v12564_v5, %v12518_v10  ;;  %v12586_v52 = vmul.f32 %v12195_v49, %v12195_v49 }
 0x1f3   : > { %v12557_v3 = vmul.f32 %v15150_v13, %v2094_v40  ;;  %v8879_v40 = vpack.c.bf16 %v12551_v24, %v12503_v59  ;;  %v12575_v13 = vpop.eup %9513  ;;  %v15155_v55 = vsub.f32 1.0, %v12514_v56  ;;  %v2100_v24 = vpop.f32.mrb[38].mxu0  ;;  %v12597_v51 = vmul.f32 %v12200_v31, %v12200_v31 }
 0x1f4   : > { %15153 = vst [vmem:[#allocation27_spill] sm:$0xff] %v12575_v13  ;;  %v12588_v53 = vpop.eup %9515  ;;  %v8887_v45 = vpack.c.bf16 %v12575_v13, %v12525_v4  ;;  %v3764_v5 = vmul.f32 %v14685_v9, %v2100_v24  ;;  %v14716_v49 = vsub.f32 1.0, %v12562_v48  ;;  %v2102_v10 = vpop.f32.mrb[39].mxu0  ;;  %8878 = vmatprep.subr.bf16.mxu0 %v8877_v11  ;;  %v15156_v56 = vsub.f32 1.0, %v12548_v47 }
 0x1f5   : > { %v3751_v43 = vmul.f32 %v15155_v55, %v2185_v41  ;;  %v8885_v41 = vpack.c.bf16 %v12588_v53, %v12540_v37  ;;  %v12606_v55 = vmul.f32 %v12208_v20, %v12208_v20  ;;  %v2189_v54 = vpop.f32.mrb[38].mxu1  ;;  %v14703_v31 = vsub.f32 1.0, %v12571_v50  ;;  %8880 = vmatpush1.bf16.msra.mxu0 %v8879_v40 }
 0x1f6   : > { %v3765_v13 = vmul.f32 %v15156_v56, %v2102_v10  ;;  %v12613_v24 = vmul.f32 %v12211_v27, %v12211_v27  ;;  %v8895_v11 = vpack.c.bf16 %v3764_v5, %v12557_v3  ;;  %v3766_v9 = vmul.f32 %v14716_v49, %v2189_v54  ;;  %v2191_v29 = vpop.f32.mrb[39].mxu1  ;;  %8890 = vmatprep.subr.bf16.mxu0 %v8889_v34 }
 0x1f7   : > { %8886 = vmatprep.subr.bf16.mxu1 %v8885_v41  ;;  %v14700_v20 = vsub.f32 1.0, %v12586_v52  ;;  %v12621_v56 = vmul.f32 %v12214_v38, %v12214_v38  ;;  %v3767_v40 = vmul.f32 %v14703_v31, %v2191_v29  ;;  %v2260_v27 = vpop.f32.mrb[40].mxu0  ;;  %v14698_v3 = vsub.f32 1.0, %v12597_v51 }
 0x1f8   : > { %v8893_v10 = vpack.c.bf16 %v3765_v13, %v3749_v6  ;;  %8888 = vmatpush1.bf16.msra.mxu1 %v8887_v45  ;;  %v12628_v54 = vmul.f32 %v12219_v18, %v12219_v18  ;;  %v8903_v34 = vpack.c.bf16 %v3766_v9, %v12579_v44  ;;  %v14697_v38 = vsub.f32 1.0, %v12606_v55  ;;  %v2262_v6 = vpop.f32.mrb[41].mxu0  ;;  %8531 = vmatmul.mubr.msk.f32.vlgmr.msra.gmra.mrb[120].mxu0 %vm1291_vm0, %v12206_v39 }
 0x1f9   : > { %8898 = vmatprep.subr.bf16.mxu1 %v8897_v35  ;;  %v12633_v5 = vmul.f32 %v14700_v20, %v2260_v27  ;;  %v12640_v29 = vmul.f32 %v12230_v8, %v12230_v8  ;;  %v8901_v13 = vpack.c.bf16 %v3767_v40, %v3751_v43  ;;  %v2349_v18 = vpop.f32.mrb[40].mxu1  ;;  %v3721_v44 = vmul.f32 %v14698_v3, %v2262_v6 }
 0x1fa   : > { %v14691_v35 = vsub.f32 1.0, %v12613_v24  ;;  %v15157_v9 = vpack.c.bf16 %v12507_v23, %v12449_v0  ;;  %4470 = vmatprep.mubr.f32.mxu0 %v14871_v14  ;;  %v12651_v45 = vmul.f32 %v12236_v58, %v12236_v58  ;;  %v12655_v8 = vmul.f32 %v14697_v38, %v2349_v18  ;;  %v2351_v43 = vpop.f32.mrb[41].mxu1 }
 0x1fb   : > { %8535 = vmatmul.mubr.msk.f32.vlgmr.msra.gmra.mrb[120].mxu1 %vm1291_vm0, %v12206_v39  ;;  %v14689_v41 = vsub.f32 1.0, %v12621_v56  ;;  %v12662_v23 = vmul.f32 %v12242_v12, %v12242_v12  ;;  %v15158_v58 = vpack.c.bf16 %v12531_v57, %v12478_v63  ;;  %v2266_v40 = vpop.f32.mrb[42].mxu0  ;;  %v14687_v27 = vsub.f32 1.0, %v12628_v54 }
 0x1fc   : > { %8892 = vmatpush1.bf16.msra.mxu0 %v15157_v9  ;;  %v3723_v0 = vmul.f32 %v14691_v35, %v2351_v43  ;;  %4559 = vmatprep.mubr.f32.mxu1 %v14871_v14  ;;  %v14688_v6 = vsub.f32 1.0, %v12640_v29  ;;  %v2268_v18 = vpop.f32.mrb[43].mxu0  ;;  %v12684_v63 = vmul.f32 %v12259_v1, %v12259_v1  ;;  %v12692_v9 = vmul.f32 %v12263_v62, %v12263_v62 }
 0x1fd   : > { %8894 = vmatprep.subr.bf16.mxu0 %v8893_v10  ;;  %8900 = vmatpush1.bf16.msra.mxu1 %v15158_v58  ;;  %v12673_v10 = vmul.f32 %v12250_v33, %v12250_v33  ;;  %v12677_v12 = vmul.f32 %v14689_v41, %v2266_v40  ;;  %v3737_v33 = vmul.f32 %v14687_v27, %v2268_v18  ;;  %v14692_v40 = vsub.f32 1.0, %v12662_v23 }
 0x1fe   : > { %8902 = vmatprep.subr.bf16.mxu1 %v8901_v13  ;;  %8532 = vmatmul.mubr.msk.f32.gmra.mrb[122].mxu0 %vm1291_vm0, %v12226_v46  ;;  %v2355_v57 = vpop.f32.mrb[42].mxu1  ;;  %v14690_v13 = vsub.f32 1.0, %v12651_v45  ;;  %v14695_v35 = vsub.f32 1.0, %v12692_v9 }
 0x1ff   : > { %4476 = vmatprep.mubr.f32.mxu0 %v14871_v14  ;;  %v8907_v43 = vpack.c.bf16 %v12677_v12, %v12633_v5  ;;  %v12698_v1 = vmul.f32 %v14688_v6, %v2355_v57  ;;  %v2357_v58 = vpop.f32.mrb[43].mxu1  ;;  %8536 = vmatmul.mubr.msk.f32.gmra.mrb[122].mxu1 %vm1291_vm0, %v12226_v46  ;;  %v8905_v18 = vpack.c.bf16 %v3737_v33, %v3721_v44  ;;  %v14694_v57 = vsub.f32 1.0, %v12673_v10 }
 0x200   : > { %8896 = vmatpush1.bf16.msra.mxu0 %v8895_v11  ;;  %v12705_v11 = vmul.f32 %v12267_v42, %v12267_v42  ;;  %v3739_v62 = vmul.f32 %v14690_v13, %v2357_v58  ;;  %4565 = vmatprep.mubr.f32.mxu1 %v14871_v14  ;;  %v12713_v6 = vmul.f32 %v12273_v28, %v12273_v28  ;;  %v14693_v44 = vsub.f32 1.0, %v12684_v63 }
 0x201   : > { %8904 = vmatpush1.bf16.msra.mxu1 %v8903_v34  ;;  %v2272_v27 = vpop.f32.mrb[44].mxu0  ;;  %v8915_v41 = vpack.c.bf16 %v12698_v1, %v12655_v8  ;;  %v12726_v34 = vmul.f32 %v12284_v16, %v12284_v16  ;;  %8906 = vmatprep.subr.bf16.mxu0 %v8905_v18  ;;  %v12822_v5 = vmul.f32 %v12339_v15, %v12339_v15 }
 0x202   : > { %v12719_v42 = vmul.f32 %v14692_v40, %v2272_v27  ;;  %v2274_v33 = vpop.f32.mrb[45].mxu0  ;;  %8533 = vmatmul.mubr.msk.f32.gmra.mrb[124].mxu0 %vm1291_vm0, %v12257_v22  ;;  %v8913_v58 = vpack.c.bf16 %v3739_v62, %v3723_v0  ;;  %v2361_v28 = vpop.f32.mrb[44].mxu1  ;;  %v12734_v27 = vmul.f32 %v12290_v36, %v12290_v36  ;;  %v14696_v0 = vsub.f32 1.0, %v12705_v11 }
 0x203   : > { %v3753_v13 = vmul.f32 %v14694_v57, %v2274_v33  ;;  %4482 = vmatprep.mubr.f32.mxu0 %v14871_v14  ;;  %v12738_v40 = vmul.f32 %v14693_v44, %v2361_v28  ;;  %v2363_v16 = vpop.f32.mrb[45].mxu1  ;;  %8537 = vmatmul.mubr.msk.f32.gmra.mrb[124].mxu1 %vm1291_vm0, %v12257_v22  ;;  %v12745_v62 = vmul.f32 %v12301_v60, %v12301_v60  ;;  %v14699_v33 = vsub.f32 1.0, %v12713_v6 }
 0x204   : > { %v3755_v18 = vmul.f32 %v14695_v35, %v2363_v16  ;;  %8914 = vmatprep.subr.bf16.mxu1 %v8913_v58  ;;  %4571 = vmatprep.mubr.f32.mxu1 %v14871_v14  ;;  %v12753_v28 = vmul.f32 %v12305_v2, %v12305_v2  ;;  %v14701_v57 = vsub.f32 1.0, %v12726_v34  ;;  %v12762_v58 = vmul.f32 %v12310_v17, %v12310_v17 }
 0x205   : > { %v14702_v2 = vsub.f32 1.0, %v12734_v27  ;;  %v14714_v17 = vsub.f32 1.0, %v12745_v62  ;;  %v12844_v8 = vmul.f32 %v12348_v61, %v12348_v61 }
 0x206   : > { %v2278_v36 = vpop.f32.mrb[46].mxu0  ;;  %8534 = vmatmul.mubr.msk.f32.gmra.mrb[126].mxu0 %vm1291_vm0, %v12280_v32  ;;  %v2367_v16 = vpop.f32.mrb[46].mxu1 }
 0x207   : > { %v3768_v44 = vmul.f32 %v14696_v0, %v2278_v36  ;;  %v2280_v60 = vpop.f32.mrb[47].mxu0  ;;  %4642 = vmatprep.mubr.f32.mxu0 %v14871_v14  ;;  %v12770_v36 = vmul.f32 %v12314_v19, %v12314_v19  ;;  %v3770_v38 = vmul.f32 %v14701_v57, %v2367_v16  ;;  %v2369_v3 = vpop.f32.mrb[47].mxu1  ;;  %8538 = vmatmul.mubr.msk.f32.gmra.mrb[126].mxu1 %vm1291_vm0, %v12280_v32 }
 0x208   : > { %v3769_v35 = vmul.f32 %v14699_v33, %v2280_v60  ;;  %v12780_v60 = vmul.f32 %v12319_v26, %v12319_v26  ;;  %v3771_v19 = vmul.f32 %v14702_v2, %v2369_v3  ;;  %4731 = vmatprep.mubr.f32.mxu1 %v14871_v14  ;;  %v14709_v26 = vsub.f32 1.0, %v12762_v58  ;;  %v15159_v3 = vld [vmem:[#allocation32_spill] sm:$0xff] }
 0x209   : > { %v8911_v0 = vpack.c.bf16 %v3768_v44, %v12719_v42  ;;  %v14711_v42 = vsub.f32 1.0, %v12753_v28  ;;  %v12788_v44 = vmul.f32 %v12322_v30, %v12322_v30  ;;  %v8919_v16 = vpack.c.bf16 %v3770_v38, %v12738_v40 }
 0x20a   : > { %v8909_v33 = vpack.c.bf16 %v3769_v35, %v3753_v13  ;;  %v2438_v20 = vpop.f32.mrb[48].mxu0  ;;  %8539 = vmatmul.mubr.msk.f32.vlgmr.msra.gmra.mrb[128].mxu0 %vm1291_vm0, %v12206_v39  ;;  %v12800_v13 = vmul.f32 %v15159_v3, %v15159_v3  ;;  %v8917_v2 = vpack.c.bf16 %v3771_v19, %v3755_v18  ;;  %v2527_v31 = vpop.f32.mrb[48].mxu1  ;;  %v14707_v38 = vsub.f32 1.0, %v12770_v36 }
 0x20b   : > { %v12793_v57 = vmul.f32 %v14714_v17, %v2438_v20  ;;  %v2440_v35 = vpop.f32.mrb[49].mxu0  ;;  %8908 = vmatpush1.bf16.msra.mxu0 %v8907_v43  ;;  %4648 = vmatprep.mubr.f32.mxu0 %v14871_v14  ;;  %v15160_v20 = vld [vmem:[#allocation5_spill] sm:$0xff]  ;;  %v12815_v3 = vmul.f32 %v14709_v26, %v2527_v31  ;;  %v2529_v18 = vpop.f32.mrb[49].mxu1  ;;  %v14705_v19 = vsub.f32 1.0, %v12780_v60  ;;  %v14704_v43 = vsub.f32 1.0, %v12788_v44 }
 0x20c   : > { %v3725_v30 = vmul.f32 %v14711_v42, %v2440_v35  ;;  %v12811_v40 = vmul.f32 %v15160_v20, %v15160_v20  ;;  %8543 = vmatmul.mubr.msk.f32.vlgmr.msra.gmra.mrb[128].mxu1 %vm1291_vm0, %v12206_v39  ;;  %8910 = vmatprep.subr.bf16.mxu0 %v8909_v33  ;;  %v3727_v12 = vmul.f32 %v14707_v38, %v2529_v18  ;;  %v14706_v33 = vsub.f32 1.0, %v12800_v13 }
 0x20d   : > { %8916 = vmatpush1.bf16.msra.mxu1 %v8915_v41  ;;  %4737 = vmatprep.mubr.f32.mxu1 %v14871_v14  ;;  %v12833_v39 = vmul.f32 %v12344_v21, %v12344_v21 }
 0x20e   : > { %v2444_v31 = vpop.f32.mrb[50].mxu0  ;;  %8918 = vmatprep.subr.bf16.mxu1 %v8917_v2  ;;  %8540 = vmatmul.mubr.msk.f32.gmra.mrb[130].mxu0 %vm1291_vm0, %v12226_v46  ;;  %v14708_v1 = vsub.f32 1.0, %v12811_v40  ;;  %v12852_v2 = vmul.f32 %v12351_v7, %v12351_v7 }
 0x20f   : > { %v12837_v15 = vmul.f32 %v14705_v19, %v2444_v31  ;;  %v2446_v35 = vpop.f32.mrb[51].mxu0  ;;  %8912 = vmatpush1.bf16.msra.mxu0 %v8911_v0  ;;  %4654 = vmatprep.mubr.f32.mxu0 %v14871_v14  ;;  %v14710_v31 = vsub.f32 1.0, %v12822_v5  ;;  %v15162_v0 = vld [vmem:[#allocation33_spill] sm:$0xff] }
 0x210   : > { %v3741_v21 = vmul.f32 %v14704_v43, %v2446_v35  ;;  %15161 = vst [vmem:[#allocation29_spill] sm:$0xff] %v12852_v2  ;;  %8544 = vmatmul.mubr.msk.f32.gmra.mrb[130].mxu1 %vm1291_vm0, %v12226_v46  ;;  %v12865_v35 = vmul.f32 %v15162_v0, %v15162_v0  ;;  %v14715_v26 = vsub.f32 1.0, %v12852_v2  ;;  %v15172_v46 = vld [vmem:[#allocation18_spill] sm:$0xff] }
 0x211   : > { %v2533_v41 = vpop.f32.mrb[50].mxu1  ;;  %8920 = vmatpush1.bf16.msra.mxu1 %v8919_v16  ;;  %4743 = vmatprep.mubr.f32.mxu1 %v14871_v14  ;;  %v12886_v16 = vmul.f32 %v12366_v25, %v12366_v25 }
 0x212   : > { %v12858_v61 = vmul.f32 %v14706_v33, %v2533_v41  ;;  %v2535_v18 = vpop.f32.mrb[51].mxu1  ;;  %15163 = vst [vmem:[#allocation30_spill] sm:$0xff] %v12865_v35  ;;  %v8921_v43 = vpack.c.bf16 %v3741_v21, %v3725_v30  ;;  %v14713_v41 = vsub.f32 1.0, %v12833_v39  ;;  %v15164_v33 = vld [vmem:[#allocation34_spill] sm:$0xff]  ;;  %v14712_v30 = vsub.f32 1.0, %v12844_v8  ;;  %8541 = vmatmul.mubr.msk.f32.gmra.mrb[132].mxu0 %vm1291_vm0, %v12257_v22 }
 0x213   : > { %v3743_v7 = vmul.f32 %v14708_v1, %v2535_v18  ;;  %v2450_v19 = vpop.f32.mrb[52].mxu0  ;;  %v12873_v38 = vmul.f32 %v15164_v33, %v15164_v33  ;;  %4660 = vmatprep.mubr.f32.mxu0 %v14871_v14  ;;  %v14722_v17 = vsub.f32 1.0, %v12886_v16 }
 0x214   : > { %v12879_v0 = vmul.f32 %v14710_v31, %v2450_v19  ;;  %v2452_v21 = vpop.f32.mrb[53].mxu0  ;;  %8922 = vmatprep.subr.bf16.mxu0 %v8921_v43  ;;  %v15166_v19 = vld [vmem:[#allocation35_spill] sm:$0xff]  ;;  %8545 = vmatmul.mubr.msk.f32.gmra.mrb[132].mxu1 %vm1291_vm0, %v12257_v22 }
 0x215   : > { %15165 = vst [vmem:[#allocation31_spill] sm:$0xff] %v12873_v38  ;;  %v8929_v18 = vpack.c.bf16 %v3743_v7, %v3727_v12  ;;  %v2539_v33 = vpop.f32.mrb[52].mxu1  ;;  %v3757_v1 = vmul.f32 %v14713_v41, %v2452_v21  ;;  %v12894_v31 = vmul.f32 %v15166_v19, %v15166_v19  ;;  %v14717_v12 = vsub.f32 1.0, %v12865_v35  ;;  %v15168_v7 = vld [vmem:[#allocation10_spill] sm:$0xff]  ;;  %4749 = vmatprep.mubr.f32.mxu1 %v14871_v14 }
 0x216   : > { %v12898_v42 = vmul.f32 %v14712_v30, %v2539_v33  ;;  %v2541_v25 = vpop.f32.mrb[53].mxu1  ;;  %v12905_v21 = vmul.f32 %v15168_v7, %v15168_v7  ;;  %v14719_v33 = vsub.f32 1.0, %v12873_v38  ;;  %v15170_v30 = vld [vmem:[#allocation8_spill] sm:$0xff]  ;;  %8542 = vmatmul.mubr.msk.f32.gmra.mrb[134].mxu0 %vm1291_vm0, %v12280_v32 }
 0x217   : > { %15167 = vst [vmem:[#allocation32_spill] sm:$0xff] %v12894_v31  ;;  %v3759_v43 = vmul.f32 %v14715_v26, %v2541_v25  ;;  %8930 = vmatprep.subr.bf16.mxu1 %v8929_v18  ;;  %v2456_v19 = vpop.f32.mrb[54].mxu0  ;;  %v12913_v41 = vmul.f32 %v15170_v30, %v15170_v30  ;;  %v15171_v25 = vld [vmem:[#allocation11_spill] sm:$0xff]  ;;  %4820 = vmatprep.mubr.f32.mxu0 %v14871_v14  ;;  %v15174_v38 = vsub.f32 1.0, %v12894_v31 }
 0x218   : > { %15169 = vst [vmem:[#allocation5_spill] sm:$0xff] %v12905_v21  ;;  %v3772_v22 = vmul.f32 %v14717_v12, %v2456_v19  ;;  %v2458_v7 = vpop.f32.mrb[55].mxu0  ;;  %v12922_v18 = vmul.f32 %v15171_v25, %v15171_v25  ;;  %v12930_v19 = vmul.f32 %v15172_v46, %v15172_v46  ;;  %8546 = vmatmul.mubr.msk.f32.gmra.mrb[134].mxu1 %vm1291_vm0, %v12280_v32  ;;  %v14723_v25 = vsub.f32 1.0, %v12905_v21 }
 0x219   : > { %v2545_v26 = vpop.f32.mrb[54].mxu1  ;;  %v3773_v49 = vmul.f32 %v14719_v33, %v2458_v7  ;;  %v15173_v7 = vld [vmem:[#allocation13_spill] sm:$0xff]  ;;  %4909 = vmatprep.mubr.f32.mxu1 %v14871_v14 }
 0x21a   : > { %v8927_v12 = vpack.c.bf16 %v3772_v22, %v12879_v0  ;;  %v3774_v20 = vmul.f32 %v14722_v17, %v2545_v26  ;;  %v2547_v35 = vpop.f32.mrb[55].mxu1  ;;  %v12940_v33 = vmul.f32 %v15173_v7, %v15173_v7  ;;  %v14729_v0 = vsub.f32 1.0, %v12913_v41  ;;  %v15175_v26 = vld [vmem:[#allocation19_spill] sm:$0xff] }
 0x21b   : > { %v8925_v30 = vpack.c.bf16 %v3773_v49, %v3757_v1  ;;  %v3775_v46 = vmul.f32 %v15174_v38, %v2547_v35  ;;  %v2616_v2 = vpop.f32.mrb[56].mxu0  ;;  %v12948_v22 = vmul.f32 %v15175_v26, %v15175_v26  ;;  %v12959_v38 = vld [vmem:[%s14520_s3 + $0x20] sm:$0xff]  ;;  %v15176_v35 = vld [vmem:[#allocation15_spill] sm:$0xff]  ;;  %v14727_v26 = vsub.f32 1.0, %v12930_v19  ;;  %v15179_v49 = vld [vmem:[#allocation36_spill] sm:$0xff] }
 0x21c   : > { %v8935_v32 = vpack.c.bf16 %v3774_v20, %v12898_v42  ;;  %v12953_v17 = vmul.f32 %v14723_v25, %v2616_v2  ;;  %v2618_v1 = vpop.f32.mrb[57].mxu0  ;;  %8547 = vmatmul.mubr.msk.f32.vlgmr.msra.gmra.mrb[136].mxu0 %vm1291_vm0, %v12959_v38  ;;  %v12965_v7 = vmul.f32 %v15176_v35, %v15176_v35  ;;  %v15178_v25 = vpack.c.bf16 %v12837_v15, %v12793_v57 }
 0x21d   : > { %v8933_v42 = vpack.c.bf16 %v3775_v46, %v3759_v43  ;;  %v2705_v20 = vpop.f32.mrb[56].mxu1  ;;  %v3729_v2 = vmul.f32 %v14729_v0, %v2618_v1  ;;  %4826 = vmatprep.mubr.f32.mxu0 %v14871_v14  ;;  %v12976_v21 = vmul.f32 %v15179_v49, %v15179_v49  ;;  %v15181_v35 = vsub.f32 1.0, %v12922_v18  ;;  %8551 = vmatmul.mubr.msk.f32.vlgmr.msra.gmra.mrb[136].mxu1 %vm1291_vm0, %v12959_v38 }
 0x21e   : > { %15177 = vst [vmem:[#allocation33_spill] sm:$0xff] %v12965_v7  ;;  %8924 = vmatpush1.bf16.msra.mxu0 %v15178_v25  ;;  %v2707_v43 = vpop.f32.mrb[57].mxu1  ;;  %v14726_v46 = vsub.f32 1.0, %v12940_v33  ;;  %v12987_v57 = vmul.f32 %v12503_v59, %v12503_v59  ;;  %v15183_v25 = vpack.c.bf16 %v12858_v61, %v12815_v3  ;;  %4915 = vmatprep.mubr.f32.mxu1 %v14871_v14  ;;  %v14728_v1 = vsub.f32 1.0, %v12948_v22  ;;  %v13008_v3 = vld [vmem:[%s14520_s3 + $0x28] sm:$0xff] }
 0x21f   : > { %15180 = vst [vmem:[#allocation34_spill] sm:$0xff] %v12976_v21  ;;  %v12980_v31 = vmul.f32 %v15181_v35, %v2705_v20  ;;  %8926 = vmatprep.subr.bf16.mxu0 %v8925_v30  ;;  %v3731_v15 = vmul.f32 %v14727_v26, %v2707_v43  ;;  %v2622_v49 = vpop.f32.mrb[58].mxu0  ;;  %v15184_v20 = vld [vmem:[#allocation37_spill] sm:$0xff]  ;;  %v14730_v35 = vsub.f32 1.0, %v12965_v7  ;;  %v13014_v61 = vmul.f32 %v12525_v4, %v12525_v4 }
 0x220   : > { %15182 = vst [vmem:[#allocation35_spill] sm:$0xff] %v12987_v57  ;;  %8932 = vmatpush1.bf16.msra.mxu1 %v15183_v25  ;;  %v12998_v30 = vmul.f32 %v15184_v20, %v15184_v20  ;;  %v13002_v59 = vmul.f32 %v14726_v46, %v2622_v49  ;;  %v2624_v43 = vpop.f32.mrb[59].mxu0  ;;  %8548 = vmatmul.mubr.msk.f32.gmra.mrb[138].mxu0 %vm1291_vm0, %v13008_v3  ;;  %v14732_v49 = vsub.f32 1.0, %v12976_v21 }
 0x221   : > { %8934 = vmatprep.subr.bf16.mxu1 %v8933_v42  ;;  %15186 = vst [vmem:[#allocation8_spill] sm:$0xff] %v13014_v61  ;;  %v2711_v42 = vpop.f32.mrb[58].mxu1  ;;  %v3745_v25 = vmul.f32 %v14728_v1, %v2624_v43  ;;  %4832 = vmatprep.mubr.f32.mxu0 %v14871_v14  ;;  %v13022_v20 = vmul.f32 %v12540_v37, %v12540_v37 }
 0x222   : > { %15185 = vst [vmem:[#allocation10_spill] sm:$0xff] %v12998_v30  ;;  %8928 = vmatpush1.bf16.msra.mxu0 %v8927_v12  ;;  %v8939_v46 = vpack.c.bf16 %v13002_v59, %v12953_v17  ;;  %v13028_v4 = vmul.f32 %v14730_v35, %v2711_v42  ;;  %v2713_v26 = vpop.f32.mrb[59].mxu1  ;;  %8552 = vmatmul.mubr.msk.f32.gmra.mrb[138].mxu1 %vm1291_vm0, %v13008_v3  ;;  %v15188_v12 = vld [vmem:[#allocation21_spill] sm:$0xff]  ;;  %v14738_v59 = vsub.f32 1.0, %v12998_v30  ;;  %v15190_v42 = vld [vmem:[#allocation28_spill] sm:$0xff] }
 0x223   : > { %15187 = vst [vmem:[#allocation11_spill] sm:$0xff] %v13022_v20  ;;  %v13035_v1 = vmul.f32 %v15188_v12, %v15188_v12  ;;  %v8937_v0 = vpack.c.bf16 %v3745_v25, %v3729_v2  ;;  %v3747_v37 = vmul.f32 %v14732_v49, %v2713_v26  ;;  %v2628_v17 = vpop.f32.mrb[60].mxu0  ;;  %4921 = vmatprep.mubr.f32.mxu1 %v14871_v14  ;;  %v15192_v12 = vsub.f32 1.0, %v12987_v57  ;;  %v15193_v26 = vld [vmem:[#allocation27_spill] sm:$0xff] }
 0x224   : > { %8936 = vmatpush1.bf16.msra.mxu1 %v8935_v32  ;;  %v13043_v35 = vmul.f32 %v15190_v42, %v15190_v42  ;;  %v8947_v43 = vpack.c.bf16 %v13028_v4, %v12980_v31  ;;  %v14735_v2 = vsub.f32 1.0, %v13014_v61  ;;  %v2630_v25 = vpop.f32.mrb[61].mxu0  ;;  %v13053_v32 = vld [vmem:[%s14520_s3 + $0x30] sm:$0xff]  ;;  %v13059_v42 = vmul.f32 %v15193_v26, %v15193_v26 }
 0x225   : > { %15189 = vst [vmem:[#allocation18_spill] sm:$0xff] %v13035_v1  ;;  %v3760_v7 = vmul.f32 %v15192_v12, %v2628_v17  ;;  %8549 = vmatmul.mubr.msk.f32.gmra.mrb[140].mxu0 %vm1291_vm0, %v13053_v32  ;;  %v8945_v49 = vpack.c.bf16 %v3747_v37, %v3731_v15  ;;  %v2717_v31 = vpop.f32.mrb[60].mxu1  ;;  %v3761_v4 = vmul.f32 %v14738_v59, %v2630_v25  ;;  %v14736_v17 = vsub.f32 1.0, %v13022_v20 }
 0x226   : > { %15191 = vst [vmem:[#allocation13_spill] sm:$0xff] %v13043_v35  ;;  %15194 = vst [vmem:[#allocation19_spill] sm:$0xff] %v13059_v42  ;;  %8938 = vmatprep.subr.bf16.mxu0 %v8937_v0  ;;  %4838 = vmatprep.mubr.f32.mxu0 %v14871_v14  ;;  %v13067_v12 = vmul.f32 %v12588_v53, %v12588_v53  ;;  %v3762_v57 = vmul.f32 %v14735_v2, %v2717_v31  ;;  %v2719_v21 = vpop.f32.mrb[61].mxu1  ;;  %v14737_v15 = vsub.f32 1.0, %v13035_v1  ;;  %v13084_v2 = vld [vmem:[%s14520_s3 + $0x38] sm:$0xff] }
 0x227   : > { %8553 = vmatmul.mubr.msk.f32.gmra.mrb[140].mxu1 %vm1291_vm0, %v13053_v32  ;;  %v3763_v37 = vmul.f32 %v14736_v17, %v2719_v21  ;;  %8946 = vmatprep.subr.bf16.mxu1 %v8945_v49  ;;  %v2634_v0 = vpop.f32.mrb[62].mxu0  ;;  %v14742_v25 = vsub.f32 1.0, %v13043_v35  ;;  %v14745_v26 = vsub.f32 1.0, %v13059_v42 }
 0x228   : > { %4927 = vmatprep.mubr.f32.mxu1 %v14871_v14  ;;  %v3776_v53 = vmul.f32 %v14737_v15, %v2634_v0  ;;  %v2636_v31 = vpop.f32.mrb[63].mxu0  ;;  %v14747_v17 = vsub.f32 1.0, %v13067_v12 }
 0x229   : > { %8550 = vmatmul.mubr.msk.f32.gmra.mrb[142].mxu0 %vm1291_vm0, %v13084_v2  ;;  %v2723_v21 = vpop.f32.mrb[62].mxu1  ;;  %v3777_v49 = vmul.f32 %v14742_v25, %v2636_v31  ;;  %v15195_v25 = vld [vmem:[#allocation17_spill] sm:$0xff] }
 0x22a   : > { %4998 = vmatprep.mubr.f32.mxu0 %v14871_v14  ;;  %v8943_v0 = vpack.c.bf16 %v3776_v53, %v3760_v7  ;;  %v3778_v15 = vmul.f32 %v14745_v26, %v2723_v21  ;;  %v2725_v59 = vpop.f32.mrb[63].mxu1  ;;  %v15196_v35 = vsub.f32 1.0, %v15195_v25  ;;  %v15197_v26 = vld [vmem:[#allocation6_spill] sm:$0xff] }
 0x22b   : > { %8554 = vmatmul.mubr.msk.f32.gmra.mrb[142].mxu1 %vm1291_vm0, %v13084_v2  ;;  %v8941_v1 = vpack.c.bf16 %v3777_v49, %v3761_v4  ;;  %v3779_v20 = vmul.f32 %v14747_v17, %v2725_v59  ;;  %v15198_v42 = vsub.f32 1.0, %v15197_v26  ;;  %v15199_v59 = vld [vmem:[#allocation9_spill] sm:$0xff] }
 0x22c   : > { %5087 = vmatprep.mubr.f32.mxu1 %v14871_v14  ;;  %v8951_v31 = vpack.c.bf16 %v3778_v15, %v3762_v57  ;;  %v15200_v49 = vsub.f32 1.0, %v15199_v59 }
 0x22d   : > { %v2794_v61 = vpop.f32.mrb[64].mxu0  ;;  %8555 = vmatmul.mubr.msk.f32.vlgmr.msra.gmra.mrb[144].mxu0 %vm1291_vm0, %v12959_v38  ;;  %v8949_v53 = vpack.c.bf16 %v3779_v20, %v3763_v37 }
 0x22e   : > { %v13101_v30 = vmul.f32 %v15196_v35, %v2794_v61  ;;  %v2796_v7 = vpop.f32.mrb[65].mxu0  ;;  %8940 = vmatpush1.bf16.msra.mxu0 %v8939_v46  ;;  %5004 = vmatprep.mubr.f32.mxu0 %v14871_v14  ;;  %v15201_v35 = vld [vmem:[#allocation7_spill] sm:$0xff]  ;;  %v15203_v46 = vld [vmem:[#allocation12_spill] sm:$0xff] }
 0x22f   : > { %v2883_v21 = vpop.f32.mrb[64].mxu1  ;;  %v3781_v4 = vmul.f32 %v15198_v42, %v2796_v7  ;;  %8559 = vmatmul.mubr.msk.f32.vlgmr.msra.gmra.mrb[144].mxu1 %vm1291_vm0, %v12959_v38  ;;  %8942 = vmatprep.subr.bf16.mxu0 %v8941_v1  ;;  %v15202_v61 = vsub.f32 1.0, %v15201_v35  ;;  %v15204_v42 = vsub.f32 1.0, %v15203_v46  ;;  %v15205_v7 = vld [vmem:[#allocation23_spill] sm:$0xff] }
 0x230   : > { %v13110_v17 = vmul.f32 %v15200_v49, %v2883_v21  ;;  %v2885_v57 = vpop.f32.mrb[65].mxu1  ;;  %8948 = vmatpush1.bf16.msra.mxu1 %v8947_v43  ;;  %5093 = vmatprep.mubr.f32.mxu1 %v14871_v14  ;;  %v15206_v21 = vsub.f32 1.0, %v15205_v7  ;;  %v15207_v43 = vld [vmem:[#allocation24_spill] sm:$0xff] }
 0x231   : > { %v3783_v15 = vmul.f32 %v15202_v61, %v2885_v57  ;;  %v2800_v20 = vpop.f32.mrb[66].mxu0  ;;  %8950 = vmatprep.subr.bf16.mxu1 %v8949_v53  ;;  %8556 = vmatmul.mubr.msk.f32.gmra.mrb[146].mxu0 %vm1291_vm0, %v13008_v3  ;;  %v15208_v49 = vsub.f32 1.0, %v15207_v43  ;;  %v15209_v61 = vld [vmem:[#allocation14_spill] sm:$0xff]  ;;  %v15213_v43 = vld [vmem:[#allocation16_spill] sm:$0xff] }
 0x232   : > { %v3796_v37 = vmul.f32 %v15204_v42, %v2800_v20  ;;  %v2802_v25 = vpop.f32.mrb[67].mxu0  ;;  %8944 = vmatpush1.bf16.msra.mxu0 %v8943_v0  ;;  %5010 = vmatprep.mubr.f32.mxu0 %v14871_v14  ;;  %v15210_v20 = vsub.f32 1.0, %v15209_v61 }
 0x233   : > { %v2889_v26 = vpop.f32.mrb[66].mxu1  ;;  %v3797_v59 = vmul.f32 %v15206_v21, %v2802_v25  ;;  %8560 = vmatmul.mubr.msk.f32.gmra.mrb[146].mxu1 %vm1291_vm0, %v13008_v3  ;;  %v15211_v25 = vld [vmem:[#allocation25_spill] sm:$0xff] }
 0x234   : > { %v8955_v1 = vpack.c.bf16 %v3796_v37, %v13101_v30  ;;  %v3798_v57 = vmul.f32 %v15208_v49, %v2889_v26  ;;  %v2891_v53 = vpop.f32.mrb[67].mxu1  ;;  %8952 = vmatpush1.bf16.msra.mxu1 %v8951_v31  ;;  %5099 = vmatprep.mubr.f32.mxu1 %v14871_v14  ;;  %v15212_v7 = vsub.f32 1.0, %v15211_v25  ;;  %v15215_v31 = vld [vmem:[#allocation26_spill] sm:$0xff] }
 0x235   : > { %v8953_v35 = vpack.c.bf16 %v3797_v59, %v3781_v4  ;;  %v3799_v46 = vmul.f32 %v15210_v20, %v2891_v53  ;;  %v2806_v42 = vpop.f32.mrb[68].mxu0  ;;  %8557 = vmatmul.mubr.msk.f32.gmra.mrb[148].mxu0 %vm1291_vm0, %v13053_v32  ;;  %v15214_v4 = vsub.f32 1.0, %v15213_v43  ;;  %v15216_v49 = vsub.f32 1.0, %v15215_v31 }
 0x236   : > { %v8963_v0 = vpack.c.bf16 %v3798_v57, %v13110_v17  ;;  %v3812_v30 = vmul.f32 %v15212_v7, %v2806_v42  ;;  %v2808_v37 = vpop.f32.mrb[69].mxu0  ;;  %5016 = vmatprep.mubr.f32.mxu0 %v14871_v14  ;;  %v15217_v17 = vld [vmem:[#allocation20_spill] sm:$0xff] }
 0x237   : > { %v8961_v26 = vpack.c.bf16 %v3799_v46, %v3783_v15  ;;  %v2895_v21 = vpop.f32.mrb[68].mxu1  ;;  %v3813_v59 = vmul.f32 %v15214_v4, %v2808_v37  ;;  %8954 = vmatprep.subr.bf16.mxu0 %v8953_v35  ;;  %8561 = vmatmul.mubr.msk.f32.gmra.mrb[148].mxu1 %vm1291_vm0, %v13053_v32  ;;  %v15218_v57 = vsub.f32 1.0, %v15217_v17  ;;  %v15219_v15 = vld [vmem:[#allocation22_spill] sm:$0xff]  ;;  %v15221_v37 = vsub.f32 1.0, %v12548_v47 }
 0x238   : > { %v3814_v53 = vmul.f32 %v15216_v49, %v2895_v21  ;;  %v2897_v61 = vpop.f32.mrb[69].mxu1  ;;  %5105 = vmatprep.mubr.f32.mxu1 %v14871_v14  ;;  %v15220_v46 = vsub.f32 1.0, %v15219_v15  ;;  %v15222_v4 = vsub.f32 1.0, %v12562_v48  ;;  %v15224_v47 = vsub.f32 1.0, %v12586_v52 }
 0x239   : > { %v3815_v20 = vmul.f32 %v15218_v57, %v2897_v61  ;;  %8962 = vmatprep.subr.bf16.mxu1 %v8961_v26  ;;  %v2812_v42 = vpop.f32.mrb[70].mxu0  ;;  %8558 = vmatmul.mubr.msk.f32.gmra.mrb[150].mxu0 %vm1291_vm0, %v13084_v2  ;;  %v15223_v61 = vsub.f32 1.0, %v12571_v50  ;;  %v15226_v50 = vsub.f32 1.0, %v12606_v55  ;;  %v15227_v52 = vsub.f32 1.0, %v12613_v24 }
 0x23a   : > { %v3828_v25 = vmul.f32 %v15220_v46, %v2812_v42  ;;  %v2814_v35 = vpop.f32.mrb[71].mxu0  ;;  %5176 = vmatprep.mubr.f32.mxu0 %v14871_v14 }
 0x23b   : > { %v2901_v7 = vpop.f32.mrb[70].mxu1  ;;  %v3829_v21 = vmul.f32 %v15221_v37, %v2814_v35  ;;  %8562 = vmatmul.mubr.msk.f32.gmra.mrb[150].mxu1 %vm1291_vm0, %v13084_v2 }
 0x23c   : > { %v8959_v43 = vpack.c.bf16 %v3828_v25, %v3812_v30  ;;  %v3830_v26 = vmul.f32 %v15222_v4, %v2901_v7  ;;  %v2903_v31 = vpop.f32.mrb[71].mxu1  ;;  %5265 = vmatprep.mubr.f32.mxu1 %v14871_v14  ;;  %v15225_v25 = vsub.f32 1.0, %v12597_v51  ;;  %v15228_v51 = vsub.f32 1.0, %v12621_v56 }
 0x23d   : > { %v8957_v49 = vpack.c.bf16 %v3829_v21, %v3813_v59  ;;  %v3831_v17 = vmul.f32 %v15223_v61, %v2903_v31  ;;  %v2972_v57 = vpop.f32.mrb[72].mxu0  ;;  %8563 = vmatmul.mubr.msk.f32.vlgmr.msra.gmra.mrb[152].mxu0 %vm1291_vm0, %v12959_v38  ;;  %v15229_v21 = vsub.f32 1.0, %v12628_v54 }
 0x23e   : > { %v8967_v42 = vpack.c.bf16 %v3830_v26, %v3814_v53  ;;  %v13163_v15 = vmul.f32 %v15224_v47, %v2972_v57  ;;  %v2974_v30 = vpop.f32.mrb[73].mxu0  ;;  %8956 = vmatpush1.bf16.msra.mxu0 %v8955_v1  ;;  %5182 = vmatprep.mubr.f32.mxu0 %v14871_v14 }
 0x23f   : > { %v8965_v48 = vpack.c.bf16 %v3831_v17, %v3815_v20  ;;  %v3061_v46 = vpop.f32.mrb[72].mxu1  ;;  %v3785_v59 = vmul.f32 %v15225_v25, %v2974_v30  ;;  %8567 = vmatmul.mubr.msk.f32.vlgmr.msra.gmra.mrb[152].mxu1 %vm1291_vm0, %v12959_v38  ;;  %8958 = vmatprep.subr.bf16.mxu0 %v8957_v49  ;;  %v15231_v49 = vsub.f32 1.0, %v12651_v45  ;;  %v15233_v30 = vsub.f32 1.0, %v12673_v10 }
 0x240   : > { %v13172_v35 = vmul.f32 %v15226_v50, %v3061_v46  ;;  %v3063_v53 = vpop.f32.mrb[73].mxu1  ;;  %8964 = vmatpush1.bf16.msra.mxu1 %v8963_v0  ;;  %5271 = vmatprep.mubr.f32.mxu1 %v14871_v14  ;;  %v15230_v0 = vsub.f32 1.0, %v12640_v29  ;;  %v15234_v45 = vsub.f32 1.0, %v12684_v63  ;;  %v15236_v10 = vsub.f32 1.0, %v12705_v11 }
 0x241   : > { %v3787_v7 = vmul.f32 %v15227_v52, %v3063_v53  ;;  %v2978_v20 = vpop.f32.mrb[74].mxu0  ;;  %8966 = vmatprep.subr.bf16.mxu1 %v8965_v48  ;;  %8564 = vmatmul.mubr.msk.f32.gmra.mrb[154].mxu0 %vm1291_vm0, %v13008_v3  ;;  %v15237_v53 = vsub.f32 1.0, %v12713_v6  ;;  %v15240_v6 = vsub.f32 1.0, %v12745_v62  ;;  %v15243_v62 = vsub.f32 1.0, %v12770_v36 }
 0x242   : > { %v3800_v1 = vmul.f32 %v15228_v51, %v2978_v20  ;;  %v2980_v37 = vpop.f32.mrb[75].mxu0  ;;  %8960 = vmatpush1.bf16.msra.mxu0 %v8959_v43  ;;  %5188 = vmatprep.mubr.f32.mxu0 %v14871_v14  ;;  %v15232_v43 = vsub.f32 1.0, %v12662_v23  ;;  %v15235_v23 = vsub.f32 1.0, %v12692_v9  ;;  %v15238_v9 = vsub.f32 1.0, %v12726_v34 }
 0x243   : > { %v3067_v55 = vpop.f32.mrb[74].mxu1  ;;  %v3801_v4 = vmul.f32 %v15229_v21, %v2980_v37  ;;  %8568 = vmatmul.mubr.msk.f32.gmra.mrb[154].mxu1 %vm1291_vm0, %v13008_v3 }
 0x244   : > { %v8971_v24 = vpack.c.bf16 %v3800_v1, %v13163_v15  ;;  %v3802_v26 = vmul.f32 %v15230_v0, %v3067_v55  ;;  %v3069_v31 = vpop.f32.mrb[75].mxu1  ;;  %8968 = vmatpush1.bf16.msra.mxu1 %v8967_v42  ;;  %5277 = vmatprep.mubr.f32.mxu1 %v14871_v14  ;;  %v15239_v1 = vsub.f32 1.0, %v12734_v27  ;;  %v15242_v27 = vsub.f32 1.0, %v12762_v58 }
 0x245   : > { %v8969_v56 = vpack.c.bf16 %v3801_v4, %v3785_v59  ;;  %v3803_v61 = vmul.f32 %v15231_v49, %v3069_v31  ;;  %v2984_v17 = vpop.f32.mrb[76].mxu0  ;;  %8565 = vmatmul.mubr.msk.f32.gmra.mrb[156].mxu0 %vm1291_vm0, %v13053_v32  ;;  %v15241_v31 = vsub.f32 1.0, %v12753_v28  ;;  %v15244_v28 = vsub.f32 1.0, %v12780_v60 }
 0x246   : > { %v8979_v54 = vpack.c.bf16 %v3802_v26, %v13172_v35  ;;  %v3816_v57 = vmul.f32 %v15232_v43, %v2984_v17  ;;  %v2986_v47 = vpop.f32.mrb[77].mxu0  ;;  %5194 = vmatprep.mubr.f32.mxu0 %v14871_v14 }
 0x247   : > { %v8977_v29 = vpack.c.bf16 %v3803_v61, %v3787_v7  ;;  %v3073_v15 = vpop.f32.mrb[76].mxu1  ;;  %v3817_v48 = vmul.f32 %v15233_v30, %v2986_v47  ;;  %8970 = vmatprep.subr.bf16.mxu0 %v8969_v56  ;;  %8569 = vmatmul.mubr.msk.f32.gmra.mrb[156].mxu1 %vm1291_vm0, %v13053_v32  ;;  %v15245_v47 = vsub.f32 1.0, %v12788_v44 }
 0x248   : > { %v3818_v42 = vmul.f32 %v15234_v45, %v3073_v15  ;;  %v3075_v46 = vpop.f32.mrb[77].mxu1  ;;  %5283 = vmatprep.mubr.f32.mxu1 %v14871_v14 }
 0x249   : > { %v3819_v25 = vmul.f32 %v15235_v23, %v3075_v46  ;;  %8978 = vmatprep.subr.bf16.mxu1 %v8977_v29  ;;  %v2990_v59 = vpop.f32.mrb[78].mxu0  ;;  %8566 = vmatmul.mubr.msk.f32.gmra.mrb[158].mxu0 %vm1291_vm0, %v13084_v2  ;;  %v15248_v46 = vsub.f32 1.0, %v12822_v5  ;;  %v15251_v5 = vld [vmem:[#allocation29_spill] sm:$0xff] }
 0x24a   : > { %v3832_v50 = vmul.f32 %v15236_v10, %v2990_v59  ;;  %v2992_v35 = vpop.f32.mrb[79].mxu0  ;;  %5354 = vmatprep.mubr.f32.mxu0 %v14871_v14  ;;  %v15249_v10 = vsub.f32 1.0, %v12833_v39 }
 0x24b   : > { %v3079_v63 = vpop.f32.mrb[78].mxu1  ;;  %v3833_v52 = vmul.f32 %v15237_v53, %v2992_v35  ;;  %8570 = vmatmul.mubr.msk.f32.gmra.mrb[158].mxu1 %vm1291_vm0, %v13084_v2  ;;  %v15252_v53 = vsub.f32 1.0, %v15251_v5 }
 0x24c   : > { %v8975_v7 = vpack.c.bf16 %v3832_v50, %v3816_v57  ;;  %v3834_v20 = vmul.f32 %v15238_v9, %v3079_v63  ;;  %v3081_v51 = vpop.f32.mrb[79].mxu1  ;;  %5443 = vmatprep.mubr.f32.mxu1 %v14871_v14  ;;  %v15253_v9 = vld [vmem:[#allocation30_spill] sm:$0xff] }
 0x24d   : > { %v8973_v11 = vpack.c.bf16 %v3833_v52, %v3817_v48  ;;  %v3835_v37 = vmul.f32 %v15239_v1, %v3081_v51  ;;  %v3150_v55 = vpop.f32.mrb[80].mxu0  ;;  %8571 = vmatmul.mubr.msk.f32.vlgmr.msra.gmra.mrb[160].mxu0 %vm1291_vm0, %v12959_v38  ;;  %v15247_v48 = vsub.f32 1.0, %v12811_v40  ;;  %v15250_v40 = vsub.f32 1.0, %v12844_v8 }
 0x24e   : > { %v8983_v21 = vpack.c.bf16 %v3834_v20, %v3818_v42  ;;  %v13225_v4 = vmul.f32 %v15240_v6, %v3150_v55  ;;  %v3152_v0 = vpop.f32.mrb[81].mxu0  ;;  %8972 = vmatpush1.bf16.msra.mxu0 %v8971_v24  ;;  %5360 = vmatprep.mubr.f32.mxu0 %v14871_v14  ;;  %v15254_v39 = vsub.f32 1.0, %v15253_v9  ;;  %v15275_v9 = vld [vmem:[#allocation8_spill] sm:$0xff] }
 0x24f   : > { %v8981_v34 = vpack.c.bf16 %v3835_v37, %v3819_v25  ;;  %v3239_v26 = vpop.f32.mrb[80].mxu1  ;;  %v3789_v56 = vmul.f32 %v15241_v31, %v3152_v0  ;;  %8575 = vmatmul.mubr.msk.f32.vlgmr.msra.gmra.mrb[160].mxu1 %vm1291_vm0, %v12959_v38  ;;  %8974 = vmatprep.subr.bf16.mxu0 %v8973_v11  ;;  %v15255_v11 = vld [vmem:[#allocation31_spill] sm:$0xff] }
 0x250   : > { %v13234_v49 = vmul.f32 %v15242_v27, %v3239_v26  ;;  %v3241_v61 = vpop.f32.mrb[81].mxu1  ;;  %8980 = vmatpush1.bf16.msra.mxu1 %v8979_v54  ;;  %5449 = vmatprep.mubr.f32.mxu1 %v14871_v14  ;;  %v15246_v54 = vsub.f32 1.0, %v12800_v13  ;;  %v15256_v1 = vsub.f32 1.0, %v15255_v11 }
 0x251   : > { %v3791_v17 = vmul.f32 %v15243_v62, %v3241_v61  ;;  %v3156_v43 = vpop.f32.mrb[82].mxu0  ;;  %8982 = vmatprep.subr.bf16.mxu1 %v8981_v34  ;;  %8572 = vmatmul.mubr.msk.f32.gmra.mrb[162].mxu0 %vm1291_vm0, %v13008_v3  ;;  %v15258_v34 = vld [vmem:[#allocation32_spill] sm:$0xff] }
 0x252   : > { %v3804_v24 = vmul.f32 %v15244_v28, %v3156_v43  ;;  %v3158_v57 = vpop.f32.mrb[83].mxu0  ;;  %8976 = vmatpush1.bf16.msra.mxu0 %v8975_v7  ;;  %5366 = vmatprep.mubr.f32.mxu0 %v14871_v14  ;;  %v15259_v26 = vsub.f32 1.0, %v15258_v34  ;;  %v15262_v28 = vsub.f32 1.0, %v12913_v41  ;;  %v15265_v41 = vsub.f32 1.0, %v12940_v33  ;;  %v15281_v34 = vld [vmem:[#allocation13_spill] sm:$0xff] }
 0x253   : > { %v3245_v58 = vpop.f32.mrb[82].mxu1  ;;  %v3805_v29 = vmul.f32 %v15245_v47, %v3158_v57  ;;  %8576 = vmatmul.mubr.msk.f32.gmra.mrb[162].mxu1 %vm1291_vm0, %v13008_v3  ;;  %v15263_v57 = vsub.f32 1.0, %v12922_v18 }
 0x254   : > { %v8987_v36 = vpack.c.bf16 %v3804_v24, %v13225_v4  ;;  %v3806_v15 = vmul.f32 %v15246_v54, %v3245_v58  ;;  %v3247_v30 = vpop.f32.mrb[83].mxu1  ;;  %8984 = vmatpush1.bf16.msra.mxu1 %v8983_v21  ;;  %5455 = vmatprep.mubr.f32.mxu1 %v14871_v14  ;;  %v15257_v21 = vsub.f32 1.0, %v12886_v16 }
 0x255   : > { %v8985_v60 = vpack.c.bf16 %v3805_v29, %v3789_v56  ;;  %v3807_v45 = vmul.f32 %v15247_v48, %v3247_v30  ;;  %v3162_v42 = vpop.f32.mrb[84].mxu0  ;;  %8573 = vmatmul.mubr.msk.f32.gmra.mrb[164].mxu0 %vm1291_vm0, %v13053_v32  ;;  %v15264_v29 = vsub.f32 1.0, %v12930_v19 }
 0x256   : > { %v8995_v44 = vpack.c.bf16 %v3806_v15, %v13234_v49  ;;  %v3820_v23 = vmul.f32 %v15248_v46, %v3162_v42  ;;  %v3164_v25 = vpop.f32.mrb[85].mxu0  ;;  %5372 = vmatprep.mubr.f32.mxu0 %v14871_v14  ;;  %v15260_v49 = vld [vmem:[#allocation5_spill] sm:$0xff] }
 0x257   : > { %v8993_v13 = vpack.c.bf16 %v3807_v45, %v3791_v17  ;;  %v3251_v59 = vpop.f32.mrb[84].mxu1  ;;  %v3821_v50 = vmul.f32 %v15249_v10, %v3164_v25  ;;  %8986 = vmatprep.subr.bf16.mxu0 %v8985_v60  ;;  %8577 = vmatmul.mubr.msk.f32.gmra.mrb[164].mxu1 %vm1291_vm0, %v13053_v32  ;;  %v15261_v61 = vsub.f32 1.0, %v15260_v49  ;;  %v15266_v60 = vsub.f32 1.0, %v12948_v22  ;;  %v15267_v45 = vld [vmem:[#allocation33_spill] sm:$0xff]  ;;  %v15271_v10 = vld [vmem:[#allocation35_spill] sm:$0xff] }
 0x258   : > { %v3822_v35 = vmul.f32 %v15250_v40, %v3251_v59  ;;  %v3253_v63 = vpop.f32.mrb[85].mxu1  ;;  %5461 = vmatprep.mubr.f32.mxu1 %v14871_v14  ;;  %v15268_v42 = vsub.f32 1.0, %v15267_v45 }
 0x259   : > { %v3823_v52 = vmul.f32 %v15252_v53, %v3253_v63  ;;  %8994 = vmatprep.subr.bf16.mxu1 %v8993_v13  ;;  %v3168_v7 = vpop.f32.mrb[86].mxu0  ;;  %8574 = vmatmul.mubr.msk.f32.gmra.mrb[166].mxu0 %vm1291_vm0, %v13084_v2  ;;  %v15273_v53 = vld [vmem:[#allocation10_spill] sm:$0xff] }
 0x25a   : > { %v3836_v20 = vmul.f32 %v15254_v39, %v3168_v7  ;;  %v3170_v51 = vpop.f32.mrb[87].mxu0  ;;  %5532 = vmatprep.mubr.f32.mxu0 %v14871_v14  ;;  %v15276_v39 = vsub.f32 1.0, %v15275_v9 }
 0x25b   : > { %v3257_v8 = vpop.f32.mrb[86].mxu1  ;;  %v3837_v37 = vmul.f32 %v15256_v1, %v3170_v51  ;;  %8578 = vmatmul.mubr.msk.f32.gmra.mrb[166].mxu1 %vm1291_vm0, %v13084_v2 }
 0x25c   : > { %v8991_v55 = vpack.c.bf16 %v3836_v20, %v3820_v23  ;;  %v3838_v6 = vmul.f32 %v15257_v21, %v3257_v8  ;;  %v3259_v4 = vpop.f32.mrb[87].mxu1  ;;  %5621 = vmatprep.mubr.f32.mxu1 %v14871_v14  ;;  %v15269_v23 = vld [vmem:[#allocation34_spill] sm:$0xff]  ;;  %v15277_v8 = vld [vmem:[#allocation11_spill] sm:$0xff] }
 0x25d   : > { %v8989_v0 = vpack.c.bf16 %v3837_v37, %v3821_v50  ;;  %v3839_v31 = vmul.f32 %v15259_v26, %v3259_v4  ;;  %v3328_v56 = vpop.f32.mrb[88].mxu0  ;;  %8579 = vmatmul.mubr.msk.f32.vlgmr.msra.gmra.mrb[168].mxu0 %vm1291_vm0, %v12959_v38  ;;  %v15270_v25 = vsub.f32 1.0, %v15269_v23  ;;  %v15272_v50 = vsub.f32 1.0, %v15271_v10 }
 0x25e   : > { %v8999_v27 = vpack.c.bf16 %v3838_v6, %v3822_v35  ;;  %v13287_v62 = vmul.f32 %v15261_v61, %v3328_v56  ;;  %v3330_v17 = vpop.f32.mrb[89].mxu0  ;;  %8988 = vmatpush1.bf16.msra.mxu0 %v8987_v36  ;;  %5538 = vmatprep.mubr.f32.mxu0 %v14871_v14  ;;  %v15278_v11 = vsub.f32 1.0, %v15277_v8  ;;  %v15282_v26 = vsub.f32 1.0, %v15281_v34 }
 0x25f   : > { %v8997_v16 = vpack.c.bf16 %v3839_v31, %v3823_v52  ;;  %v3417_v43 = vpop.f32.mrb[88].mxu1  ;;  %v3793_v24 = vmul.f32 %v15262_v28, %v3330_v17  ;;  %8583 = vmatmul.mubr.msk.f32.vlgmr.msra.gmra.mrb[168].mxu1 %vm1291_vm0, %v12959_v38  ;;  %8990 = vmatprep.subr.bf16.mxu0 %v8989_v0  ;;  %v15274_v52 = vsub.f32 1.0, %v15273_v53 }
 0x260   : > { %v3794_v58 = vmul.f32 %v15263_v57, %v3417_v43  ;;  %v3419_v47 = vpop.f32.mrb[89].mxu1  ;;  %8996 = vmatpush1.bf16.msra.mxu1 %v8995_v44  ;;  %5627 = vmatprep.mubr.f32.mxu1 %v14871_v14 }
 0x261   : > { %v3795_v54 = vmul.f32 %v15264_v29, %v3419_v47  ;;  %v3334_v15 = vpop.f32.mrb[90].mxu0  ;;  %8998 = vmatprep.subr.bf16.mxu1 %v8997_v16  ;;  %8580 = vmatmul.mubr.msk.f32.gmra.mrb[170].mxu0 %vm1291_vm0, %v13008_v3  ;;  %v15285_v16 = vsub.f32 1.0, %v13067_v12 }
 0x262   : > { %v3808_v36 = vmul.f32 %v15265_v41, %v3334_v15  ;;  %v3336_v30 = vpop.f32.mrb[91].mxu0  ;;  %8992 = vmatpush1.bf16.msra.mxu0 %v8991_v55  ;;  %5544 = vmatprep.mubr.f32.mxu0 %v14871_v14  ;;  %v15279_v55 = vld [vmem:[#allocation18_spill] sm:$0xff] }
 0x263   : > { %v3423_v18 = vpop.f32.mrb[90].mxu1  ;;  %v3809_v48 = vmul.f32 %v15266_v60, %v3336_v30  ;;  %8584 = vmatmul.mubr.msk.f32.gmra.mrb[170].mxu1 %vm1291_vm0, %v13008_v3  ;;  %v15280_v21 = vsub.f32 1.0, %v15279_v55 }
 0x264   : > { %v9003_v19 = vpack.c.bf16 %v3808_v36, %v13287_v62  ;;  %v3810_v44 = vmul.f32 %v15268_v42, %v3423_v18  ;;  %v3425_v46 = vpop.f32.mrb[91].mxu1  ;;  %9000 = vmatpush1.bf16.msra.mxu1 %v8999_v27  ;;  %5633 = vmatprep.mubr.f32.mxu1 %v14871_v14  ;;  %v15283_v27 = vld [vmem:[#allocation19_spill] sm:$0xff] }
 0x265   : > { %v9001_v33 = vpack.c.bf16 %v3809_v48, %v3793_v24  ;;  %v3811_v13 = vmul.f32 %v15270_v25, %v3425_v46  ;;  %v3340_v59 = vpop.f32.mrb[92].mxu0  ;;  %8581 = vmatmul.mubr.msk.f32.gmra.mrb[172].mxu0 %vm1291_vm0, %v13053_v32  ;;  %v15284_v49 = vsub.f32 1.0, %v15283_v27 }
 0x266   : > { %v9011_v22 = vpack.c.bf16 %v3810_v44, %v3794_v58  ;;  %v3824_v40 = vmul.f32 %v15272_v50, %v3340_v59  ;;  %v3342_v35 = vpop.f32.mrb[93].mxu0  ;;  %5550 = vmatprep.mubr.f32.mxu0 %v14871_v14 }
 0x267   : > { %v9009_v63 = vpack.c.bf16 %v3811_v13, %v3795_v54  ;;  %v3429_v5 = vpop.f32.mrb[92].mxu1  ;;  %v3825_v7 = vmul.f32 %v15274_v52, %v3342_v35  ;;  %9002 = vmatprep.subr.bf16.mxu0 %v9001_v33  ;;  %8585 = vmatmul.mubr.msk.f32.gmra.mrb[172].mxu1 %vm1291_vm0, %v13053_v32  ;;  %v13397_v54 = vpop.permute.xlu1 %6009 }
 0x268   : > { %v3826_v20 = vmul.f32 %v15276_v39, %v3429_v5  ;;  %v3431_v51 = vpop.f32.mrb[93].mxu1  ;;  %5639 = vmatprep.mubr.f32.mxu1 %v14871_v14 }
 0x269   : > { %v3827_v1 = vmul.f32 %v15278_v11, %v3431_v51  ;;  %9010 = vmatprep.subr.bf16.mxu1 %v9009_v63  ;;  %v3346_v37 = vpop.f32.mrb[94].mxu0  ;;  %8582 = vmatmul.mubr.msk.f32.gmra.mrb[174].mxu0 %vm1291_vm0, %v13084_v2 }
 0x26a   : > { %v3840_v6 = vmul.f32 %v15280_v21, %v3346_v37  ;;  %v3348_v4 = vpop.f32.mrb[95].mxu0  ;;  %5710 = vmatprep.mubr.f32.mxu0 %v14871_v14 }
 0x26b   : > { %v3435_v0 = vpop.f32.mrb[94].mxu1  ;;  %v3841_v31 = vmul.f32 %v15282_v26, %v3348_v4  ;;  %8586 = vmatmul.mubr.msk.f32.gmra.mrb[174].mxu1 %vm1291_vm0, %v13084_v2  ;;  %v13409_v59 = vpop.permute.xlu1 %6019 }
 0x26c   : > { %v9007_v56 = vpack.c.bf16 %v3840_v6, %v3824_v40  ;;  %v3842_v61 = vmul.f32 %v15284_v49, %v3435_v0  ;;  %v3437_v62 = vpop.f32.mrb[95].mxu1  ;;  %5799 = vmatprep.mubr.f32.mxu1 %v14871_v14 }
 0x26d   : > { %v9005_v17 = vpack.c.bf16 %v3841_v31, %v3825_v7  ;;  %v3843_v43 = vmul.f32 %v15285_v16, %v3437_v62  ;;  %8587 = vmatmul.mubr.msk.f32.vlgmr.msra.gmra.mrb[176].mxu0 %vm1291_vm0, %v12959_v38 }
 0x26e   : > { %v9015_v28 = vpack.c.bf16 %v3842_v61, %v3826_v20  ;;  %9004 = vmatpush1.bf16.msra.mxu0 %v9003_v19  ;;  %5716 = vmatprep.mubr.f32.mxu0 %v14871_v14 }
 0x26f   : > { %v9013_v24 = vpack.c.bf16 %v3843_v43, %v3827_v1  ;;  %8591 = vmatmul.mubr.msk.f32.vlgmr.msra.gmra.mrb[176].mxu1 %vm1291_vm0, %v12959_v38  ;;  %9006 = vmatprep.subr.bf16.mxu0 %v9005_v17 }
 0x270   : > { %9012 = vmatpush1.bf16.msra.mxu1 %v9011_v22  ;;  %5805 = vmatprep.mubr.f32.mxu1 %v14871_v14 }
 0x271   : > { %9014 = vmatprep.subr.bf16.mxu1 %v9013_v24  ;;  %8588 = vmatmul.mubr.msk.f32.gmra.mrb[178].mxu0 %vm1291_vm0, %v13008_v3 }
 0x272   : > { %9008 = vmatpush1.bf16.msra.mxu0 %v9007_v56  ;;  %5722 = vmatprep.mubr.f32.mxu0 %v14871_v14 }
 0x273   : > { %8592 = vmatmul.mubr.msk.f32.gmra.mrb[178].mxu1 %vm1291_vm0, %v13008_v3 }
 0x274   : > { %9016 = vmatpush1.bf16.msra.mxu1 %v9015_v28  ;;  %5811 = vmatprep.mubr.f32.mxu1 %v14871_v14 }
 0x275   : > { %8589 = vmatmul.mubr.msk.f32.gmra.mrb[180].mxu0 %vm1291_vm0, %v13053_v32 }
 0x276   : > { %5728 = vmatprep.mubr.f32.mxu0 %v14871_v14 }
 0x277   : > { %8593 = vmatmul.mubr.msk.f32.gmra.mrb[180].mxu1 %vm1291_vm0, %v13053_v32 }
 0x278   : > { %5817 = vmatprep.mubr.f32.mxu1 %v14871_v14 }
 0x279   : > { %8590 = vmatmul.mubr.msk.f32.gmra.mrb[182].mxu0 %vm1291_vm0, %v13084_v2 }
 0x27a   : > { %5888 = vmatprep.mubr.f32.mxu0 %v14871_v14 }
 0x27b   : > { %8594 = vmatmul.mubr.msk.f32.gmra.mrb[182].mxu1 %vm1291_vm0, %v13084_v2 }
 0x27c   : > { %5977 = vmatprep.mubr.f32.mxu1 %v14871_v14 }
 0x27d   : > { %8595 = vmatmul.mubr.msk.f32.vlgmr.msra.gmra.mrb[184].mxu0 %vm1291_vm0, %v12959_v38 }
 0x27e   : > { %5894 = vmatprep.mubr.f32.mxu0 %v14871_v14 }
 0x27f   : > { %8599 = vmatmul.mubr.msk.f32.vlgmr.msra.gmra.mrb[184].mxu1 %vm1291_vm0, %v12959_v38  ;;  %v13392_v38 = vpop.permute.xlu0 %6004 }
 0x280   : > { %5983 = vmatprep.mubr.f32.mxu1 %v14871_v14 }
 0x281   : > { %8596 = vmatmul.mubr.msk.f32.gmra.mrb[186].mxu0 %vm1291_vm0, %v13008_v3 }
 0x282   : > { %5900 = vmatprep.mubr.f32.mxu0 %v14871_v14 }
 0x283   : > { %8600 = vmatmul.mubr.msk.f32.gmra.mrb[186].mxu1 %vm1291_vm0, %v13008_v3  ;;  %v13403_v19 = vpop.permute.xlu0 %6014 }
 0x284   : > { %5989 = vmatprep.mubr.f32.mxu1 %v14871_v14 }
 0x285   : > { %8597 = vmatmul.mubr.msk.f32.gmra.mrb[188].mxu0 %vm1291_vm0, %v13053_v32 }
 0x286   : > { %5906 = vmatprep.mubr.f32.mxu0 %v14871_v14 }
 0x287   : > { %8601 = vmatmul.mubr.msk.f32.gmra.mrb[188].mxu1 %vm1291_vm0, %v13053_v32 }
 0x288   : > { %5995 = vmatprep.mubr.f32.mxu1 %v14871_v14 }
 0x289   : > { %8598 = vmatmul.mubr.msk.f32.gmra.mrb[190].mxu0 %vm1291_vm0, %v13084_v2 }
 0x28a   : > { %6475 = vmatprep.mubr.f32.mxu0 %v14871_v14 }
 0x28b   : > { %8602 = vmatmul.mubr.msk.f32.gmra.mrb[190].mxu1 %vm1291_vm0, %v13084_v2 }
 0x28c   : > { %6546 = vmatprep.mubr.f32.mxu1 %v14871_v14 }
 0x28f   : > { %v3932_v3 = vpop.f32.mrb[96].mxu0 }
 0x290   : > { %v6022_v12 = vadd.f32 %v13392_v38, %v3932_v3  ;;  %v3934_v57 = vpop.f32.mrb[97].mxu0 }
 0x291   : > { %v4021_v58 = vpop.f32.mrb[96].mxu1  ;;  %v6023_v32 = vadd.f32 %v13392_v38, %v3934_v57 }
 0x292   : > { %9517 = vtanh.f32 %v6022_v12  ;;  %v6024_v47 = vadd.f32 %v13392_v38, %v4021_v58  ;;  %v4023_v29 = vpop.f32.mrb[97].mxu1 }
 0x293   : > { %9519 = vtanh.f32 %v6023_v32  ;;  %v6025_v2 = vadd.f32 %v13392_v38, %v4023_v29  ;;  %v3938_v15 = vpop.f32.mrb[98].mxu0 }
 0x294   : > { %9521 = vtanh.f32 %v6024_v47  ;;  %v6038_v41 = vadd.f32 %v13397_v54, %v3938_v15  ;;  %v3940_v36 = vpop.f32.mrb[99].mxu0 }
 0x295   : > { %9523 = vtanh.f32 %v6025_v2  ;;  %v4027_v30 = vpop.f32.mrb[98].mxu1  ;;  %v6039_v18 = vadd.f32 %v13397_v54, %v3940_v36 }
 0x296   : > { %9525 = vtanh.f32 %v6038_v41  ;;  %v6040_v60 = vadd.f32 %v13397_v54, %v4027_v30  ;;  %v4029_v48 = vpop.f32.mrb[99].mxu1 }
 0x297   : > { %9527 = vtanh.f32 %v6039_v18  ;;  %v6041_v45 = vadd.f32 %v13397_v54, %v4029_v48  ;;  %v3944_v42 = vpop.f32.mrb[100].mxu0 }
 0x298   : > { %9529 = vtanh.f32 %v6040_v60  ;;  %v6054_v44 = vadd.f32 %v13403_v19, %v3944_v42  ;;  %v3946_v46 = vpop.f32.mrb[101].mxu0 }
 0x299   : > { %9531 = vtanh.f32 %v6041_v45  ;;  %v4033_v33 = vpop.f32.mrb[100].mxu1  ;;  %v6055_v23 = vadd.f32 %v13403_v19, %v3946_v46 }
 0x29a   : > { %9533 = vtanh.f32 %v6054_v44  ;;  %v6056_v25 = vadd.f32 %v13403_v19, %v4033_v33  ;;  %v4035_v13 = vpop.f32.mrb[101].mxu1 }
 0x29b   : > { %9535 = vtanh.f32 %v6055_v23  ;;  %v6057_v22 = vadd.f32 %v13403_v19, %v4035_v13  ;;  %v3950_v10 = vpop.f32.mrb[102].mxu0 }
 0x29c   : > { %v13412_v50 = vpop.eup %9517  ;;  %9537 = vtanh.f32 %v6056_v25  ;;  %v6070_v40 = vadd.f32 %v13409_v59, %v3950_v10  ;;  %v3952_v35 = vpop.f32.mrb[103].mxu0 }
 0x29d   : > { %v13415_v63 = vpop.eup %9519  ;;  %9539 = vtanh.f32 %v6057_v22  ;;  %v4039_v5 = vpop.f32.mrb[102].mxu1  ;;  %v6071_v53 = vadd.f32 %v13409_v59, %v3952_v35 }
 0x29e   : > { %v13418_v52 = vpop.eup %9521  ;;  %9541 = vtanh.f32 %v6070_v40  ;;  %v6072_v7 = vadd.f32 %v13409_v59, %v4039_v5  ;;  %v4041_v9 = vpop.f32.mrb[103].mxu1 }
 0x29f   : > { %v13421_v39 = vpop.eup %9523  ;;  %9543 = vtanh.f32 %v6071_v53  ;;  %v6073_v20 = vadd.f32 %v13409_v59, %v4041_v9  ;;  %v13485_v53 = vld [vmem:[%s14522_s5] sm:$0x3] }
 0x2a0   : > { %v4110_v51 = vpop.f32.mrb[104].mxu0  ;;  %v13424_v8 = vpop.eup %9525  ;;  %9545 = vtanh.f32 %v6072_v7 }
 0x2a1   : > { %v6026_v11 = vadd.f32 %v13392_v38, %v4110_v51  ;;  %v4112_v1 = vpop.f32.mrb[105].mxu0  ;;  %v13427_v37 = vpop.eup %9527  ;;  %9547 = vtanh.f32 %v6073_v20  ;;  %v9019_v6 = vpack.c.bf16 %v13424_v8, %v13412_v50 }
 0x2a2   : > { %v4199_v55 = vpop.f32.mrb[104].mxu1  ;;  %v6027_v21 = vadd.f32 %v13392_v38, %v4112_v1  ;;  %v13432_v4 = vpop.eup %9529  ;;  %v9017_v26 = vpack.c.bf16 %v13427_v37, %v13415_v63 }
 0x2a3   : > { %9549 = vtanh.f32 %v6026_v11  ;;  %v6028_v0 = vadd.f32 %v13392_v38, %v4199_v55  ;;  %v4201_v34 = vpop.f32.mrb[105].mxu1  ;;  %v13437_v31 = vpop.eup %9531  ;;  %v9027_v49 = vpack.c.bf16 %v13432_v4, %v13418_v52 }
 0x2a4   : > { %9551 = vtanh.f32 %v6027_v21  ;;  %v6029_v56 = vadd.f32 %v13392_v38, %v4201_v34  ;;  %v4116_v27 = vpop.f32.mrb[106].mxu0  ;;  %v13442_v61 = vpop.eup %9533  ;;  %9018 = vmatprep.subr.bf16.mxu0 %v9017_v26  ;;  %v9025_v16 = vpack.c.bf16 %v13437_v31, %v13421_v39 }
 0x2a5   : > { %9553 = vtanh.f32 %v6028_v0  ;;  %v6042_v62 = vadd.f32 %v13397_v54, %v4116_v27  ;;  %v4118_v17 = vpop.f32.mrb[107].mxu0  ;;  %v13447_v43 = vpop.eup %9535  ;;  %9020 = vmatpush1.bf16.msra.mxu0 %v9019_v6 }
 0x2a6   : > { %9555 = vtanh.f32 %v6029_v56  ;;  %v4205_v28 = vpop.f32.mrb[106].mxu1  ;;  %v6043_v24 = vadd.f32 %v13397_v54, %v4118_v17  ;;  %v13450_v3 = vpop.eup %9537  ;;  %9026 = vmatprep.subr.bf16.mxu1 %v9025_v16 }
 0x2a7   : > { %9557 = vtanh.f32 %v6042_v62  ;;  %v6044_v12 = vadd.f32 %v13397_v54, %v4205_v28  ;;  %v4207_v57 = vpop.f32.mrb[107].mxu1  ;;  %v13453_v58 = vpop.eup %9539  ;;  %9028 = vmatpush1.bf16.msra.mxu1 %v9027_v49 }
 0x2a8   : > { %9559 = vtanh.f32 %v6043_v24  ;;  %v6045_v32 = vadd.f32 %v13397_v54, %v4207_v57  ;;  %v4122_v47 = vpop.f32.mrb[108].mxu0  ;;  %v13456_v29 = vpop.eup %9541 }
 0x2a9   : > { %9561 = vtanh.f32 %v6044_v12  ;;  %v6058_v2 = vadd.f32 %v13403_v19, %v4122_v47  ;;  %v4124_v15 = vpop.f32.mrb[109].mxu0  ;;  %v13459_v41 = vpop.eup %9543  ;;  %v9023_v18 = vpack.c.bf16 %v13456_v29, %v13442_v61 }
 0x2aa   : > { %9563 = vtanh.f32 %v6045_v32  ;;  %v4211_v36 = vpop.f32.mrb[108].mxu1  ;;  %v6059_v30 = vadd.f32 %v13403_v19, %v4124_v15  ;;  %v13464_v60 = vpop.eup %9545  ;;  %v9021_v42 = vpack.c.bf16 %v13459_v41, %v13447_v43 }
 0x2ab   : > { %9565 = vtanh.f32 %v6058_v2  ;;  %v6060_v48 = vadd.f32 %v13403_v19, %v4211_v36  ;;  %v4213_v45 = vpop.f32.mrb[109].mxu1  ;;  %v13469_v44 = vpop.eup %9547  ;;  %v9031_v23 = vpack.c.bf16 %v13464_v60, %v13450_v3 }
 0x2ac   : > { %9567 = vtanh.f32 %v6059_v30  ;;  %v6061_v46 = vadd.f32 %v13403_v19, %v4213_v45  ;;  %v4128_v33 = vpop.f32.mrb[110].mxu0  ;;  %9022 = vmatprep.subr.bf16.mxu0 %v9021_v42  ;;  %v9029_v10 = vpack.c.bf16 %v13469_v44, %v13453_v58 }
 0x2ad   : > { %v13474_v25 = vpop.eup %9549  ;;  %9569 = vtanh.f32 %v6060_v48  ;;  %v6074_v13 = vadd.f32 %v13409_v59, %v4128_v33  ;;  %v4130_v22 = vpop.f32.mrb[111].mxu0  ;;  %9024 = vmatpush1.bf16.msra.mxu0 %v9023_v18 }
 0x2ae   : > { %v13479_v40 = vpop.eup %9551  ;;  %9571 = vtanh.f32 %v6061_v46  ;;  %v4217_v35 = vpop.f32.mrb[110].mxu1  ;;  %v6075_v5 = vadd.f32 %v13409_v59, %v4130_v22  ;;  %9030 = vmatprep.subr.bf16.mxu1 %v9029_v10 }
 0x2af   : > { %v13487_v7 = vpop.eup %9553  ;;  %9573 = vtanh.f32 %v6074_v13  ;;  %v6076_v9 = vadd.f32 %v13409_v59, %v4217_v35  ;;  %v4219_v20 = vpop.f32.mrb[111].mxu1  ;;  %9032 = vmatpush1.bf16.msra.mxu1 %v9031_v23 }
 0x2b0   : > { %v13490_v51 = vpop.eup %9555  ;;  %9575 = vtanh.f32 %v6075_v5  ;;  %v6077_v11 = vadd.f32 %v13409_v59, %v4219_v20  ;;  %8603 = vmatmul.mubr.msk.f32.vlgmr.msra.gmra.mrb[192].mxu0 %vm1291_vm0, %v13485_v53 }
 0x2b1   : > { %v13493_v1 = vpop.eup %9557  ;;  %9577 = vtanh.f32 %v6076_v9  ;;  %v4288_v55 = vpop.f32.mrb[112].mxu0  ;;  %6617 = vmatprep.mubr.f32.mxu0 %v14871_v14 }
 0x2b2   : > { %v13497_v21 = vpop.eup %9559  ;;  %9579 = vtanh.f32 %v6077_v11  ;;  %v6030_v6 = vadd.f32 %v13392_v38, %v4288_v55  ;;  %v4290_v0 = vpop.f32.mrb[113].mxu0  ;;  %v9035_v34 = vpack.c.bf16 %v13493_v1, %v13474_v25  ;;  %8604 = vmatmul.mubr.msk.f32.vlgmr.msra.gmra.mrb[192].mxu1 %vm1291_vm0, %v13485_v53 }
 0x2b3   : > { %v13503_v26 = vpop.eup %9561  ;;  %v4377_v56 = vpop.f32.mrb[112].mxu1  ;;  %v6031_v27 = vadd.f32 %v13392_v38, %v4290_v0  ;;  %v9033_v49 = vpack.c.bf16 %v13497_v21, %v13479_v40  ;;  %6688 = vmatprep.mubr.f32.mxu1 %v14871_v14 }
 0x2b4   : > { %v13510_v62 = vpop.eup %9563  ;;  %9581 = vtanh.f32 %v6030_v6  ;;  %v6032_v17 = vadd.f32 %v13392_v38, %v4377_v56  ;;  %v4379_v16 = vpop.f32.mrb[113].mxu1  ;;  %v9043_v28 = vpack.c.bf16 %v13503_v26, %v13487_v7 }
 0x2b5   : > { %v13516_v24 = vpop.eup %9565  ;;  %9583 = vtanh.f32 %v6031_v27  ;;  %v6033_v12 = vadd.f32 %v13392_v38, %v4379_v16  ;;  %v4294_v57 = vpop.f32.mrb[114].mxu0  ;;  %9034 = vmatprep.subr.bf16.mxu0 %v9033_v49  ;;  %v9041_v32 = vpack.c.bf16 %v13510_v62, %v13490_v51 }
 0x2b6   : > { %v13521_v47 = vpop.eup %9567  ;;  %9585 = vtanh.f32 %v6032_v17  ;;  %v6046_v2 = vadd.f32 %v13397_v54, %v4294_v57  ;;  %v4296_v15 = vpop.f32.mrb[115].mxu0  ;;  %9036 = vmatpush1.bf16.msra.mxu0 %v9035_v34 }
 0x2b7   : > { %v13524_v36 = vpop.eup %9569  ;;  %9587 = vtanh.f32 %v6033_v12  ;;  %v4383_v30 = vpop.f32.mrb[114].mxu1  ;;  %v6047_v18 = vadd.f32 %v13397_v54, %v4296_v15  ;;  %9042 = vmatprep.subr.bf16.mxu1 %v9041_v32 }
 0x2b8   : > { %v13527_v48 = vpop.eup %9571  ;;  %9589 = vtanh.f32 %v6046_v2  ;;  %v6048_v45 = vadd.f32 %v13397_v54, %v4383_v30  ;;  %v4385_v42 = vpop.f32.mrb[115].mxu1  ;;  %9044 = vmatpush1.bf16.msra.mxu1 %v9043_v28 }
 0x2b9   : > { %v13530_v46 = vpop.eup %9573  ;;  %9591 = vtanh.f32 %v6047_v18  ;;  %v6049_v33 = vadd.f32 %v13397_v54, %v4385_v42  ;;  %v4300_v23 = vpop.f32.mrb[116].mxu0 }
 0x2ba   : > { %v13533_v13 = vpop.eup %9575  ;;  %9593 = vtanh.f32 %v6048_v45  ;;  %v6062_v22 = vadd.f32 %v13403_v19, %v4300_v23  ;;  %v4302_v10 = vpop.f32.mrb[117].mxu0  ;;  %v9039_v35 = vpack.c.bf16 %v13530_v46, %v13516_v24 }
 0x2bb   : > { %v13538_v5 = vpop.eup %9577  ;;  %9595 = vtanh.f32 %v6049_v33  ;;  %v6063_v20 = vadd.f32 %v13403_v19, %v4302_v10  ;;  %v9037_v11 = vpack.c.bf16 %v13533_v13, %v13521_v47 }
 0x2bc   : > { %v4389_v9 = vpop.f32.mrb[116].mxu1  ;;  %v13543_v55 = vpop.eup %9579  ;;  %9597 = vtanh.f32 %v6062_v22  ;;  %v9047_v34 = vpack.c.bf16 %v13538_v5, %v13524_v36 }
 0x2bd   : > { %v6064_v6 = vadd.f32 %v13403_v19, %v4389_v9  ;;  %v4391_v0 = vpop.f32.mrb[117].mxu1  ;;  %9599 = vtanh.f32 %v6063_v20  ;;  %9038 = vmatprep.subr.bf16.mxu0 %v9037_v11  ;;  %v9045_v49 = vpack.c.bf16 %v13543_v55, %v13527_v48 }
 0x2be   : > { %v6065_v56 = vadd.f32 %v13403_v19, %v4391_v0  ;;  %v13551_v17 = vpop.eup %9581  ;;  %9040 = vmatpush1.bf16.msra.mxu0 %v9039_v35 }
 0x2bf   : > { %v4306_v27 = vpop.f32.mrb[118].mxu0  ;;  %9601 = vtanh.f32 %v6064_v6  ;;  %v13554_v12 = vpop.eup %9583  ;;  %9046 = vmatprep.subr.bf16.mxu1 %v9045_v49 }
 0x2c0   : > { %v6078_v16 = vadd.f32 %v13409_v59, %v4306_v27  ;;  %v4308_v28 = vpop.f32.mrb[119].mxu0  ;;  %9603 = vtanh.f32 %v6065_v56  ;;  %v13557_v2 = vpop.eup %9585  ;;  %9048 = vmatpush1.bf16.msra.mxu1 %v9047_v34 }
 0x2c1   : > { %v4395_v57 = vpop.f32.mrb[118].mxu1  ;;  %v6079_v32 = vadd.f32 %v13409_v59, %v4308_v28  ;;  %v13560_v18 = vpop.eup %9587  ;;  %8605 = vmatmul.mubr.msk.f32.vlgmr.msra.gmra.mrb[194].mxu0 %vm1291_vm0, %v13485_v53 }
 0x2c2   : > { %9605 = vtanh.f32 %v6078_v16  ;;  %v6080_v15 = vadd.f32 %v13409_v59, %v4395_v57  ;;  %v4397_v30 = vpop.f32.mrb[119].mxu1  ;;  %v13565_v42 = vpop.eup %9589  ;;  %6759 = vmatprep.mubr.f32.mxu0 %v14871_v14 }
 0x2c3   : > { %9607 = vtanh.f32 %v6079_v32  ;;  %v6081_v45 = vadd.f32 %v13409_v59, %v4397_v30  ;;  %v13568_v33 = vpop.eup %9591  ;;  %8606 = vmatmul.mubr.msk.f32.vlgmr.msra.gmra.mrb[194].mxu1 %vm1291_vm0, %v13485_v53  ;;  %v9051_v23 = vpack.c.bf16 %v13565_v42, %v13551_v17 }
 0x2c4   : > { %9609 = vtanh.f32 %v6080_v15  ;;  %v13574_v22 = vpop.eup %9593  ;;  %v9049_v10 = vpack.c.bf16 %v13568_v33, %v13554_v12  ;;  %6830 = vmatprep.mubr.f32.mxu1 %v14871_v14 }
 0x2c5   : > { %9611 = vtanh.f32 %v6081_v45  ;;  %v13579_v35 = vpop.eup %9595  ;;  %v9059_v9 = vpack.c.bf16 %v13574_v22, %v13557_v2 }
 0x2c6   : > { %v13583_v20 = vpop.eup %9597  ;;  %9050 = vmatprep.subr.bf16.mxu0 %v9049_v10  ;;  %v9057_v11 = vpack.c.bf16 %v13579_v35, %v13560_v18 }
 0x2c7   : > { %15286 = vst [vmem:[#allocation15_spill] sm:$0xff] %v13583_v20  ;;  %v13587_v6 = vpop.eup %9599  ;;  %9052 = vmatpush1.bf16.msra.mxu0 %v9051_v23 }
 0x2c8   : > { %9058 = vmatprep.subr.bf16.mxu1 %v9057_v11 }
 0x2c9   : > { %v13589_v0 = vpop.eup %9601  ;;  %9060 = vmatpush1.bf16.msra.mxu1 %v9059_v9 }
 0x2ca   : > { %v13591_v34 = vpop.eup %9603 }
 0x2cb   : > { %v4466_v56 = vpop.f32.mrb[120].mxu0 }
 0x2cc   : > { %v13593_v27 = vpop.eup %9605  ;;  %v6034_v49 = vadd.f32 %v13392_v38, %v4466_v56  ;;  %v4468_v16 = vpop.f32.mrb[121].mxu0 }
 0x2cd   : > { %15287 = vst [vmem:[#allocation36_spill] sm:$0xff] %v13593_v27  ;;  %v13596_v28 = vpop.eup %9607  ;;  %v6035_v32 = vadd.f32 %v13392_v38, %v4468_v16  ;;  %v9055_v15 = vpack.c.bf16 %v13593_v27, %v13583_v20 }
 0x2ce   : > { %15288 = vst [vmem:[#allocation37_spill] sm:$0xff] %v13596_v28  ;;  %v4555_v57 = vpop.f32.mrb[120].mxu1  ;;  %v13601_v30 = vpop.eup %9609  ;;  %9613 = vtanh.f32 %v6034_v49  ;;  %v9053_v10 = vpack.c.bf16 %v13596_v28, %v13587_v6 }
 0x2cf   : > { %v6036_v45 = vadd.f32 %v13392_v38, %v4555_v57  ;;  %v4557_v23 = vpop.f32.mrb[121].mxu1  ;;  %v13606_v9 = vpop.eup %9611  ;;  %9615 = vtanh.f32 %v6035_v32  ;;  %v9063_v16 = vpack.c.bf16 %v13601_v30, %v13589_v0 }
 0x2d0   : > { %v6037_v11 = vadd.f32 %v13392_v38, %v4557_v23  ;;  %9054 = vmatprep.subr.bf16.mxu0 %v9053_v10  ;;  %v9061_v49 = vpack.c.bf16 %v13606_v9, %v13591_v34 }
 0x2d1   : > { %v4472_v56 = vpop.f32.mrb[122].mxu0  ;;  %9617 = vtanh.f32 %v6036_v45  ;;  %9056 = vmatpush1.bf16.msra.mxu0 %v9055_v15  ;;  %v13623_v15 = vmul.f32 %v13412_v50, %v13412_v50 }
 0x2d2   : > { %v6050_v27 = vadd.f32 %v13397_v54, %v4472_v56  ;;  %v4474_v20 = vpop.f32.mrb[123].mxu0  ;;  %9619 = vtanh.f32 %v6037_v11  ;;  %v4561_v57 = vpop.f32.mrb[122].mxu1  ;;  %9062 = vmatprep.subr.bf16.mxu1 %v9061_v49 }
 0x2d3   : > { %v6051_v28 = vadd.f32 %v13397_v54, %v4474_v20  ;;  %v6052_v38 = vadd.f32 %v13397_v54, %v4561_v57  ;;  %v4563_v32 = vpop.f32.mrb[123].mxu1  ;;  %9064 = vmatpush1.bf16.msra.mxu1 %v9063_v16  ;;  %15289 = vst [vmem:[#allocation21_spill] sm:$0xff] %v13623_v15  ;;  %v13633_v16 = vmul.f32 %v13418_v52, %v13418_v52 }
 0x2d4   : > { %9621 = vtanh.f32 %v6050_v27  ;;  %v6053_v45 = vadd.f32 %v13397_v54, %v4563_v32  ;;  %8607 = vmatmul.mubr.msk.f32.vlgmr.msra.gmra.mrb[196].mxu0 %vm1291_vm0, %v13485_v53  ;;  %v13627_v54 = vmul.f32 %v13415_v63, %v13415_v63  ;;  %v13640_v63 = vmul.f32 %v13421_v39, %v13421_v39 }
 0x2d5   : > { %9623 = vtanh.f32 %v6051_v28  ;;  %v4478_v23 = vpop.f32.mrb[124].mxu0  ;;  %6901 = vmatprep.mubr.f32.mxu0 %v14871_v14  ;;  %15291 = vst [vmem:[#allocation27_spill] sm:$0xff] %v13633_v16 }
 0x2d6   : > { %9625 = vtanh.f32 %v6052_v38  ;;  %v6066_v10 = vadd.f32 %v13403_v19, %v4478_v23  ;;  %v4480_v56 = vpop.f32.mrb[125].mxu0  ;;  %v4567_v20 = vpop.f32.mrb[124].mxu1  ;;  %15290 = vst [vmem:[#allocation28_spill] sm:$0xff] %v13627_v54  ;;  %8608 = vmatmul.mubr.msk.f32.vlgmr.msra.gmra.mrb[196].mxu1 %vm1291_vm0, %v13485_v53  ;;  %15292 = vst [vmem:[#allocation17_spill] sm:$0xff] %v13640_v63 }
 0x2d7   : > { %9627 = vtanh.f32 %v6053_v45  ;;  %v6067_v27 = vadd.f32 %v13403_v19, %v4480_v56  ;;  %v6068_v28 = vadd.f32 %v13403_v19, %v4567_v20  ;;  %v4569_v11 = vpop.f32.mrb[125].mxu1  ;;  %6972 = vmatprep.mubr.f32.mxu1 %v14871_v14 }
 0x2d8   : > { %9629 = vtanh.f32 %v6066_v10  ;;  %v6069_v50 = vadd.f32 %v13403_v19, %v4569_v11  ;;  %v13643_v57 = vpop.eup %9613  ;;  %v14751_v19 = vsub.f32 1.0, %v13623_v15  ;;  %v14753_v10 = vsub.f32 1.0, %v13627_v54 }
 0x2d9   : > { %9631 = vtanh.f32 %v6067_v27  ;;  %v4484_v49 = vpop.f32.mrb[126].mxu0  ;;  %15293 = vst [vmem:[#allocation6_spill] sm:$0xff] %v13643_v57  ;;  %v13646_v32 = vpop.eup %9615 }
 0x2da   : > { %9633 = vtanh.f32 %v6068_v28  ;;  %v6082_v38 = vadd.f32 %v13409_v59, %v4484_v49  ;;  %v4486_v52 = vpop.f32.mrb[127].mxu0  ;;  %15294 = vst [vmem:[#allocation9_spill] sm:$0xff] %v13646_v32  ;;  %v4573_v45 = vpop.f32.mrb[126].mxu1  ;;  %v13657_v28 = vmul.f32 %v13424_v8, %v13424_v8 }
 0x2db   : > { %9635 = vtanh.f32 %v6069_v50  ;;  %v6083_v23 = vadd.f32 %v13409_v59, %v4486_v52  ;;  %v13651_v39 = vpop.eup %9617  ;;  %v6084_v56 = vadd.f32 %v13409_v59, %v4573_v45  ;;  %v4575_v20 = vpop.f32.mrb[127].mxu1 }
 0x2dc   : > { %15295 = vst [vmem:[#allocation7_spill] sm:$0xff] %v13651_v39  ;;  %9637 = vtanh.f32 %v6082_v38  ;;  %15296 = vst [vmem:[#allocation12_spill] sm:$0xff] %v13657_v28  ;;  %v13659_v11 = vpop.eup %9619  ;;  %v6085_v50 = vadd.f32 %v13409_v59, %v4575_v20  ;;  %v13665_v38 = vmul.f32 %v13427_v37, %v13427_v37  ;;  %v13679_v59 = vmul.f32 %v13437_v31, %v13437_v31 }
 0x2dd   : > { %15297 = vst [vmem:[#allocation23_spill] sm:$0xff] %v13659_v11  ;;  %9639 = vtanh.f32 %v6083_v23  ;;  %v4644_v49 = vpop.f32.mrb[128].mxu0  ;;  %v13675_v23 = vmul.f32 %v13432_v4, %v13432_v4  ;;  %v15305_v31 = vsub.f32 1.0, %v13633_v16 }
 0x2de   : > { %15298 = vst [vmem:[#allocation24_spill] sm:$0xff] %v13665_v38  ;;  %v13667_v45 = vpop.eup %9621  ;;  %9641 = vtanh.f32 %v6084_v56  ;;  %v13671_v27 = vmul.f32 %v14751_v19, %v4644_v49  ;;  %v4646_v8 = vpop.f32.mrb[129].mxu0  ;;  %15301 = vst [vmem:[#allocation16_spill] sm:$0xff] %v13679_v59  ;;  %v13691_v19 = vmul.f32 %v13442_v61, %v13442_v61  ;;  %v15308_v61 = vsub.f32 1.0, %v13640_v63 }
 0x2df   : > { %15299 = vst [vmem:[#allocation14_spill] sm:$0xff] %v13667_v45  ;;  %15300 = vst [vmem:[#allocation25_spill] sm:$0xff] %v13675_v23  ;;  %v13681_v20 = vpop.eup %9623  ;;  %9643 = vtanh.f32 %v6085_v50  ;;  %v4733_v37 = vpop.f32.mrb[128].mxu1  ;;  %v13685_v56 = vmul.f32 %v14753_v10, %v4646_v8  ;;  %v9067_v49 = vpack.c.bf16 %v13667_v45, %v13643_v57  ;;  %v13704_v10 = vmul.f32 %v13450_v3, %v13450_v3 }
 0x2e0   : > { %15302 = vst [vmem:[#allocation26_spill] sm:$0xff] %v13681_v20  ;;  %15303 = vst [vmem:[#allocation20_spill] sm:$0xff] %v13691_v19  ;;  %v13693_v4 = vpop.eup %9625  ;;  %v13697_v52 = vmul.f32 %v15305_v31, %v4733_v37  ;;  %v4735_v15 = vpop.f32.mrb[129].mxu1  ;;  %v9065_v8 = vpack.c.bf16 %v13681_v20, %v13646_v32  ;;  %v13717_v50 = vmul.f32 %v13447_v43, %v13447_v43  ;;  %v15310_v3 = vsub.f32 1.0, %v13657_v28 }
 0x2e1   : > { %15304 = vst [vmem:[#allocation22_spill] sm:$0xff] %v13693_v4  ;;  %15306 = vst [vmem:[#allocation29_spill] sm:$0xff] %v13704_v10  ;;  %v13706_v54 = vpop.eup %9627  ;;  %v13710_v45 = vmul.f32 %v15308_v61, %v4735_v15  ;;  %v4650_v57 = vpop.f32.mrb[130].mxu0  ;;  %v9075_v31 = vpack.c.bf16 %v13693_v4, %v13651_v39  ;;  %v13730_v37 = vmul.f32 %v13453_v58, %v13453_v58  ;;  %v15312_v39 = vsub.f32 1.0, %v13665_v38 }
 0x2e2   : > { %15307 = vst [vmem:[#allocation30_spill] sm:$0xff] %v13706_v54  ;;  %15309 = vst [vmem:[#allocation31_spill] sm:$0xff] %v13717_v50  ;;  %v13719_v16 = vpop.eup %9629  ;;  %v13723_v20 = vmul.f32 %v15310_v3, %v4650_v57  ;;  %v4652_v15 = vpop.f32.mrb[131].mxu0  ;;  %9066 = vmatprep.subr.bf16.mxu0 %v9065_v8  ;;  %v9073_v61 = vpack.c.bf16 %v13706_v54, %v13659_v11  ;;  %v14767_v57 = vsub.f32 1.0, %v13679_v59  ;;  %v15313_v28 = vsub.f32 1.0, %v13675_v23 }
 0x2e3   : > { %15311 = vst [vmem:[#allocation32_spill] sm:$0xff] %v13730_v37  ;;  %v13732_v4 = vpop.eup %9631  ;;  %v4739_v43 = vpop.f32.mrb[130].mxu1  ;;  %v6295_v32 = vmul.f32 %v15312_v39, %v4652_v15  ;;  %9068 = vmatpush1.bf16.msra.mxu0 %v9067_v49  ;;  %v13749_v39 = vmul.f32 %v13456_v29, %v13456_v29  ;;  %v15316_v11 = vsub.f32 1.0, %v13691_v19  ;;  %v13781_v29 = vmul.f32 %v13469_v44, %v13469_v44 }
 0x2e4   : > { %v13738_v63 = vpop.eup %9633  ;;  %v13744_v58 = vmul.f32 %v15313_v28, %v4739_v43  ;;  %v4741_v54 = vpop.f32.mrb[131].mxu1  ;;  %9074 = vmatprep.subr.bf16.mxu1 %v9073_v61  ;;  %v14770_v28 = vsub.f32 1.0, %v13717_v50  ;;  %v13759_v61 = vmul.f32 %v13459_v41, %v13459_v41 }
 0x2e5   : > { %15314 = vst [vmem:[#allocation5_spill] sm:$0xff] %v13749_v39  ;;  %v13751_v49 = vpop.eup %9635  ;;  %v9081_v15 = vpack.c.bf16 %v6295_v32, %v13685_v56  ;;  %v6297_v3 = vmul.f32 %v14767_v57, %v4741_v54  ;;  %9076 = vmatpush1.bf16.msra.mxu1 %v9075_v31  ;;  %v4656_v8 = vpop.f32.mrb[132].mxu0  ;;  %v13772_v56 = vmul.f32 %v13464_v60, %v13464_v60  ;;  %v15319_v60 = vsub.f32 1.0, %v13704_v10 }
 0x2e6   : > { %v13761_v43 = vpop.eup %9637  ;;  %v13767_v23 = vmul.f32 %v15316_v11, %v4656_v8  ;;  %v4658_v32 = vpop.f32.mrb[133].mxu0 }
 0x2e7   : > { %15315 = vst [vmem:[#allocation33_spill] sm:$0xff] %v13761_v43  ;;  %v13774_v31 = vpop.eup %9639  ;;  %v9089_v41 = vpack.c.bf16 %v6297_v3, %v13710_v45  ;;  %v4745_v57 = vpop.f32.mrb[132].mxu1  ;;  %v6311_v59 = vmul.f32 %v14770_v28, %v4658_v32  ;;  %v9071_v11 = vpack.c.bf16 %v13761_v43, %v13719_v16  ;;  %v14778_v45 = vsub.f32 1.0, %v13749_v39 }
 0x2e8   : > { %15317 = vst [vmem:[#allocation34_spill] sm:$0xff] %v13774_v31  ;;  %v13785_v8 = vpop.eup %9641  ;;  %v13789_v54 = vmul.f32 %v15319_v60, %v4745_v57  ;;  %v4747_v19 = vpop.f32.mrb[133].mxu1  ;;  %v9069_v3 = vpack.c.bf16 %v13774_v31, %v13732_v4  ;;  %v13796_v32 = vmul.f32 %v13474_v25, %v13474_v25  ;;  %v15320_v28 = vsub.f32 1.0, %v13730_v37 }
 0x2e9   : > { %15318 = vst [vmem:[#allocation35_spill] sm:$0xff] %v13785_v8  ;;  %v13798_v44 = vpop.eup %9643  ;;  %v4662_v38 = vpop.f32.mrb[134].mxu0  ;;  %v9079_v57 = vpack.c.bf16 %v13785_v8, %v13738_v63  ;;  %v13807_v60 = vmul.f32 %v13479_v40, %v13479_v40  ;;  %v14810_v25 = vsub.f32 1.0, %v13772_v56  ;;  %v15321_v37 = vsub.f32 1.0, %v13759_v61 }
 0x2ea   : > { %v6313_v50 = vmul.f32 %v15320_v28, %v4747_v19  ;;  %v6326_v31 = vmul.f32 %v14778_v45, %v4662_v38  ;;  %v4664_v43 = vpop.f32.mrb[135].mxu0  ;;  %9070 = vmatprep.subr.bf16.mxu0 %v9069_v3  ;;  %v9077_v19 = vpack.c.bf16 %v13798_v44, %v13751_v49  ;;  %v13816_v28 = vmul.f32 %v13487_v7, %v13487_v7 }
 0x2eb   : > { %v4751_v10 = vpop.f32.mrb[134].mxu1  ;;  %v6327_v8 = vmul.f32 %v15321_v37, %v4664_v43  ;;  %v14809_v40 = vsub.f32 1.0, %v13781_v29  ;;  %9072 = vmatpush1.bf16.msra.mxu0 %v9071_v11  ;;  %v13823_v38 = vmul.f32 %v13490_v51, %v13490_v51  ;;  %v14807_v7 = vsub.f32 1.0, %v13796_v32 }
 0x2ec   : > { %v9087_v3 = vpack.c.bf16 %v6326_v31, %v13767_v23  ;;  %v6328_v45 = vmul.f32 %v14810_v25, %v4751_v10  ;;  %v4753_v39 = vpop.f32.mrb[135].mxu1  ;;  %9078 = vmatprep.subr.bf16.mxu1 %v9077_v19  ;;  %9082 = vmatprep.subr.bf16.mxu0 %v9081_v15  ;;  %v13831_v37 = vmul.f32 %v13493_v1, %v13493_v1  ;;  %v14805_v23 = vsub.f32 1.0, %v13807_v60  ;;  %v15335_v25 = vld [vmem:[#allocation14_spill] sm:$0xff] }
 0x2ed   : > { %v9085_v43 = vpack.c.bf16 %v6327_v8, %v6311_v59  ;;  %v6329_v11 = vmul.f32 %v14809_v40, %v4753_v39  ;;  %9080 = vmatpush1.bf16.msra.mxu1 %v9079_v57  ;;  %v13838_v10 = vmul.f32 %v13497_v21, %v13497_v21  ;;  %v14801_v1 = vsub.f32 1.0, %v13816_v28 }
 0x2ee   : > { %v9095_v15 = vpack.c.bf16 %v6328_v45, %v13789_v54  ;;  %9090 = vmatprep.subr.bf16.mxu1 %v9089_v41  ;;  %8609 = vmatmul.mubr.msk.f32.vlgmr.msra.gmra.mrb[198].mxu0 %vm1291_vm0, %v13485_v53  ;;  %v13848_v39 = vmul.f32 %v13503_v26, %v13503_v26  ;;  %v14781_v54 = vsub.f32 1.0, %v13823_v38  ;;  %v15322_v41 = vpack.c.bf16 %v13723_v20, %v13671_v27 }
 0x2ef   : > { %v4822_v51 = vpop.f32.mrb[136].mxu0  ;;  %v9093_v8 = vpack.c.bf16 %v6329_v11, %v6313_v50  ;;  %v13858_v45 = vmul.f32 %v13510_v62, %v13510_v62  ;;  %7043 = vmatprep.mubr.f32.mxu0 %v14871_v14  ;;  %v14780_v19 = vsub.f32 1.0, %v13831_v37  ;;  %v13868_v27 = vmul.f32 %v13516_v24, %v13516_v24 }
 0x2f0   : > { %v6282_v31 = vmul.f32 %v14807_v7, %v4822_v51  ;;  %v4824_v59 = vpop.f32.mrb[137].mxu0  ;;  %v4911_v57 = vpop.f32.mrb[136].mxu1  ;;  %9084 = vmatpush1.bf16.msra.mxu0 %v15322_v41  ;;  %8610 = vmatmul.mubr.msk.f32.vlgmr.msra.gmra.mrb[198].mxu1 %vm1291_vm0, %v13485_v53  ;;  %v15323_v20 = vpack.c.bf16 %v13744_v58, %v13697_v52  ;;  %v14798_v51 = vsub.f32 1.0, %v13838_v10  ;;  %v13886_v52 = vmul.f32 %v13524_v36, %v13524_v36  ;;  %v15334_v7 = vld [vmem:[#allocation23_spill] sm:$0xff] }
 0x2f1   : > { %v6283_v21 = vmul.f32 %v14805_v23, %v4824_v59  ;;  %v6284_v26 = vmul.f32 %v14801_v1, %v4911_v57  ;;  %v4913_v50 = vpop.f32.mrb[137].mxu1  ;;  %9086 = vmatprep.subr.bf16.mxu0 %v9085_v43  ;;  %v13878_v59 = vmul.f32 %v13521_v47, %v13521_v47  ;;  %7114 = vmatprep.mubr.f32.mxu1 %v14871_v14  ;;  %v14782_v43 = vsub.f32 1.0, %v13848_v39 }
 0x2f2   : > { %v6285_v62 = vmul.f32 %v14781_v54, %v4913_v50  ;;  %9092 = vmatpush1.bf16.msra.mxu1 %v15323_v20  ;;  %v14789_v47 = vsub.f32 1.0, %v13858_v45  ;;  %v13900_v36 = vmul.f32 %v13530_v46, %v13530_v46 }
 0x2f3   : > { %v4828_v11 = vpop.f32.mrb[138].mxu0  ;;  %9094 = vmatprep.subr.bf16.mxu1 %v9093_v8  ;;  %v13893_v8 = vmul.f32 %v13527_v48, %v13527_v48  ;;  %v14786_v48 = vsub.f32 1.0, %v13878_v59 }
 0x2f4   : > { %v6298_v24 = vmul.f32 %v14780_v19, %v4828_v11  ;;  %v4830_v57 = vpop.f32.mrb[139].mxu0  ;;  %9088 = vmatpush1.bf16.msra.mxu0 %v9087_v3  ;;  %v14787_v19 = vsub.f32 1.0, %v13868_v27 }
 0x2f5   : > { %v4917_v58 = vpop.f32.mrb[138].mxu1  ;;  %v6299_v41 = vmul.f32 %v14798_v51, %v4830_v57 }
 0x2f6   : > { %v9099_v50 = vpack.c.bf16 %v6298_v24, %v6282_v31  ;;  %v6300_v20 = vmul.f32 %v14782_v43, %v4917_v58  ;;  %v4919_v11 = vpop.f32.mrb[139].mxu1  ;;  %9096 = vmatpush1.bf16.msra.mxu1 %v9095_v15  ;;  %v13907_v31 = vmul.f32 %v13533_v13, %v13533_v13  ;;  %v14784_v43 = vsub.f32 1.0, %v13886_v52 }
 0x2f7   : > { %v9097_v54 = vpack.c.bf16 %v6299_v41, %v6283_v21  ;;  %v6301_v57 = vmul.f32 %v14789_v47, %v4919_v11  ;;  %8611 = vmatmul.mubr.msk.f32.vlgmr.msra.gmra.mrb[200].mxu0 %vm1291_vm0, %v13485_v53  ;;  %v13916_v15 = vmul.f32 %v13538_v5, %v13538_v5  ;;  %v14785_v5 = vsub.f32 1.0, %v13900_v36 }
 0x2f8   : > { %v4834_v3 = vpop.f32.mrb[140].mxu0  ;;  %v9107_v24 = vpack.c.bf16 %v6300_v20, %v6284_v26  ;;  %v14783_v26 = vsub.f32 1.0, %v13893_v8  ;;  %v13923_v20 = vmul.f32 %v13543_v55, %v13543_v55  ;;  %7185 = vmatprep.mubr.f32.mxu0 %v14871_v14 }
 0x2f9   : > { %v6314_v58 = vmul.f32 %v14787_v19, %v4834_v3  ;;  %v4836_v46 = vpop.f32.mrb[141].mxu0  ;;  %v9105_v21 = vpack.c.bf16 %v6301_v57, %v6285_v62  ;;  %9098 = vmatprep.subr.bf16.mxu0 %v9097_v54  ;;  %8612 = vmatmul.mubr.msk.f32.vlgmr.msra.gmra.mrb[200].mxu1 %vm1291_vm0, %v13485_v53  ;;  %v13933_v62 = vmul.f32 %v13551_v17, %v13551_v17  ;;  %v14788_v57 = vsub.f32 1.0, %v13907_v31 }
 0x2fa   : > { %v4923_v41 = vpop.f32.mrb[140].mxu1  ;;  %v6315_v13 = vmul.f32 %v14786_v48, %v4836_v46  ;;  %9100 = vmatpush1.bf16.msra.mxu0 %v9099_v50  ;;  %v13940_v46 = vmul.f32 %v13554_v12, %v13554_v12  ;;  %7256 = vmatprep.mubr.f32.mxu1 %v14871_v14  ;;  %v14790_v17 = vsub.f32 1.0, %v13916_v15  ;;  %v14791_v12 = vsub.f32 1.0, %v13923_v20 }
 0x2fb   : > { %v6316_v11 = vmul.f32 %v14784_v43, %v4923_v41  ;;  %v4925_v3 = vpop.f32.mrb[141].mxu1  ;;  %9106 = vmatprep.subr.bf16.mxu1 %v9105_v21  ;;  %v13955_v43 = vmul.f32 %v13560_v18, %v13560_v18  ;;  %v14796_v48 = vsub.f32 1.0, %v13933_v62  ;;  %v13969_v18 = vmul.f32 %v13568_v33, %v13568_v33 }
 0x2fc   : > { %v6317_v55 = vmul.f32 %v14783_v26, %v4925_v3  ;;  %v4840_v54 = vpop.f32.mrb[142].mxu0  ;;  %9108 = vmatpush1.bf16.msra.mxu1 %v9107_v24  ;;  %v13948_v3 = vmul.f32 %v13557_v2, %v13557_v2  ;;  %v13962_v2 = vmul.f32 %v13565_v42, %v13565_v42  ;;  %v14795_v47 = vsub.f32 1.0, %v13940_v46 }
 0x2fd   : > { %v6330_v50 = vmul.f32 %v14785_v5, %v4840_v54  ;;  %v4842_v41 = vpop.f32.mrb[143].mxu0  ;;  %v13976_v42 = vmul.f32 %v13574_v22, %v13574_v22  ;;  %v13983_v33 = vmul.f32 %v13579_v35, %v13579_v35  ;;  %v13997_v35 = vmul.f32 %v13587_v6, %v13587_v6 }
 0x2fe   : > { %v4929_v21 = vpop.f32.mrb[142].mxu1  ;;  %v6331_v26 = vmul.f32 %v14788_v57, %v4842_v41  ;;  %v14794_v22 = vsub.f32 1.0, %v13962_v2  ;;  %v14011_v6 = vmul.f32 %v13591_v34, %v13591_v34 }
 0x2ff   : > { %v9103_v24 = vpack.c.bf16 %v6330_v50, %v6314_v58  ;;  %v6332_v54 = vmul.f32 %v14790_v17, %v4929_v21  ;;  %v4931_v5 = vpop.f32.mrb[143].mxu1  ;;  %v14792_v21 = vsub.f32 1.0, %v13948_v3  ;;  %v14803_v51 = vsub.f32 1.0, %v13997_v35 }
 0x300   : > { %v9101_v19 = vpack.c.bf16 %v6331_v26, %v6315_v13  ;;  %v6333_v41 = vmul.f32 %v14791_v12, %v4931_v5  ;;  %v5000_v57 = vpop.f32.mrb[144].mxu0  ;;  %v14793_v12 = vsub.f32 1.0, %v13955_v43 }
 0x301   : > { %v9111_v58 = vpack.c.bf16 %v6332_v54, %v6316_v11  ;;  %v6286_v50 = vmul.f32 %v14796_v48, %v5000_v57  ;;  %v5002_v17 = vpop.f32.mrb[145].mxu0  ;;  %v15324_v54 = vld [vmem:[#allocation15_spill] sm:$0xff] }
 0x302   : > { %v9109_v13 = vpack.c.bf16 %v6333_v41, %v6317_v55  ;;  %v5089_v26 = vpop.f32.mrb[144].mxu1  ;;  %v6287_v5 = vmul.f32 %v14795_v47, %v5002_v17  ;;  %9102 = vmatprep.subr.bf16.mxu0 %v9101_v19  ;;  %v13990_v55 = vmul.f32 %v15324_v54, %v15324_v54  ;;  %v14797_v41 = vsub.f32 1.0, %v13969_v18  ;;  %v15325_v47 = vld [vmem:[#allocation36_spill] sm:$0xff] }
 0x303   : > { %v6288_v11 = vmul.f32 %v14792_v21, %v5089_v26  ;;  %v5091_v57 = vpop.f32.mrb[145].mxu1  ;;  %9104 = vmatpush1.bf16.msra.mxu0 %v9103_v24  ;;  %v14799_v26 = vsub.f32 1.0, %v13976_v42  ;;  %v14004_v54 = vmul.f32 %v13589_v0, %v13589_v0  ;;  %v14020_v48 = vmul.f32 %v15325_v47, %v15325_v47 }
 0x304   : > { %v6289_v17 = vmul.f32 %v14793_v12, %v5091_v57  ;;  %9110 = vmatprep.subr.bf16.mxu1 %v9109_v13  ;;  %v5006_v19 = vpop.f32.mrb[146].mxu0  ;;  %v14800_v12 = vsub.f32 1.0, %v13983_v33  ;;  %v14802_v0 = vsub.f32 1.0, %v13990_v55 }
 0x305   : > { %9112 = vmatpush1.bf16.msra.mxu1 %v9111_v58  ;;  %v6302_v24 = vmul.f32 %v14794_v22, %v5006_v19  ;;  %v5008_v21 = vpop.f32.mrb[147].mxu0  ;;  %15326 = vst [vmem:[#allocation10_spill] sm:$0xff] %v14020_v48 }
 0x306   : > { %v5095_v57 = vpop.f32.mrb[146].mxu1  ;;  %v6303_v13 = vmul.f32 %v14797_v41, %v5008_v21  ;;  %8613 = vmatmul.mubr.msk.f32.vlgmr.msra.gmra.mrb[202].mxu0 %vm1291_vm0, %v13485_v53 }
 0x307   : > { %v9115_v58 = vpack.c.bf16 %v6302_v24, %v6286_v50  ;;  %v6304_v19 = vmul.f32 %v14799_v26, %v5095_v57  ;;  %v5097_v22 = vpop.f32.mrb[147].mxu1  ;;  %7327 = vmatprep.mubr.f32.mxu0 %v14871_v14  ;;  %v15327_v50 = vld [vmem:[#allocation37_spill] sm:$0xff]  ;;  %v14804_v26 = vsub.f32 1.0, %v14004_v54 }
 0x308   : > { %v9113_v21 = vpack.c.bf16 %v6303_v13, %v6287_v5  ;;  %v6305_v34 = vmul.f32 %v14800_v12, %v5097_v22  ;;  %v5012_v41 = vpop.f32.mrb[148].mxu0  ;;  %8614 = vmatmul.mubr.msk.f32.vlgmr.msra.gmra.mrb[202].mxu1 %vm1291_vm0, %v13485_v53  ;;  %v14030_v24 = vmul.f32 %v15327_v50, %v15327_v50  ;;  %v14037_v22 = vmul.f32 %v13601_v30, %v13601_v30 }
 0x309   : > { %v9123_v57 = vpack.c.bf16 %v6304_v19, %v6288_v11  ;;  %v6318_v47 = vmul.f32 %v14802_v0, %v5012_v41  ;;  %v5014_v5 = vpop.f32.mrb[149].mxu0  ;;  %7398 = vmatprep.mubr.f32.mxu1 %v14871_v14  ;;  %v14806_v50 = vsub.f32 1.0, %v14011_v6  ;;  %v14045_v11 = vmul.f32 %v13606_v9, %v13606_v9  ;;  %v15331_v0 = vld [vmem:[#allocation6_spill] sm:$0xff]  ;;  %v15332_v9 = vld [vmem:[#allocation9_spill] sm:$0xff] }
 0x30a   : > { %15328 = vst [vmem:[#allocation8_spill] sm:$0xff] %v14030_v24  ;;  %15329 = vst [vmem:[#allocation11_spill] sm:$0xff] %v14037_v22  ;;  %v9121_v13 = vpack.c.bf16 %v6305_v34, %v6289_v17  ;;  %v5101_v12 = vpop.f32.mrb[148].mxu1  ;;  %v6319_v1 = vmul.f32 %v14803_v51, %v5014_v5  ;;  %9114 = vmatprep.subr.bf16.mxu0 %v9113_v21  ;;  %v14808_v30 = vsub.f32 1.0, %v14020_v48  ;;  %v14812_v5 = vsub.f32 1.0, %v14030_v24 }
 0x30b   : > { %15330 = vst [vmem:[#allocation18_spill] sm:$0xff] %v14045_v11  ;;  %v6320_v41 = vmul.f32 %v14804_v26, %v5101_v12  ;;  %v5103_v19 = vpop.f32.mrb[149].mxu1  ;;  %9116 = vmatpush1.bf16.msra.mxu0 %v9115_v58  ;;  %v14052_v17 = vmul.f32 %v15331_v0, %v15331_v0  ;;  %v14059_v51 = vmul.f32 %v15332_v9, %v15332_v9  ;;  %v14814_v58 = vsub.f32 1.0, %v14037_v22  ;;  %v15333_v0 = vld [vmem:[#allocation7_spill] sm:$0xff] }
 0x30c   : > { %v6321_v34 = vmul.f32 %v14806_v50, %v5103_v19  ;;  %9122 = vmatprep.subr.bf16.mxu1 %v9121_v13  ;;  %v5018_v21 = vpop.f32.mrb[150].mxu0  ;;  %v14066_v23 = vmul.f32 %v15333_v0, %v15333_v0  ;;  %v14816_v50 = vsub.f32 1.0, %v14045_v11  ;;  %v14073_v9 = vmul.f32 %v15334_v7, %v15334_v7  ;;  %v15336_v7 = vld [vmem:[#allocation26_spill] sm:$0xff] }
 0x30d   : > { %9124 = vmatpush1.bf16.msra.mxu1 %v9123_v57  ;;  %v6334_v12 = vmul.f32 %v14808_v30, %v5018_v21  ;;  %v5020_v26 = vpop.f32.mrb[151].mxu0  ;;  %v14822_v40 = vsub.f32 1.0, %v14052_v17  ;;  %v14080_v0 = vmul.f32 %v15335_v25, %v15335_v25  ;;  %v14821_v24 = vsub.f32 1.0, %v14059_v51  ;;  %v15338_v25 = vld [vmem:[#allocation22_spill] sm:$0xff] }
 0x30e   : > { %v5107_v19 = vpop.f32.mrb[150].mxu1  ;;  %v6335_v13 = vmul.f32 %v14812_v5, %v5020_v26  ;;  %v14819_v11 = vsub.f32 1.0, %v14073_v9 }
 0x30f   : > { %v9119_v57 = vpack.c.bf16 %v6334_v12, %v6318_v47  ;;  %v6336_v21 = vmul.f32 %v14814_v58, %v5107_v19  ;;  %v5109_v30 = vpop.f32.mrb[151].mxu1  ;;  %v14087_v47 = vmul.f32 %v15336_v7, %v15336_v7  ;;  %v14818_v58 = vsub.f32 1.0, %v14066_v23  ;;  %v15340_v7 = vld [vmem:[#allocation30_spill] sm:$0xff] }
 0x310   : > { %v9117_v48 = vpack.c.bf16 %v6335_v13, %v6319_v1  ;;  %v6337_v26 = vmul.f32 %v14816_v50, %v5109_v30  ;;  %v5178_v5 = vpop.f32.mrb[152].mxu0  ;;  %v14094_v1 = vmul.f32 %v15338_v25, %v15338_v25  ;;  %v14820_v25 = vsub.f32 1.0, %v14080_v0 }
 0x311   : > { %15337 = vst [vmem:[#allocation13_spill] sm:$0xff] %v14087_v47  ;;  %v9127_v12 = vpack.c.bf16 %v6336_v21, %v6320_v41  ;;  %v6290_v19 = vmul.f32 %v14822_v40, %v5178_v5  ;;  %v5180_v22 = vpop.f32.mrb[153].mxu0  ;;  %v14101_v41 = vmul.f32 %v15340_v7, %v15340_v7  ;;  %v14115_v7 = vmul.f32 %v13732_v4, %v13732_v4 }
 0x312   : > { %15339 = vst [vmem:[#allocation19_spill] sm:$0xff] %v14094_v1  ;;  %v9125_v13 = vpack.c.bf16 %v6337_v26, %v6321_v34  ;;  %v5267_v30 = vpop.f32.mrb[152].mxu1  ;;  %v6291_v50 = vmul.f32 %v14821_v24, %v5180_v22  ;;  %9118 = vmatprep.subr.bf16.mxu0 %v9117_v48  ;;  %v14108_v34 = vmul.f32 %v13719_v16, %v13719_v16  ;;  %v14823_v26 = vsub.f32 1.0, %v14087_v47  ;;  %v15346_v24 = vld [vmem:[#allocation33_spill] sm:$0xff] }
 0x313   : > { %15341 = vst [vmem:[#allocation15_spill] sm:$0xff] %v14101_v41  ;;  %v6292_v5 = vmul.f32 %v14818_v58, %v5267_v30  ;;  %v5269_v21 = vpop.f32.mrb[153].mxu1  ;;  %9120 = vmatpush1.bf16.msra.mxu0 %v9119_v57  ;;  %15343 = vst [vmem:[#allocation37_spill] sm:$0xff] %v14115_v7  ;;  %v14825_v30 = vsub.f32 1.0, %v14094_v1  ;;  %v14122_v16 = vmul.f32 %v13738_v63, %v13738_v63 }
 0x314   : > { %15342 = vst [vmem:[#allocation36_spill] sm:$0xff] %v14108_v34  ;;  %v6293_v22 = vmul.f32 %v14819_v11, %v5269_v21  ;;  %9126 = vmatprep.subr.bf16.mxu1 %v9125_v13  ;;  %v5184_v48 = vpop.f32.mrb[154].mxu0  ;;  %v14826_v11 = vsub.f32 1.0, %v14101_v41  ;;  %v14129_v4 = vmul.f32 %v13751_v49, %v13751_v49  ;;  %v14828_v63 = vsub.f32 1.0, %v14108_v34 }
 0x315   : > { %9128 = vmatpush1.bf16.msra.mxu1 %v9127_v12  ;;  %v6306_v57 = vmul.f32 %v14820_v25, %v5184_v48  ;;  %v5186_v58 = vpop.f32.mrb[155].mxu0  ;;  %15344 = vst [vmem:[#allocation6_spill] sm:$0xff] %v14122_v16  ;;  %v14138_v40 = vmul.f32 %v15346_v24, %v15346_v24 }
 0x316   : > { %v5273_v21 = vpop.f32.mrb[154].mxu1  ;;  %v6307_v13 = vmul.f32 %v14823_v26, %v5186_v58  ;;  %15345 = vst [vmem:[#allocation9_spill] sm:$0xff] %v14129_v4  ;;  %8615 = vmatmul.mubr.msk.f32.vlgmr.msra.gmra.mrb[204].mxu0 %vm1291_vm0, %v13485_v53 }
 0x317   : > { %v9131_v12 = vpack.c.bf16 %v6306_v57, %v6290_v19  ;;  %v6308_v48 = vmul.f32 %v14825_v30, %v5273_v21  ;;  %v5275_v25 = vpop.f32.mrb[155].mxu1  ;;  %15347 = vst [vmem:[#allocation7_spill] sm:$0xff] %v14138_v40  ;;  %7469 = vmatprep.mubr.f32.mxu0 %v14871_v14  ;;  %v15348_v19 = vld [vmem:[#allocation34_spill] sm:$0xff]  ;;  %v14829_v30 = vsub.f32 1.0, %v14122_v16 }
 0x318   : > { %v9129_v58 = vpack.c.bf16 %v6307_v13, %v6291_v50  ;;  %v6309_v49 = vmul.f32 %v14826_v11, %v5275_v25  ;;  %v5190_v26 = vpop.f32.mrb[156].mxu0  ;;  %8616 = vmatmul.mubr.msk.f32.vlgmr.msra.gmra.mrb[204].mxu1 %vm1291_vm0, %v13485_v53  ;;  %v14148_v57 = vmul.f32 %v15348_v19, %v15348_v19  ;;  %v15350_v13 = vld [vmem:[#allocation35_spill] sm:$0xff]  ;;  %v15351_v53 = vsub.f32 1.0, %v14115_v7 }
 0x319   : > { %v9139_v21 = vpack.c.bf16 %v6308_v48, %v6292_v5  ;;  %v6322_v24 = vmul.f32 %v14828_v63, %v5190_v26  ;;  %v5192_v50 = vpop.f32.mrb[157].mxu0  ;;  %v14155_v25 = vmul.f32 %v15350_v13, %v15350_v13  ;;  %7540 = vmatprep.mubr.f32.mxu1 %v14871_v14  ;;  %v14830_v19 = vsub.f32 1.0, %v14129_v4 }
 0x31a   : > { %15349 = vst [vmem:[#allocation23_spill] sm:$0xff] %v14148_v57  ;;  %v9137_v11 = vpack.c.bf16 %v6309_v49, %v6293_v22  ;;  %v5279_v47 = vpop.f32.mrb[156].mxu1  ;;  %v6323_v41 = vmul.f32 %v15351_v53, %v5192_v50  ;;  %9130 = vmatprep.subr.bf16.mxu0 %v9129_v58  ;;  %v14163_v5 = vmul.f32 %v13798_v44, %v13798_v44  ;;  %v14832_v13 = vsub.f32 1.0, %v14138_v40 }
 0x31b   : > { %v6324_v26 = vmul.f32 %v14829_v30, %v5279_v47  ;;  %v5281_v48 = vpop.f32.mrb[157].mxu1  ;;  %9132 = vmatpush1.bf16.msra.mxu0 %v9131_v12  ;;  %v14838_v50 = vsub.f32 1.0, %v14148_v57  ;;  %v14840_v44 = vsub.f32 1.0, %v14155_v25 }
 0x31c   : > { %v6325_v22 = vmul.f32 %v14830_v19, %v5281_v48  ;;  %9138 = vmatprep.subr.bf16.mxu1 %v9137_v11  ;;  %v5196_v49 = vpop.f32.mrb[158].mxu0  ;;  %v6277_v12 = vsub.f32 1.0, %v14163_v5 }
 0x31d   : > { %9140 = vmatpush1.bf16.msra.mxu1 %v9139_v21  ;;  %v6338_v58 = vmul.f32 %v14832_v13, %v5196_v49  ;;  %v5198_v53 = vpop.f32.mrb[159].mxu0  ;;  %v15352_v13 = vld [vmem:[#allocation21_spill] sm:$0xff] }
 0x31e   : > { %v5285_v63 = vpop.f32.mrb[158].mxu1  ;;  %v6339_v47 = vmul.f32 %v14838_v50, %v5198_v53  ;;  %v15353_v4 = vsub.f32 1.0, %v15352_v13  ;;  %v15354_v53 = vld [vmem:[#allocation28_spill] sm:$0xff] }
 0x31f   : > { %v9135_v30 = vpack.c.bf16 %v6338_v58, %v6322_v24  ;;  %v6340_v11 = vmul.f32 %v14840_v44, %v5285_v63  ;;  %v5287_v48 = vpop.f32.mrb[159].mxu1  ;;  %v15355_v50 = vsub.f32 1.0, %v15354_v53  ;;  %v15356_v24 = vld [vmem:[#allocation27_spill] sm:$0xff]  ;;  %v15360_v13 = vld [vmem:[#allocation12_spill] sm:$0xff] }
 0x320   : > { %v9133_v19 = vpack.c.bf16 %v6339_v47, %v6323_v41  ;;  %v6341_v21 = vmul.f32 %v6277_v12, %v5287_v48  ;;  %v5356_v40 = vpop.f32.mrb[160].mxu0  ;;  %v15357_v58 = vsub.f32 1.0, %v15356_v24  ;;  %v15358_v41 = vld [vmem:[#allocation17_spill] sm:$0xff]  ;;  %v15366_v24 = vld [vmem:[#allocation16_spill] sm:$0xff] }
 0x321   : > { %v9143_v49 = vpack.c.bf16 %v6340_v11, %v6324_v26  ;;  %v6342_v16 = vmul.f32 %v15353_v4, %v5356_v40  ;;  %v5358_v7 = vpop.f32.mrb[161].mxu0  ;;  %v15359_v47 = vsub.f32 1.0, %v15358_v41  ;;  %v15361_v40 = vsub.f32 1.0, %v15360_v13  ;;  %v15368_v13 = vld [vmem:[#allocation20_spill] sm:$0xff] }
 0x322   : > { %v9141_v34 = vpack.c.bf16 %v6341_v21, %v6325_v22  ;;  %v5445_v57 = vpop.f32.mrb[160].mxu1  ;;  %v6343_v1 = vmul.f32 %v15355_v50, %v5358_v7  ;;  %9134 = vmatprep.subr.bf16.mxu0 %v9133_v19  ;;  %v15362_v21 = vld [vmem:[#allocation24_spill] sm:$0xff] }
 0x323   : > { %v6344_v63 = vmul.f32 %v15357_v58, %v5445_v57  ;;  %v5447_v44 = vpop.f32.mrb[161].mxu1  ;;  %9136 = vmatpush1.bf16.msra.mxu0 %v9135_v30  ;;  %v15363_v53 = vsub.f32 1.0, %v15362_v21  ;;  %v14196_v57 = vld [vmem:[%s14522_s5] sm:$0x3]  ;;  %v15367_v58 = vsub.f32 1.0, %v15366_v24  ;;  %v15374_v24 = vld [vmem:[#allocation32_spill] sm:$0xff] }
 0x324   : > { %v6345_v48 = vmul.f32 %v15359_v47, %v5447_v44  ;;  %9142 = vmatprep.subr.bf16.mxu1 %v9141_v34  ;;  %v5362_v26 = vpop.f32.mrb[162].mxu0  ;;  %v15364_v34 = vld [vmem:[#allocation25_spill] sm:$0xff] }
 0x325   : > { %9144 = vmatpush1.bf16.msra.mxu1 %v9143_v49  ;;  %v6358_v4 = vmul.f32 %v15361_v40, %v5362_v26  ;;  %v5364_v22 = vpop.f32.mrb[163].mxu0  ;;  %v15365_v19 = vsub.f32 1.0, %v15364_v34  ;;  %v15369_v40 = vsub.f32 1.0, %v15368_v13 }
 0x326   : > { %v5451_v11 = vpop.f32.mrb[162].mxu1  ;;  %v6359_v7 = vmul.f32 %v15363_v53, %v5364_v22  ;;  %8617 = vmatmul.mubr.msk.f32.vlgmr.msra.gmra.mrb[206].mxu0 %vm1291_vm0, %v14196_v57 }
 0x327   : > { %v9147_v30 = vpack.c.bf16 %v6358_v4, %v6342_v16  ;;  %v6360_v50 = vmul.f32 %v15365_v19, %v5451_v11  ;;  %v5453_v44 = vpop.f32.mrb[163].mxu1  ;;  %7611 = vmatprep.mubr.f32.mxu0 %v14871_v14  ;;  %v15370_v11 = vld [vmem:[#allocation31_spill] sm:$0xff] }
 0x328   : > { %v9145_v49 = vpack.c.bf16 %v6359_v7, %v6343_v1  ;;  %v6361_v41 = vmul.f32 %v15367_v58, %v5453_v44  ;;  %v5368_v47 = vpop.f32.mrb[164].mxu0  ;;  %8618 = vmatmul.mubr.msk.f32.vlgmr.msra.gmra.mrb[206].mxu1 %vm1291_vm0, %v14196_v57  ;;  %v15371_v53 = vsub.f32 1.0, %v15370_v11  ;;  %v15372_v1 = vld [vmem:[#allocation29_spill] sm:$0xff]  ;;  %v15375_v58 = vsub.f32 1.0, %v15374_v24 }
 0x329   : > { %v9155_v26 = vpack.c.bf16 %v6360_v50, %v6344_v63  ;;  %v6374_v22 = vmul.f32 %v15369_v40, %v5368_v47  ;;  %v5370_v21 = vpop.f32.mrb[165].mxu0  ;;  %7682 = vmatprep.mubr.f32.mxu1 %v14871_v14  ;;  %v15373_v7 = vsub.f32 1.0, %v15372_v1  ;;  %v15376_v47 = vld [vmem:[#allocation5_spill] sm:$0xff]  ;;  %v15378_v11 = vsub.f32 1.0, %v13759_v61 }
 0x32a   : > { %v9153_v16 = vpack.c.bf16 %v6361_v41, %v6345_v48  ;;  %v5457_v4 = vpop.f32.mrb[164].mxu1  ;;  %v6375_v34 = vmul.f32 %v15371_v53, %v5370_v21  ;;  %9146 = vmatprep.subr.bf16.mxu0 %v9145_v49  ;;  %v15377_v13 = vsub.f32 1.0, %v15376_v47  ;;  %v15379_v53 = vsub.f32 1.0, %v13772_v56 }
 0x32b   : > { %v6376_v19 = vmul.f32 %v15373_v7, %v5457_v4  ;;  %v5459_v44 = vpop.f32.mrb[165].mxu1  ;;  %9148 = vmatpush1.bf16.msra.mxu0 %v9147_v30  ;;  %v15380_v7 = vsub.f32 1.0, %v13781_v29  ;;  %v15382_v61 = vsub.f32 1.0, %v13807_v60  ;;  %v15383_v56 = vsub.f32 1.0, %v13816_v28 }
 0x32c   : > { %v6377_v63 = vmul.f32 %v15375_v58, %v5459_v44  ;;  %9154 = vmatprep.subr.bf16.mxu1 %v9153_v16  ;;  %v5374_v50 = vpop.f32.mrb[166].mxu0  ;;  %v15384_v29 = vsub.f32 1.0, %v13823_v38  ;;  %v15386_v60 = vsub.f32 1.0, %v13838_v10 }
 0x32d   : > { %9156 = vmatpush1.bf16.msra.mxu1 %v9155_v26  ;;  %v6390_v40 = vmul.f32 %v15377_v13, %v5374_v50  ;;  %v5376_v48 = vpop.f32.mrb[167].mxu0  ;;  %v15381_v26 = vsub.f32 1.0, %v13796_v32  ;;  %v15385_v32 = vsub.f32 1.0, %v13831_v37 }
 0x32e   : > { %v5463_v41 = vpop.f32.mrb[166].mxu1  ;;  %v6391_v21 = vmul.f32 %v15378_v11, %v5376_v48 }
 0x32f   : > { %v9151_v49 = vpack.c.bf16 %v6390_v40, %v6374_v22  ;;  %v6392_v4 = vmul.f32 %v15379_v53, %v5463_v41  ;;  %v5465_v1 = vpop.f32.mrb[167].mxu1 }
 0x330   : > { %v9149_v30 = vpack.c.bf16 %v6391_v21, %v6375_v34  ;;  %v6393_v44 = vmul.f32 %v15380_v7, %v5465_v1  ;;  %v5534_v16 = vpop.f32.mrb[168].mxu0  ;;  %v15388_v1 = vsub.f32 1.0, %v13858_v45  ;;  %v15389_v7 = vsub.f32 1.0, %v13868_v27 }
 0x331   : > { %v9159_v24 = vpack.c.bf16 %v6392_v4, %v6376_v19  ;;  %v6346_v58 = vmul.f32 %v15381_v26, %v5534_v16  ;;  %v5536_v50 = vpop.f32.mrb[169].mxu0  ;;  %v15390_v26 = vsub.f32 1.0, %v13878_v59  ;;  %v15391_v45 = vsub.f32 1.0, %v13886_v52 }
 0x332   : > { %v9157_v47 = vpack.c.bf16 %v6393_v44, %v6377_v63  ;;  %v5623_v13 = vpop.f32.mrb[168].mxu1  ;;  %v6347_v48 = vmul.f32 %v15382_v61, %v5536_v50  ;;  %9150 = vmatprep.subr.bf16.mxu0 %v9149_v30  ;;  %v15394_v59 = vsub.f32 1.0, %v13907_v31  ;;  %v15395_v52 = vsub.f32 1.0, %v13916_v15 }
 0x333   : > { %v6348_v22 = vmul.f32 %v15383_v56, %v5623_v13  ;;  %v5625_v40 = vpop.f32.mrb[169].mxu1  ;;  %9152 = vmatpush1.bf16.msra.mxu0 %v9151_v49  ;;  %v15387_v49 = vsub.f32 1.0, %v13848_v39  ;;  %v15392_v13 = vsub.f32 1.0, %v13893_v8  ;;  %v15396_v8 = vsub.f32 1.0, %v13923_v20 }
 0x334   : > { %v6349_v34 = vmul.f32 %v15384_v29, %v5625_v40  ;;  %9158 = vmatprep.subr.bf16.mxu1 %v9157_v47  ;;  %v5540_v19 = vpop.f32.mrb[170].mxu0  ;;  %v15398_v31 = vsub.f32 1.0, %v13940_v46  ;;  %v15399_v15 = vsub.f32 1.0, %v13948_v3  ;;  %v15400_v20 = vsub.f32 1.0, %v13955_v43 }
 0x335   : > { %9160 = vmatpush1.bf16.msra.mxu1 %v9159_v24  ;;  %v6362_v41 = vmul.f32 %v15385_v32, %v5540_v19  ;;  %v5542_v63 = vpop.f32.mrb[171].mxu0  ;;  %v15402_v46 = vsub.f32 1.0, %v13969_v18 }
 0x336   : > { %v5629_v11 = vpop.f32.mrb[170].mxu1  ;;  %v6363_v21 = vmul.f32 %v15386_v60, %v5542_v63  ;;  %8619 = vmatmul.mubr.msk.f32.vlgmr.msra.gmra.mrb[208].mxu0 %vm1291_vm0, %v14196_v57 }
 0x337   : > { %v9163_v28 = vpack.c.bf16 %v6362_v41, %v6346_v58  ;;  %v6364_v53 = vmul.f32 %v15387_v49, %v5629_v11  ;;  %v5631_v38 = vpop.f32.mrb[171].mxu1  ;;  %7753 = vmatprep.mubr.f32.mxu0 %v14871_v14 }
 0x338   : > { %v9161_v4 = vpack.c.bf16 %v6363_v21, %v6347_v48  ;;  %v6365_v37 = vmul.f32 %v15388_v1, %v5631_v38  ;;  %8620 = vmatmul.mubr.msk.f32.vlgmr.msra.gmra.mrb[208].mxu1 %vm1291_vm0, %v14196_v57  ;;  %v5546_v30 = vpop.f32.mrb[172].mxu0  ;;  %v15393_v48 = vsub.f32 1.0, %v13900_v36  ;;  %v15397_v21 = vsub.f32 1.0, %v13933_v62 }
 0x339   : > { %v9171_v10 = vpack.c.bf16 %v6364_v53, %v6348_v22  ;;  %v6378_v44 = vmul.f32 %v15389_v7, %v5546_v30  ;;  %v5548_v16 = vpop.f32.mrb[173].mxu0  ;;  %7824 = vmatprep.mubr.f32.mxu1 %v14871_v14  ;;  %v15401_v62 = vsub.f32 1.0, %v13962_v2 }
 0x33a   : > { %v9169_v39 = vpack.c.bf16 %v6365_v37, %v6349_v34  ;;  %v5635_v24 = vpop.f32.mrb[172].mxu1  ;;  %v6379_v58 = vmul.f32 %v15390_v26, %v5548_v16  ;;  %9162 = vmatprep.subr.bf16.mxu0 %v9161_v4 }
 0x33b   : > { %v6380_v50 = vmul.f32 %v15391_v45, %v5635_v24  ;;  %v5637_v47 = vpop.f32.mrb[173].mxu1  ;;  %9164 = vmatpush1.bf16.msra.mxu0 %v9163_v28 }
 0x33c   : > { %v6381_v61 = vmul.f32 %v15392_v13, %v5637_v47  ;;  %9170 = vmatprep.subr.bf16.mxu1 %v9169_v39  ;;  %v5552_v27 = vpop.f32.mrb[174].mxu0  ;;  %v15403_v39 = vsub.f32 1.0, %v13976_v42 }
 0x33d   : > { %9172 = vmatpush1.bf16.msra.mxu1 %v9171_v10  ;;  %v6394_v56 = vmul.f32 %v15393_v48, %v5552_v27  ;;  %v5554_v22 = vpop.f32.mrb[175].mxu0  ;;  %v15406_v27 = vsub.f32 1.0, %v13997_v35 }
 0x33e   : > { %v5641_v40 = vpop.f32.mrb[174].mxu1  ;;  %v6395_v29 = vmul.f32 %v15394_v59, %v5554_v22 }
 0x33f   : > { %v9167_v34 = vpack.c.bf16 %v6394_v56, %v6378_v44  ;;  %v6396_v19 = vmul.f32 %v15395_v52, %v5641_v40  ;;  %v5643_v32 = vpop.f32.mrb[175].mxu1  ;;  %v15408_v40 = vsub.f32 1.0, %v14011_v6 }
 0x340   : > { %v9165_v41 = vpack.c.bf16 %v6395_v29, %v6379_v58  ;;  %v6397_v63 = vmul.f32 %v15396_v8, %v5643_v32  ;;  %v5712_v11 = vpop.f32.mrb[176].mxu0  ;;  %v15404_v58 = vsub.f32 1.0, %v13983_v33  ;;  %v15407_v33 = vsub.f32 1.0, %v14004_v54  ;;  %v15409_v29 = vld [vmem:[#allocation10_spill] sm:$0xff] }
 0x341   : > { %v9175_v60 = vpack.c.bf16 %v6396_v19, %v6380_v50  ;;  %v6350_v36 = vmul.f32 %v15397_v21, %v5712_v11  ;;  %v5714_v28 = vpop.f32.mrb[177].mxu0  ;;  %v15405_v50 = vsub.f32 1.0, %v13990_v55  ;;  %v15413_v11 = vld [vmem:[#allocation11_spill] sm:$0xff] }
 0x342   : > { %v9173_v49 = vpack.c.bf16 %v6397_v63, %v6381_v61  ;;  %v5801_v53 = vpop.f32.mrb[176].mxu1  ;;  %v6351_v38 = vmul.f32 %v15398_v31, %v5714_v28  ;;  %9166 = vmatprep.subr.bf16.mxu0 %v9165_v41  ;;  %v15411_v41 = vld [vmem:[#allocation8_spill] sm:$0xff]  ;;  %v15414_v54 = vsub.f32 1.0, %v15413_v11  ;;  %v15415_v28 = vld [vmem:[#allocation18_spill] sm:$0xff] }
 0x343   : > { %v6352_v4 = vmul.f32 %v15399_v15, %v5801_v53  ;;  %v5803_v1 = vpop.f32.mrb[177].mxu1  ;;  %9168 = vmatpush1.bf16.msra.mxu0 %v9167_v34  ;;  %v15410_v34 = vsub.f32 1.0, %v15409_v29  ;;  %v15412_v35 = vsub.f32 1.0, %v15411_v41  ;;  %v15416_v6 = vsub.f32 1.0, %v15415_v28  ;;  %v15432_v29 = vld [vmem:[#allocation6_spill] sm:$0xff] }
 0x344   : > { %v6353_v37 = vmul.f32 %v15400_v20, %v5803_v1  ;;  %9174 = vmatprep.subr.bf16.mxu1 %v9173_v49  ;;  %v5718_v30 = vpop.f32.mrb[178].mxu0 }
 0x345   : > { %9176 = vmatpush1.bf16.msra.mxu1 %v9175_v60  ;;  %v6366_v10 = vmul.f32 %v15401_v62, %v5718_v30  ;;  %v5720_v7 = vpop.f32.mrb[179].mxu0  ;;  %v15419_v62 = vsub.f32 1.0, %v14066_v23 }
 0x346   : > { %v5807_v44 = vpop.f32.mrb[178].mxu1  ;;  %v6367_v16 = vmul.f32 %v15402_v46, %v5720_v7  ;;  %8621 = vmatmul.mubr.msk.f32.vlgmr.msra.gmra.mrb[210].mxu0 %vm1291_vm0, %v14196_v57 }
 0x347   : > { %v9179_v3 = vpack.c.bf16 %v6366_v10, %v6350_v36  ;;  %v6368_v24 = vmul.f32 %v15403_v39, %v5807_v44  ;;  %v5809_v43 = vpop.f32.mrb[179].mxu1  ;;  %7895 = vmatprep.mubr.f32.mxu0 %v14871_v14  ;;  %v15420_v44 = vsub.f32 1.0, %v14073_v9 }
 0x348   : > { %v9177_v26 = vpack.c.bf16 %v6367_v16, %v6351_v38  ;;  %v6369_v2 = vmul.f32 %v15404_v58, %v5809_v43  ;;  %8622 = vmatmul.mubr.msk.f32.vlgmr.msra.gmra.mrb[210].mxu1 %vm1291_vm0, %v14196_v57  ;;  %v5724_v45 = vpop.f32.mrb[180].mxu0  ;;  %v15417_v38 = vsub.f32 1.0, %v14052_v17  ;;  %v15421_v17 = vsub.f32 1.0, %v14080_v0  ;;  %v15422_v43 = vld [vmem:[#allocation13_spill] sm:$0xff]  ;;  %v15424_v58 = vld [vmem:[#allocation19_spill] sm:$0xff] }
 0x349   : > { %v9187_v18 = vpack.c.bf16 %v6368_v24, %v6352_v4  ;;  %v6382_v47 = vmul.f32 %v15405_v50, %v5724_v45  ;;  %v5726_v13 = vpop.f32.mrb[181].mxu0  ;;  %7966 = vmatprep.mubr.f32.mxu1 %v14871_v14  ;;  %v15426_v50 = vld [vmem:[#allocation15_spill] sm:$0xff] }
 0x34a   : > { %v9185_v42 = vpack.c.bf16 %v6369_v2, %v6353_v37  ;;  %v5813_v61 = vpop.f32.mrb[180].mxu1  ;;  %v6383_v48 = vmul.f32 %v15406_v27, %v5726_v13  ;;  %9178 = vmatprep.subr.bf16.mxu0 %v9177_v26  ;;  %v15418_v37 = vsub.f32 1.0, %v14059_v51  ;;  %v15423_v51 = vsub.f32 1.0, %v15422_v43 }
 0x34b   : > { %v6384_v56 = vmul.f32 %v15407_v33, %v5813_v61  ;;  %v5815_v22 = vpop.f32.mrb[181].mxu1  ;;  %9180 = vmatpush1.bf16.msra.mxu0 %v9179_v3  ;;  %v15425_v2 = vsub.f32 1.0, %v15424_v58  ;;  %v15428_v61 = vld [vmem:[#allocation36_spill] sm:$0xff] }
 0x34c   : > { %v6385_v59 = vmul.f32 %v15408_v40, %v5815_v22  ;;  %9186 = vmatprep.subr.bf16.mxu1 %v9185_v42  ;;  %v5730_v55 = vpop.f32.mrb[182].mxu0  ;;  %v15429_v27 = vsub.f32 1.0, %v15428_v61  ;;  %v15430_v40 = vld [vmem:[#allocation37_spill] sm:$0xff] }
 0x34d   : > { %9188 = vmatpush1.bf16.msra.mxu1 %v9187_v18  ;;  %v6398_v52 = vmul.f32 %v15410_v34, %v5730_v55  ;;  %v5732_v19 = vpop.f32.mrb[183].mxu0  ;;  %v15433_v34 = vsub.f32 1.0, %v15432_v29 }
 0x34e   : > { %v5819_v32 = vpop.f32.mrb[182].mxu1  ;;  %v6399_v8 = vmul.f32 %v15412_v35, %v5732_v19 }
 0x34f   : > { %v9183_v63 = vpack.c.bf16 %v6398_v52, %v6382_v47  ;;  %v6400_v60 = vmul.f32 %v15414_v54, %v5819_v32  ;;  %v5821_v21 = vpop.f32.mrb[183].mxu1  ;;  %v15427_v47 = vsub.f32 1.0, %v15426_v50  ;;  %v15434_v32 = vld [vmem:[#allocation9_spill] sm:$0xff] }
 0x350   : > { %v9181_v36 = vpack.c.bf16 %v6399_v8, %v6383_v48  ;;  %v6401_v49 = vmul.f32 %v15416_v6, %v5821_v21  ;;  %v5890_v53 = vpop.f32.mrb[184].mxu0  ;;  %v15435_v41 = vsub.f32 1.0, %v15434_v32  ;;  %v15438_v21 = vld [vmem:[#allocation23_spill] sm:$0xff] }
 0x351   : > { %v9191_v31 = vpack.c.bf16 %v6400_v60, %v6384_v56  ;;  %v6354_v15 = vmul.f32 %v15417_v38, %v5890_v53  ;;  %v5892_v4 = vpop.f32.mrb[185].mxu0 }
 0x352   : > { %v9189_v1 = vpack.c.bf16 %v6401_v49, %v6385_v59  ;;  %v5979_v20 = vpop.f32.mrb[184].mxu1  ;;  %v6355_v30 = vmul.f32 %v15418_v37, %v5892_v4  ;;  %9182 = vmatprep.subr.bf16.mxu0 %v9181_v36  ;;  %v15431_v59 = vsub.f32 1.0, %v15430_v40  ;;  %v15439_v36 = vsub.f32 1.0, %v15438_v21 }
 0x353   : > { %v6356_v10 = vmul.f32 %v15419_v62, %v5979_v20  ;;  %v5981_v7 = vpop.f32.mrb[185].mxu1  ;;  %9184 = vmatpush1.bf16.msra.mxu0 %v9183_v63  ;;  %v15436_v63 = vld [vmem:[#allocation7_spill] sm:$0xff]  ;;  %v15440_v49 = vsub.f32 1.0, %v14155_v25 }
 0x354   : > { %v6357_v46 = vmul.f32 %v15420_v44, %v5981_v7  ;;  %9190 = vmatprep.subr.bf16.mxu1 %v9189_v1  ;;  %v5896_v16 = vpop.f32.mrb[186].mxu0  ;;  %v15437_v11 = vsub.f32 1.0, %v15436_v63 }
 0x355   : > { %9192 = vmatpush1.bf16.msra.mxu1 %v9191_v31  ;;  %v6370_v3 = vmul.f32 %v15421_v17, %v5896_v16  ;;  %v5898_v39 = vpop.f32.mrb[187].mxu0 }
 0x356   : > { %v5985_v24 = vpop.f32.mrb[186].mxu1  ;;  %v6371_v26 = vmul.f32 %v15423_v51, %v5898_v39  ;;  %8623 = vmatmul.mubr.msk.f32.vlgmr.msra.gmra.mrb[212].mxu0 %vm1291_vm0, %v14196_v57 }
 0x357   : > { %v9195_v23 = vpack.c.bf16 %v6370_v3, %v6354_v15  ;;  %v6372_v45 = vmul.f32 %v15425_v2, %v5985_v24  ;;  %v5987_v9 = vpop.f32.mrb[187].mxu1  ;;  %8037 = vmatprep.mubr.f32.mxu0 %v14871_v14 }
 0x358   : > { %v9193_v18 = vpack.c.bf16 %v6371_v26, %v6355_v30  ;;  %v6373_v0 = vmul.f32 %v15427_v47, %v5987_v9  ;;  %8624 = vmatmul.mubr.msk.f32.vlgmr.msra.gmra.mrb[212].mxu1 %vm1291_vm0, %v14196_v57  ;;  %v5902_v13 = vpop.f32.mrb[188].mxu0 }
 0x359   : > { %v9203_v42 = vpack.c.bf16 %v6372_v45, %v6356_v10  ;;  %v6386_v48 = vmul.f32 %v15429_v27, %v5902_v13  ;;  %v5904_v33 = vpop.f32.mrb[189].mxu0  ;;  %8108 = vmatprep.mubr.f32.mxu1 %v14871_v14  ;;  %v14384_v27 = vpop.permute.xlu0 %8133 }
 0x35a   : > { %v9201_v56 = vpack.c.bf16 %v6373_v0, %v6357_v46  ;;  %v5991_v22 = vpop.f32.mrb[188].mxu1  ;;  %v6387_v55 = vmul.f32 %v15431_v59, %v5904_v33  ;;  %9194 = vmatprep.subr.bf16.mxu0 %v9193_v18 }
 0x35b   : > { %v6388_v52 = vmul.f32 %v15433_v34, %v5991_v22  ;;  %v5993_v19 = vpop.f32.mrb[189].mxu1  ;;  %9196 = vmatpush1.bf16.msra.mxu0 %v9195_v23 }
 0x35c   : > { %v6389_v35 = vmul.f32 %v15435_v41, %v5993_v19  ;;  %9202 = vmatprep.subr.bf16.mxu1 %v9201_v56  ;;  %v5908_v8 = vpop.f32.mrb[190].mxu0 }
 0x35d   : > { %9204 = vmatpush1.bf16.msra.mxu1 %v9203_v42  ;;  %v6402_v14 = vmul.f32 %v15437_v11, %v5908_v8  ;;  %v5910_v54 = vpop.f32.mrb[191].mxu0 }
 0x35e   : > { %v5997_v60 = vpop.f32.mrb[190].mxu1  ;;  %v6403_v28 = vmul.f32 %v15439_v36, %v5910_v54 }
 0x35f   : > { %v9199_v6 = vpack.c.bf16 %v6402_v14, %v6386_v48  ;;  %v6404_v53 = vmul.f32 %v15440_v49, %v5997_v60  ;;  %v5999_v31 = vpop.f32.mrb[191].mxu1 }
 0x360   : > { %v9197_v38 = vpack.c.bf16 %v6403_v28, %v6387_v55  ;;  %v6405_v15 = vmul.f32 %v6277_v12, %v5999_v31 }
 0x361   : > { %v9207_v4 = vpack.c.bf16 %v6404_v53, %v6388_v52 }
 0x362   : > { %v9205_v1 = vpack.c.bf16 %v6405_v15, %v6389_v35  ;;  %9198 = vmatprep.subr.bf16.mxu0 %v9197_v38 }
 0x363   : > { %9200 = vmatpush1.bf16.msra.mxu0 %v9199_v6 }
 0x364   : > { %9206 = vmatprep.subr.bf16.mxu1 %v9205_v1 }
 0x365   : > { %9208 = vmatpush1.bf16.msra.mxu1 %v9207_v4 }
 0x366   : > { %8625 = vmatmul.mubr.msk.f32.vlgmr.msra.gmra.mrb[214].mxu0 %vm1291_vm0, %v14196_v57 }
 0x368   : > { %8626 = vmatmul.mubr.msk.f32.vlgmr.msra.gmra.mrb[214].mxu1 %vm1291_vm0, %v14196_v57 }
 0x383   : > { %v6477_v20 = vpop.f32.mrb[192].mxu0 }
 0x384   : > { %v6479_v25 = vpop.f32.mrb[193].mxu0  ;;  %v8136_v33 = vadd.f32 %v14384_v27, %v6477_v20 }
 0x385   : > { %v6548_v37 = vpop.f32.mrb[192].mxu1  ;;  %v8137_v22 = vadd.f32 %v14384_v27, %v6479_v25 }
 0x386   : > { %v6550_v30 = vpop.f32.mrb[193].mxu1  ;;  %v8138_v59 = vadd.f32 %v14384_v27, %v6548_v37  ;;  %v8216_v52 = vrot.slane %v8136_v33, 7 }
 0x387   : > { %v8139_v29 = vadd.f32 %v14384_v27, %v6550_v30  ;;  %v8217_v41 = vrot.slane %v8137_v22, 7 }
 0x388   : > { %v8218_v11 = vrot.slane %v8138_v59, 7 }
 0x389   : > { %v8219_v36 = vrot.slane %v8139_v29, 7 }
 0x394   : > { %v14342_v62 = vpop.f32.mrb[194].mxu0 }
 0x395   : > { %v14344_v5 = vpop.f32.mrb[195].mxu0  ;;  %v8140_v20 = vadd.f32 %v14384_v27, %v14342_v62 }
 0x396   : > { %v14346_v12 = vpop.f32.mrb[194].mxu1  ;;  %v8141_v37 = vadd.f32 %v14384_v27, %v14344_v5 }
 0x397   : > { %v14348_v10 = vpop.f32.mrb[195].mxu1 }
 0x3a7   : > { %v14350_v7 = vpop.f32.mrb[196].mxu0 }
 0x3a8   : > { %v14352_v44 = vpop.f32.mrb[197].mxu0 }
 0x3a9   : > { %v14354_v46 = vpop.f32.mrb[196].mxu1 }
 0x3aa   : > { %v14356_v16 = vpop.f32.mrb[197].mxu1 }
 0x3c1   : > { %v14358_v57 = vpop.f32.mrb[198].mxu0 }
 0x3c2   : > { %v14360_v17 = vpop.f32.mrb[199].mxu0 }
 0x3c3   : > { %v14362_v3 = vpop.f32.mrb[198].mxu1 }
 0x3c4   : > { %v14364_v39 = vpop.f32.mrb[199].mxu1 }
 0x3ca   : > { %v7045_v24 = vpop.f32.mrb[200].mxu0 }
 0x3cb   : > { %v7047_v43 = vpop.f32.mrb[201].mxu0  ;;  %v8115_v48 = vsub.f32 0.0, %v7045_v24  ;;  %v8142_v24 = vadd.f32 %v14384_v27, %v14346_v12 }
 0x3cc   : > { %v7116_v51 = vpop.f32.mrb[200].mxu1  ;;  %v8116_v56 = vsub.f32 0.0, %v7047_v43 }
 0x3cd   : > { %v7118_v26 = vpop.f32.mrb[201].mxu1  ;;  %v8117_v40 = vsub.f32 0.0, %v7116_v51  ;;  %v8168_v34 = vrot.slane %v8115_v48, 7  ;;  %v8143_v51 = vadd.f32 %v14384_v27, %v14348_v10  ;;  %v8220_v48 = vrot.slane %v8140_v20, 7 }
 0x3ce   : > { %v8118_v55 = vsub.f32 0.0, %v7118_v26  ;;  %v8169_v19 = vrot.slane %v8116_v56, 7  ;;  %v8221_v56 = vrot.slane %v8141_v37, 7  ;;  %v8222_v5 = vrot.slane %v8142_v24, 7 }
 0x3cf   : > { %v8170_v35 = vrot.slane %v8117_v40, 7  ;;  %v8223_v59 = vrot.slane %v8143_v51, 7 }
 0x3d0   : > { %v8171_v14 = vrot.slane %v8118_v55, 7 }
 0x3d9   : > { %v7187_v23 = vpop.f32.mrb[202].mxu0 }
 0x3da   : > { %v7189_v58 = vpop.f32.mrb[203].mxu0  ;;  %v8119_v1 = vsub.f32 0.0, %v7187_v23 }
 0x3db   : > { %v7258_v2 = vpop.f32.mrb[202].mxu1  ;;  %v8120_v25 = vsub.f32 0.0, %v7189_v58 }
 0x3dc   : > { %v14366_v45 = vpop.f32.mrb[203].mxu1  ;;  %v8121_v30 = vsub.f32 0.0, %v7258_v2  ;;  %v8172_v26 = vrot.slane %v8119_v1, 7 }
 0x3dd   : > { %v8122_v43 = vsub.f32 0.0, %v14366_v45  ;;  %v8173_v33 = vrot.slane %v8120_v25, 7 }
 0x3de   : > { %v8174_v22 = vrot.slane %v8121_v30, 7 }
 0x3df   : > { %v8175_v2 = vrot.slane %v8122_v43, 7  ;;  %v8148_v43 = vadd.f32 %v14384_v27, %v14358_v57 }
 0x3e9   : > { %v14368_v9 = vpop.f32.mrb[204].mxu0 }
 0x3ea   : > { %v14370_v18 = vpop.f32.mrb[205].mxu0 }
 0x3eb   : > { %v14372_v50 = vpop.f32.mrb[204].mxu1 }
 0x3ec   : > { %v14374_v47 = vpop.f32.mrb[205].mxu1 }
 0x3f9   : > { %v14376_v0 = vpop.f32.mrb[206].mxu0 }
 0x3fa   : > { %v14378_v13 = vpop.f32.mrb[207].mxu0  ;;  %v8127_v24 = vsub.f32 0.0, %v14376_v0  ;;  %v8228_v0 = vrot.slane %v8148_v43, 7 }
 0x3fb   : > { %v14380_v42 = vpop.f32.mrb[206].mxu1  ;;  %v8128_v51 = vsub.f32 0.0, %v14378_v13 }
 0x3fc   : > { %v14382_v61 = vpop.f32.mrb[207].mxu1 }
 0x409   : > { %v7613_v32 = vpop.f32.mrb[208].mxu0 }
 0x40a   : > { %v8249_v8 = vsel %vm8248_vm1, %v7613_v32, %v8168_v34  ;;  %v7615_v63 = vpop.f32.mrb[209].mxu0 }
 0x40b   : > { %v8266_v54 = vsel %vm8265_vm2, %v8249_v8, %v8216_v52  ;;  %v7684_v60 = vpop.f32.mrb[208].mxu1  ;;  %v8250_v21 = vsel %vm8248_vm1, %v7615_v63, %v8169_v19  ;;  %v8144_v8 = vadd.f32 %v14384_v27, %v14350_v7  ;;  %v8124_v63 = vsub.f32 0.0, %v14370_v18 }
 0x40c   : > { %v8251_v28 = vsel %vm8248_vm1, %v7684_v60, %v8170_v35  ;;  %v8267_v6 = vsel %vm8265_vm2, %v8250_v21, %v8217_v41  ;;  %v7686_v49 = vpop.f32.mrb[209].mxu1  ;;  %v8123_v35 = vsub.f32 0.0, %v14368_v9  ;;  %v8126_v60 = vsub.f32 0.0, %v14374_v47 }
 0x40d   : > { %v8268_v53 = vsel %vm8265_vm2, %v8251_v28, %v8218_v11  ;;  %v8298_v31 = vcombine.low %v8266_v54, %v8267_v6  ;;  %v8252_v38 = vsel %vm8248_vm1, %v7686_v49, %v8171_v14  ;;  %v8145_v11 = vadd.f32 %v14384_v27, %v14352_v44 }
 0x40e   : > { %v8269_v15 = vsel %vm8265_vm2, %v8252_v38, %v8219_v36  ;;  %v8125_v14 = vsub.f32 0.0, %v14372_v50  ;;  %v8146_v54 = vadd.f32 %v14384_v27, %v14354_v46  ;;  %v8147_v21 = vadd.f32 %v14384_v27, %v14356_v16 }
 0x40f   : > { %8314 = vst [vmem:[%s14401_s24] sm:$0x77] %v8298_v31  ;;  %v8299_v4 = vcombine.low %v8268_v53, %v8269_v15  ;;  %v8176_v36 = vrot.slane %v8123_v35, 7  ;;  %v8224_v9 = vrot.slane %v8144_v8, 7  ;;  %v8177_v28 = vrot.slane %v8124_v63, 7 }
 0x410   : > { %v8225_v7 = vrot.slane %v8145_v11, 7  ;;  %v8178_v49 = vrot.slane %v8125_v14, 7  ;;  %v8226_v50 = vrot.slane %v8146_v54, 7  ;;  %v8179_v53 = vrot.slane %v8126_v60, 7 }
 0x411   : > { %8315 = vst [vmem:[%s14401_s24 + $0x8] sm:$0x77] %v8299_v4  ;;  %v8227_v38 = vrot.slane %v8147_v21, 7 }
 0x419   : > { %v7755_v23 = vpop.f32.mrb[210].mxu0 }
 0x41a   : > { %v8253_v62 = vsel %vm8248_vm1, %v7755_v23, %v8172_v26  ;;  %v7757_v58 = vpop.f32.mrb[211].mxu0  ;;  %v8149_v26 = vadd.f32 %v14384_v27, %v14360_v17  ;;  %v8130_v23 = vsub.f32 0.0, %v14382_v61 }
 0x41b   : > { %v8270_v12 = vsel %vm8265_vm2, %v8253_v62, %v8220_v48  ;;  %v7826_v40 = vpop.f32.mrb[210].mxu1  ;;  %v8254_v45 = vsel %vm8248_vm1, %v7757_v58, %v8173_v33  ;;  %v8129_v48 = vsub.f32 0.0, %v14380_v42  ;;  %v8150_v33 = vadd.f32 %v14384_v27, %v14362_v3 }
 0x41c   : > { %v8255_v10 = vsel %vm8248_vm1, %v7826_v40, %v8174_v22  ;;  %v8271_v55 = vsel %vm8265_vm2, %v8254_v45, %v8221_v56  ;;  %v7828_v29 = vpop.f32.mrb[211].mxu1  ;;  %v8151_v56 = vadd.f32 %v14384_v27, %v14364_v39  ;;  %v8180_v22 = vrot.slane %v8127_v24, 7 }
 0x41d   : > { %v8272_v34 = vsel %vm8265_vm2, %v8255_v10, %v8222_v5  ;;  %v8300_v52 = vcombine.low %v8270_v12, %v8271_v55  ;;  %v8256_v19 = vsel %vm8248_vm1, %v7828_v29, %v8175_v2  ;;  %v8181_v62 = vrot.slane %v8128_v51, 7 }
 0x41e   : > { %v8273_v32 = vsel %vm8265_vm2, %v8256_v19, %v8223_v59  ;;  %v8229_v13 = vrot.slane %v8149_v26, 7  ;;  %v8182_v58 = vrot.slane %v8129_v48, 7  ;;  %v8230_v42 = vrot.slane %v8150_v33, 7 }
 0x41f   : > { %8316 = vst [vmem:[%s14401_s24 + $0x10] sm:$0x77] %v8300_v52  ;;  %v8301_v41 = vcombine.low %v8272_v34, %v8273_v32  ;;  %v8183_v2 = vrot.slane %v8130_v23, 7  ;;  %v8231_v27 = vrot.slane %v8151_v56, 7 }
 0x421   : > { %8317 = vst [vmem:[%s14401_s24 + $0x18] sm:$0x77] %v8301_v41 }
 0x429   : > { %v7897_v6 = vpop.f32.mrb[212].mxu0 }
 0x42a   : > { %v8257_v18 = vsel %vm8248_vm1, %v7897_v6, %v8176_v36  ;;  %v7899_v44 = vpop.f32.mrb[213].mxu0 }
 0x42b   : > { %v8274_v46 = vsel %vm8265_vm2, %v8257_v18, %v8224_v9  ;;  %v7968_v31 = vpop.f32.mrb[212].mxu1  ;;  %v8258_v47 = vsel %vm8248_vm1, %v7899_v44, %v8177_v28 }
 0x42c   : > { %v8259_v16 = vsel %vm8248_vm1, %v7968_v31, %v8178_v49  ;;  %v8275_v15 = vsel %vm8265_vm2, %v8258_v47, %v8225_v7  ;;  %v7970_v4 = vpop.f32.mrb[213].mxu1 }
 0x42d   : > { %v8276_v1 = vsel %vm8265_vm2, %v8259_v16, %v8226_v50  ;;  %v8302_v20 = vcombine.low %v8274_v46, %v8275_v15  ;;  %v8260_v25 = vsel %vm8248_vm1, %v7970_v4, %v8179_v53 }
 0x42e   : > { %v8277_v37 = vsel %vm8265_vm2, %v8260_v25, %v8227_v38 }
 0x42f   : > { %8318 = vst [vmem:[%s14401_s24 + $0x20] sm:$0x77] %v8302_v20  ;;  %v8303_v30 = vcombine.low %v8276_v1, %v8277_v37 }
 0x431   : > { %8319 = vst [vmem:[%s14401_s24 + $0x28] sm:$0x77] %v8303_v30 }
 0x439   : > { %v8039_v57 = vpop.f32.mrb[214].mxu0 }
 0x43a   : > { %v8261_v17 = vsel %vm8248_vm1, %v8039_v57, %v8180_v22  ;;  %v8041_v5 = vpop.f32.mrb[215].mxu0 }
 0x43b   : > { %v8278_v3 = vsel %vm8265_vm2, %v8261_v17, %v8228_v0  ;;  %v8110_v61 = vpop.f32.mrb[214].mxu1  ;;  %v8262_v39 = vsel %vm8248_vm1, %v8041_v5, %v8181_v62 }
 0x43c   : > { %v8263_v12 = vsel %vm8248_vm1, %v8110_v61, %v8182_v58  ;;  %v8279_v40 = vsel %vm8265_vm2, %v8262_v39, %v8229_v13  ;;  %v8112_v45 = vpop.f32.mrb[215].mxu1 }
 0x43d   : > { %v8280_v59 = vsel %vm8265_vm2, %v8263_v12, %v8230_v42  ;;  %v8304_v10 = vcombine.low %v8278_v3, %v8279_v40  ;;  %v8264_v55 = vsel %vm8248_vm1, %v8112_v45, %v8183_v2 }
 0x43e   : > { %v8281_v29 = vsel %vm8265_vm2, %v8264_v55, %v8231_v27 }
 0x43f   : > { %8320 = vst [vmem:[%s14401_s24 + $0x30] sm:$0x77] %v8304_v10  ;;  %v8305_v34 = vcombine.low %v8280_v59, %v8281_v29 }
 0x441   : > { %8321 = vst [vmem:[%s14401_s24 + $0x38] sm:$0x77] %v8305_v34 }
 0x442   : > { %9667 = shalt.err (!%p9664_p3)
}
 0x443   : > { %s9668_s21 = scalar_lea.hbm %s14472_s13, 1024  ;;  %s9672_s24 = scalar_lea.hbm %s14525_s8, 2048 }
 0x444   : > { %p9669_p4 = scmp.ne.s32.totalorder %s14472_s13, %s9668_s21  ;;  %p9673_p9 = scmp.lt.u32.totalorder %s14472_s13, %s14525_s8 }
 0x445   : > { %p9674_p10 = scmp.lt.u32.totalorder %s9672_s24, %s9668_s21  ;;  %p9676_p12 = scmp.lt.u32.totalorder %s9668_s21, %s14472_s13 }
 0x446   : > { %p9670_p7 = pnand %p9669_p4, %p9805_p5 }
 0x447   : > { %p9675_p11 = por %p9674_p10, %p9673_p9 }
 0x448   : > { %p9671_p8 = pneg %p9670_p7 }
 0x449   : > { %p9677_p13 = por %p9676_p12, %p9675_p11 }
 0x44b   : > { %p9678_p0 = pnand %p9677_p13, %p9671_p8 }
 0x44d   : > { %9681 = shalt.err (!%p9678_p0)
}
 0x44e   : > { %9209 = dma.vmem_to_hbm [thread:$0]  (%p9805_p5), %s14474_s26, 1024, %s14472_s13, %s8323_s9  }
 0x44f PF: > { %p9215_p1 = scmp.ge.s32.totalorder %s9716_s30, 2  ;;  %s8349_s12 = sand.u32 1, %s9704_s27  }
 0x450   : > { %s8350_s17 = scalar_lea.sflag [#allocation3], %s8349_s12 }
 0x451   : > { %p9212_p2 = pnand %p9215_p1, %p9809_p6 }
 0x453   : > { %9699 = dma.done.wait (!%p9212_p2), %s8350_s17, 1024  }
 0x454   : > { %9701 = vsyncadd (!%p9212_p2), %s8350_s17, 4294966272  ;;  %p18_p3 = scmp.ge.s32.totalorder %s9792_s11, 4   ;;  %s15441_s27 = smov %s9708_s28 }
 0x455   : > { %s15442_s28 = smov %s9712_s29  ;;  %s15443_s29 = smov %s9803_s14 }
 0x456   : > { %s15444_s30 = smov %s9792_s11  ;;  %20 = sbr.rel (!%p18_p3) target bundleno = 3 (0x3), region = 89 }
 0x45d   :  { %8355 = vsyncpa [#allocation3], 1 }
 0x45e   :  { %8357 = vsyncpa [#allocation3 + $0x1], 1 }

</bundles_post_ra>
